<compile_context>
chip_gen: v7x
topology: tpu7x:2x2x1
jax: 0.10.0
libtpu: 0.0.40
codegen_flags: <defaults>
</compile_context>

<pallas_src>
import functools
from math import ceil, prod

import jax
import jax.numpy as jnp
from jax import lax
from jax.experimental import pallas as pl
from jax.experimental.pallas import tpu as pltpu


# ----------------------------------------------------------------------------
# Helpers
# ----------------------------------------------------------------------------
def _pair(v):
    return (v, v) if isinstance(v, int) else tuple(v)


def _group_agg_matrix(C, G):
    """(C, C) 0/1 matrix: agg[i, j] = 1 iff channels i, j are in the same group."""
    cg = C // G
    gid = jnp.arange(C) // cg
    return (gid[:, None] == gid[None, :]).astype(jnp.float32)


def _sample_selector(N, HW):
    """(N*HW, N) 0/1 matrix: sel[col, n] = 1 iff column col belongs to sample n."""
    col_sample = jnp.arange(N * HW) // HW
    return (col_sample[:, None] == jnp.arange(N)[None, :]).astype(jnp.float32)


def _build_patches(x, KH, KW, stride, padding):
    """x: (C, N, H, W) channel-major -> patches (KH*KW*C, N*Ho*Wo). No transposes.

    Rows are tap-major / channel-minor, so for a 3x3 stride-1 pad-1 conv the center
    tap is the contiguous row block [4*C, 5*C) and equals x itself (used as the
    in-kernel residual, removing a second HBM read of x).
    """
    C, N, H, W = x.shape
    sh, sw = stride
    ph, pw = padding
    Ho = (H + 2 * ph - KH) // sh + 1
    Wo = (W + 2 * pw - KW) // sw + 1
    xp = jnp.pad(x, ((0, 0), (0, 0), (ph, ph), (pw, pw)))
    taps = [xp[:, :, kh:kh + sh * Ho:sh, kw:kw + sw * Wo:sw]
            for kh in range(KH) for kw in range(KW)]          # each (C, N, Ho, Wo)
    pat = jnp.stack(taps, axis=0)                              # (KH*KW, C, N, Ho, Wo)
    return pat.reshape(KH * KW * C, N * Ho * Wo), Ho, Wo


def _spec2(r, c):
    return pl.BlockSpec((r, c), lambda i: (0, 0))


# ----------------------------------------------------------------------------
# Pallas kernels
# ----------------------------------------------------------------------------
def _conv_gn_elu_kernel(p_ref, w_ref, g_ref, b_ref, agg_ref, sel_ref, selT_ref, o_ref,
                        *, cin, hw, groups, eps, has_residual):
    """Fused batch-folded conv block: matmul -> GroupNorm -> ELU [-> + residual].

      p_ref    (K, N*HW)     bf16 im2col patches (tap-major rows, sample-major cols)
      w_ref    (Cout, K)     bf16 conv weight (matching row order)
      g_ref    (Cout, 1)     GroupNorm gamma        b_ref (Cout, 1) beta
      agg_ref  (Cout, Cout)  0/1 same-group matrix
      sel_ref  (N*HW, N)     0/1 per-sample column selector,  selT_ref = sel.T
      o_ref    (Cout, N*HW)  f32 output
    """
    p = p_ref[...]
    y = jnp.dot(w_ref[...], p, preferred_element_type=jnp.float32)   # (Cout, N*HW) f32
    cout = y.shape[0]
    inv_count = 1.0 / float((cout // groups) * hw)

    sel = sel_ref[...]
    selT = selT_ref[...]
    agg = agg_ref[...]

    # Per-(sample, group) mean / biased var, broadcast back with tiny MXU dots.
    cs = jnp.dot(y, sel, preferred_element_type=jnp.float32)                 # (Cout, N)
    mean = jnp.dot(agg, cs, preferred_element_type=jnp.float32) * inv_count  # (Cout, N)
    meanf = jnp.dot(mean, selT, preferred_element_type=jnp.float32)          # (Cout, N*HW)
    d = y - meanf
    vs = jnp.dot(d * d, sel, preferred_element_type=jnp.float32)
    var = jnp.dot(agg, vs, preferred_element_type=jnp.float32) * inv_count
    varf = jnp.dot(var, selT, preferred_element_type=jnp.float32)

    z = d * lax.rsqrt(varf + eps) * g_ref[...] + b_ref[...]
    # ELU(alpha=1); clamp before exp so the discarded branch cannot overflow
    act = jnp.where(z > 0, z, jnp.exp(jnp.minimum(z, 0.0)) - 1.0)
    if has_residual:
        # Residual = center tap of the resident patch block (== x for 3x3/s1/p1).
        act = act + p[4 * cin:5 * cin, :].astype(jnp.float32)
    o_ref[...] = act


def _conv_bias_kernel(p_ref, w_ref, b_ref, o_ref):
    # (Cout, K) @ (K, N*HW) + (Cout, 1) — lane-dense, batch-folded output
    o_ref[...] = (jnp.dot(w_ref[...], p_ref[...], preferred_element_type=jnp.float32)
                  + b_ref[...])


def _latent_kernel(x_ref, wmu_ref, bmu_ref, wlv_ref, blv_ref, eps_ref, wdec_ref, bdec_ref,
                   mu_ref, lv_ref, dec_ref):
    """fc_mu + fc_logvar + reparameterize + decoder fc, fused (z never hits HBM)."""
    x = x_ref[...]
    mu = jnp.dot(x, wmu_ref[...], preferred_element_type=jnp.float32) + bmu_ref[...]
    lv = jnp.dot(x, wlv_ref[...], preferred_element_type=jnp.float32) + blv_ref[...]
    z = eps_ref[...] * jnp.exp(0.5 * lv) + mu
    mu_ref[...] = mu
    lv_ref[...] = lv
    dec_ref[...] = (jnp.dot(z, wdec_ref[...], preferred_element_type=jnp.float32)
                    + bdec_ref[...])


# ----------------------------------------------------------------------------
# Pallas wrappers
# ----------------------------------------------------------------------------
def fused_conv_block(x, p, add_residual=False, eps=1e-5):
    """ELU(GroupNorm(Conv2d(x; bias=False))) [+ x], one pallas_call over the full batch.

    x: (Cin, N, H, W) channel-major; p: dict(w, gamma, beta, groups, stride, padding).
    Returns (Cout, N, Ho, Wo) float32.
    """
    Cin, N, H, W = x.shape
    Cout = p['w'].shape[0]
    KH, KW = p['w'].shape[2], p['w'].shape[3]
    stride, padding = _pair(p['stride']), _pair(p['padding'])
    if add_residual:
        assert stride == (1, 1) and padding == (1, 1) and (KH, KW) == (3, 3) and Cin == Cout

    patches, Ho, Wo = _build_patches(x, KH, KW, stride, padding)
    K, NHW = patches.shape
    HW = Ho * Wo
    G = p['groups']

    # Weight rows must match the tap-major / channel-minor patch row order.
    w2 = p['w'].transpose(0, 2, 3, 1).reshape(Cout, K)
    sel = _sample_selector(N, HW)

    kernel = functools.partial(_conv_gn_elu_kernel, cin=Cin, hw=HW, groups=G,
                               eps=eps, has_residual=add_residual)
    out = pl.pallas_call(
        kernel,
        grid=(1,),
        in_specs=[_spec2(K, NHW), _spec2(Cout, K), _spec2(Cout, 1), _spec2(Cout, 1),
                  _spec2(Cout, Cout), _spec2(NHW, N), _spec2(N, NHW)],
        out_specs=_spec2(Cout, NHW),
        out_shape=jax.ShapeDtypeStruct((Cout, NHW), jnp.float32),
        compiler_params=pltpu.CompilerParams(dimension_semantics=("arbitrary",)),
    )(patches.astype(jnp.bfloat16),
      w2.astype(jnp.bfloat16),
      p['gamma'].reshape(Cout, 1).astype(jnp.float32),
      p['beta'].reshape(Cout, 1).astype(jnp.float32),
      _group_agg_matrix(Cout, G),
      sel, sel.T)
    return out.reshape(Cout, N, Ho, Wo)


def fused_conv_bias(x, w, b, stride, padding):
    """Plain Conv2d with bias (decoder head), batch-folded, one pallas_call."""
    Cin, N, H, W = x.shape
    Cout = w.shape[0]
    KH, KW = w.shape[2], w.shape[3]
    patches, Ho, Wo = _build_patches(x, KH, KW, _pair(stride), _pair(padding))
    K, NHW = patches.shape
    w2 = w.transpose(0, 2, 3, 1).reshape(Cout, K)
    out = pl.pallas_call(
        _conv_bias_kernel,
        grid=(1,),
        in_specs=[_spec2(K, NHW), _spec2(Cout, K), _spec2(Cout, 1)],
        out_specs=_spec2(Cout, NHW),
        out_shape=jax.ShapeDtypeStruct((Cout, NHW), jnp.float32),
        compiler_params=pltpu.CompilerParams(dimension_semantics=("arbitrary",)),
    )(patches.astype(jnp.bfloat16), w2.astype(jnp.bfloat16),
      b.reshape(Cout, 1).astype(jnp.float32))
    return out.reshape(Cout, N, Ho, Wo)


def fused_latent(flat, wmu, bmu, wlv, blv, eps, wdec, bdec):
    """One kernel: mu, logvar, z = eps*exp(0.5*logvar)+mu, and dec = z @ Wdec.T + bdec.

    flat: (B, D); wmu/wlv: (L, D) torch layout; wdec: (E, L) torch layout.
    Returns mu (B, L), logvar (B, L), dec (B, E).
    """
    B, D = flat.shape
    L = wmu.shape[0]
    E = wdec.shape[0]
    mu, lv, dec = pl.pallas_call(
        _latent_kernel,
        grid=(1,),
        in_specs=[_spec2(B, D), _spec2(D, L), _spec2(1, L), _spec2(D, L), _spec2(1, L),
                  _spec2(B, L), _spec2(L, E), _spec2(1, E)],
        out_specs=(_spec2(B, L), _spec2(B, L), _spec2(B, E)),
        out_shape=(jax.ShapeDtypeStruct((B, L), jnp.float32),
                   jax.ShapeDtypeStruct((B, L), jnp.float32),
                   jax.ShapeDtypeStruct((B, E), jnp.float32)),
        compiler_params=pltpu.CompilerParams(dimension_semantics=("arbitrary",)),
    )(flat.astype(jnp.float32),
      wmu.T.astype(jnp.float32), bmu.reshape(1, L).astype(jnp.float32),
      wlv.T.astype(jnp.float32), blv.reshape(1, L).astype(jnp.float32),
      eps.astype(jnp.float32),
      wdec.T.astype(jnp.float32), bdec.reshape(1, E).astype(jnp.float32))
    return mu, lv, dec


# ----------------------------------------------------------------------------
# ConvTranspose / Upsample glue (pure data movement, gather-free)
# ----------------------------------------------------------------------------
def conv_transpose_as_conv_input(x, w, stride, padding, output_padding):
    """Lower ConvTranspose2d (bias=False) to a stride-1 valid conv on a zero-dilated input.

    x: (Cin, N, H, W) channel-major; w: (Cin, Cout, KH, KW) [torch ConvTranspose2d layout].
    Returns (x_dilated_padded, w_conv) with w_conv in (Cout, Cin, KH, KW) layout.
    """
    KH, KW = w.shape[2], w.shape[3]
    sh, sw = _pair(stride)
    ph, pw = _pair(padding)
    oph, opw = _pair(output_padding)
    cfg = ((0, 0, 0), (0, 0, 0),
           (KH - 1 - ph, KH - 1 - ph + oph, sh - 1),
           (KW - 1 - pw, KW - 1 - pw + opw, sw - 1))
    xd = lax.pad(x, jnp.zeros((), x.dtype), cfg)               # single pad op (interior dilation)
    w_conv = jnp.flip(w, axis=(2, 3)).transpose(1, 0, 2, 3)    # (Cout, Cin, KH, KW)
    return xd, w_conv


def upsample2x_bilinear(x):
    """scale_factor=2, mode='bilinear', align_corners=False, on (C, N, H, W).

    Separable 0.75/0.25 lerp built from static edge-clamped slices (no gather).
    """
    def up1d(a, ax):
        L = a.shape[ax]
        left = jnp.concatenate([lax.slice_in_dim(a, 0, 1, axis=ax),
                                lax.slice_in_dim(a, 0, L - 1, axis=ax)], axis=ax)
        right = jnp.concatenate([lax.slice_in_dim(a, 1, L, axis=ax),
                                 lax.slice_in_dim(a, L - 1, L, axis=ax)], axis=ax)
        even = 0.75 * a + 0.25 * left
        odd = 0.75 * a + 0.25 * right
        stacked = jnp.stack([even, odd], axis=ax + 1)
        new_shape = list(a.shape)
        new_shape[ax] = 2 * L
        return stacked.reshape(new_shape)

    return up1d(up1d(x, 2), 3)


# ----------------------------------------------------------------------------
# Parameter init (deterministic, synthetic — not a checkpoint load)
# ----------------------------------------------------------------------------
def _num_groups(c):
    return min(32, max(1, c // 4))


def _init_conv_block(key, cin, cout, stride, padding):
    w = jax.random.normal(key, (cout, cin, 3, 3), jnp.float32) * 0.1
    return dict(w=w,
                gamma=jnp.ones((cout,), jnp.float32),
                beta=jnp.zeros((cout,), jnp.float32),
                groups=_num_groups(cout),
                stride=stride, padding=padding)


def init_vae_params(key, img_size, in_channels, latent_dim, hidden_layers):
    keys = iter(jax.random.split(key, 64))
    # ---- encoder ----
    enc_blocks = []
    c = in_channels
    for layer in hidden_layers:
        enc_blocks.append(dict(
            conv1=_init_conv_block(next(keys), c, c, 1, 1),
            conv2=_init_conv_block(next(keys), c, layer, 2, 1)))
        c = layer
    origin_shape = (hidden_layers[-1],
                    ceil(img_size[0] / 2 ** len(hidden_layers)),
                    ceil(img_size[1] / 2 ** len(hidden_layers)))
    enc_dim = prod(origin_shape)
    encoder = dict(
        blocks=enc_blocks,
        fc_mu_w=jax.random.normal(next(keys), (latent_dim, enc_dim), jnp.float32) * 0.05,
        fc_mu_b=jnp.zeros((latent_dim,), jnp.float32),
        fc_logvar_w=jax.random.normal(next(keys), (latent_dim, enc_dim), jnp.float32) * 0.05,
        fc_logvar_b=jnp.zeros((latent_dim,), jnp.float32))
    # ---- decoder ----  (out_pad formula mirrors the PyTorch module verbatim)
    out_pad = (int(img_size[0] % len(hidden_layers) == 0),
               int(img_size[1] % len(hidden_layers) == 0))
    hid_rev = hidden_layers[::-1]
    dec_blocks = []
    for i, (curr, nxt) in enumerate(zip(hid_rev, hid_rev[1:] + (hid_rev[-1],))):
        blk = dict(conv=_init_conv_block(next(keys), curr, curr, 1, 1),
                   first=(i == 0),
                   convt_gamma=jnp.ones((nxt,), jnp.float32),
                   convt_beta=jnp.zeros((nxt,), jnp.float32),
                   convt_groups=_num_groups(nxt))
        if i == 0:
            blk['convt_w'] = jax.random.normal(next(keys), (curr, nxt, 3, 3), jnp.float32) * 0.1
            blk['out_pad'] = out_pad
        else:
            blk['convt_w'] = jax.random.normal(next(keys), (nxt, curr, 3, 3), jnp.float32) * 0.1
        dec_blocks.append(blk)
    decoder = dict(
        fc_w=jax.random.normal(next(keys), (enc_dim, latent_dim), jnp.float32) * 0.05,
        fc_b=jnp.zeros((enc_dim,), jnp.float32),
        blocks=dec_blocks,
        head_w=jax.random.normal(next(keys), (in_channels, hid_rev[-1], 3, 3), jnp.float32) * 0.1,
        head_b=jnp.zeros((in_channels,), jnp.float32))
    return dict(encoder=encoder, decoder=decoder, origin_shape=origin_shape)


# ----------------------------------------------------------------------------
# Forward pass (mirrors the PyTorch module; activations in (C, N, H, W) layout)
# ----------------------------------------------------------------------------
def encoder_forward(x_cm, enc):
    for blk in enc['blocks']:
        # out = ELU(GN(conv1(x))); s = out + x   — fused into one pallas_call
        s = fused_conv_block(x_cm, blk['conv1'], add_residual=True)
        x_cm = fused_conv_block(s, blk['conv2'])
    C, N, h, w = x_cm.shape
    # torch.flatten(x, start_dim=1) on NCHW -> tiny (<= 2 KiB) transpose at the boundary
    return x_cm.transpose(1, 0, 2, 3).reshape(N, C * h * w)


def decoder_forward(dec_flat, dec, origin_shape):
    C0, h0, w0 = origin_shape
    N = dec_flat.shape[0]
    z = dec_flat.reshape(N, C0, h0, w0).transpose(1, 0, 2, 3)   # -> (C, N, h, w)
    for blk in dec['blocks']:
        # out = ELU(GN(conv(z))); s = out + z   — fused
        s = fused_conv_block(z, blk['conv'], add_residual=True)
        if blk['first']:
            xd, w_conv = conv_transpose_as_conv_input(
                s, blk['convt_w'], stride=2, padding=1, output_padding=blk['out_pad'])
            z = fused_conv_block(xd, dict(w=w_conv, gamma=blk['convt_gamma'],
                                          beta=blk['convt_beta'], groups=blk['convt_groups'],
                                          stride=1, padding=0))
        else:
            s = upsample2x_bilinear(s)
            z = fused_conv_block(s, dict(w=blk['convt_w'], gamma=blk['convt_gamma'],
                                         beta=blk['convt_beta'], groups=blk['convt_groups'],
                                         stride=1, padding=1))
    out = fused_conv_bias(z, dec['head_w'], dec['head_b'], stride=1, padding=1)
    return out.transpose(1, 0, 2, 3)                            # -> (N, C, H, W)


def vae_forward(params, x, eps_key, stochastic=True):
    enc = params['encoder']
    x_cm = x.transpose(1, 0, 2, 3)                              # NCHW -> (C, N, H, W)
    flat = encoder_forward(x_cm, enc)
    B = flat.shape[0]
    L = enc['fc_mu_w'].shape[0]
    eps = (jax.random.normal(eps_key, (B, L), jnp.float32) if stochastic
           else jnp.zeros((B, L), jnp.float32))                 # eps=0 => z == mu exactly
    mu, logvar, dec_flat = fused_latent(
        flat, enc['fc_mu_w'], enc['fc_mu_b'], enc['fc_logvar_w'], enc['fc_logvar_b'],
        eps, params['decoder']['fc_w'], params['decoder']['fc_b'])
    recon = decoder_forward(dec_flat, params['decoder'], params['origin_shape'])
    return recon, mu, logvar


# ----------------------------------------------------------------------------
if __name__ == "__main__":
    key = jax.random.PRNGKey(0)
    pkey, xkey, ekey = jax.random.split(key, 3)

    img_size = (16, 16)
    in_channels = 4
    latent_dim = 32
    hidden_layers = (8, 16)
    batch = 2

    params = init_vae_params(pkey, img_size, in_channels, latent_dim, hidden_layers)
    x = jax.random.normal(xkey, (batch, in_channels, *img_size), jnp.float32)

    @functools.partial(jax.jit, static_argnums=(2,))
    def run(xin, eps_key, stochastic):
        return vae_forward(params, xin, eps_key, stochastic)

    recon, mu, logvar = run(x, ekey, True)
    jax.block_until_ready((recon, mu, logvar))

    assert recon.shape == (batch, in_channels, *img_size), recon.shape
    assert mu.shape == (batch, latent_dim) and logvar.shape == (batch, latent_dim)
    assert bool(jnp.all(jnp.isfinite(recon))) and bool(jnp.all(jnp.isfinite(mu)))
    print("KERNEL_OK")
</pallas_src>

<mosaic_0001>
module attributes {stable_mosaic.version = 11 : i64} {
  func.func @_conv_gn_elu_kernel(%arg0: i32, %arg1: memref<36x512xbf16, #tpu.memory_space<vmem>>, %arg2: memref<4x36xbf16, #tpu.memory_space<vmem>>, %arg3: memref<4x1xf32, #tpu.memory_space<vmem>>, %arg4: memref<4x1xf32, #tpu.memory_space<vmem>>, %arg5: memref<4x4xf32, #tpu.memory_space<vmem>>, %arg6: memref<512x2xf32, #tpu.memory_space<vmem>>, %arg7: memref<2x512xf32, #tpu.memory_space<vmem>>, %arg8: memref<4x512xf32, #tpu.memory_space<vmem>>) attributes {dimension_semantics = [#tpu.dimension_semantics<arbitrary>], iteration_bounds = array<i64: 1>, scalar_prefetch = 0 : i64, scratch_operands = 0 : i64, tpu.core_type = #tpu.core_type<tc>, window_params = [{pipeline_mode = #tpu.pipeline_mode<synchronous>, transform_indices = @transform_0, window_bounds = array<i64: 36, 512>}, {pipeline_mode = #tpu.pipeline_mode<synchronous>, transform_indices = @transform_1, window_bounds = array<i64: 4, 36>}, {pipeline_mode = #tpu.pipeline_mode<synchronous>, transform_indices = @transform_2, window_bounds = array<i64: 4, 1>}, {pipeline_mode = #tpu.pipeline_mode<synchronous>, transform_indices = @transform_3, window_bounds = array<i64: 4, 1>}, {pipeline_mode = #tpu.pipeline_mode<synchronous>, transform_indices = @transform_4, window_bounds = array<i64: 4, 4>}, {pipeline_mode = #tpu.pipeline_mode<synchronous>, transform_indices = @transform_5, window_bounds = array<i64: 512, 2>}, {pipeline_mode = #tpu.pipeline_mode<synchronous>, transform_indices = @transform_6, window_bounds = array<i64: 2, 512>}, {pipeline_mode = #tpu.pipeline_mode<synchronous>, transform_indices = @transform_7, window_bounds = array<i64: 4, 512>}]} {
    %c0 = arith.constant 0 : index
    %c0_0 = arith.constant 0 : index
    %0 = vector.load %arg1[%c0, %c0_0] : memref<36x512xbf16, #tpu.memory_space<vmem>>, vector<36x512xbf16>
    %c0_1 = arith.constant 0 : index
    %c0_2 = arith.constant 0 : index
    %1 = vector.load %arg2[%c0_1, %c0_2] : memref<4x36xbf16, #tpu.memory_space<vmem>>, vector<4x36xbf16>
    %cst = arith.constant dense<0.000000e+00> : vector<4x512xf32>
    %2 = tpu.matmul %1, %0, %cst {dimension_numbers = #tpu.dot_dimension_numbers<[1], [0], [0], [1], [0, 0, 1, 1], [], []>} : vector<4x36xbf16>, vector<36x512xbf16>, vector<4x512xf32> -> vector<4x512xf32>
    %c0_3 = arith.constant 0 : index
    %c0_4 = arith.constant 0 : index
    %3 = vector.load %arg6[%c0_3, %c0_4] : memref<512x2xf32, #tpu.memory_space<vmem>>, vector<512x2xf32>
    %c0_5 = arith.constant 0 : index
    %c0_6 = arith.constant 0 : index
    %4 = vector.load %arg7[%c0_5, %c0_6] : memref<2x512xf32, #tpu.memory_space<vmem>>, vector<2x512xf32>
    %c0_7 = arith.constant 0 : index
    %c0_8 = arith.constant 0 : index
    %5 = vector.load %arg5[%c0_7, %c0_8] : memref<4x4xf32, #tpu.memory_space<vmem>>, vector<4x4xf32>
    %cst_9 = arith.constant dense<0.000000e+00> : vector<4x2xf32>
    %6 = tpu.matmul %2, %3, %cst_9 {dimension_numbers = #tpu.dot_dimension_numbers<[1], [0], [0], [1], [0, 0, 1, 1], [], []>} : vector<4x512xf32>, vector<512x2xf32>, vector<4x2xf32> -> vector<4x2xf32>
    %cst_10 = arith.constant dense<0.000000e+00> : vector<4x2xf32>
    %7 = tpu.matmul %5, %6, %cst_10 {dimension_numbers = #tpu.dot_dimension_numbers<[1], [0], [0], [1], [0, 0, 1, 1], [], []>} : vector<4x4xf32>, vector<4x2xf32>, vector<4x2xf32> -> vector<4x2xf32>
    %cst_11 = arith.constant 9.765625E-4 : f32
    %8 = vector.broadcast %cst_11 : f32 to vector<4x2xf32>
    %9 = arith.mulf %7, %8 : vector<4x2xf32>
    %cst_12 = arith.constant dense<0.000000e+00> : vector<4x512xf32>
    %10 = tpu.matmul %9, %4, %cst_12 {dimension_numbers = #tpu.dot_dimension_numbers<[1], [0], [0], [1], [0, 0, 1, 1], [], []>} : vector<4x2xf32>, vector<2x512xf32>, vector<4x512xf32> -> vector<4x512xf32>
    %11 = arith.subf %2, %10 : vector<4x512xf32>
    %12 = arith.mulf %11, %11 : vector<4x512xf32>
    %cst_13 = arith.constant dense<0.000000e+00> : vector<4x2xf32>
    %13 = tpu.matmul %12, %3, %cst_13 {dimension_numbers = #tpu.dot_dimension_numbers<[1], [0], [0], [1], [0, 0, 1, 1], [], []>} : vector<4x512xf32>, vector<512x2xf32>, vector<4x2xf32> -> vector<4x2xf32>
    %cst_14 = arith.constant dense<0.000000e+00> : vector<4x2xf32>
    %14 = tpu.matmul %5, %13, %cst_14 {dimension_numbers = #tpu.dot_dimension_numbers<[1], [0], [0], [1], [0, 0, 1, 1], [], []>} : vector<4x4xf32>, vector<4x2xf32>, vector<4x2xf32> -> vector<4x2xf32>
    %cst_15 = arith.constant 9.765625E-4 : f32
    %15 = vector.broadcast %cst_15 : f32 to vector<4x2xf32>
    %16 = arith.mulf %14, %15 : vector<4x2xf32>
    %cst_16 = arith.constant dense<0.000000e+00> : vector<4x512xf32>
    %17 = tpu.matmul %16, %4, %cst_16 {dimension_numbers = #tpu.dot_dimension_numbers<[1], [0], [0], [1], [0, 0, 1, 1], [], []>} : vector<4x2xf32>, vector<2x512xf32>, vector<4x512xf32> -> vector<4x512xf32>
    %cst_17 = arith.constant 9.99999974E-6 : f32
    %18 = vector.broadcast %cst_17 : f32 to vector<4x512xf32>
    %19 = arith.addf %17, %18 : vector<4x512xf32>
    %20 = math.rsqrt %19 : vector<4x512xf32>
    %21 = arith.mulf %11, %20 : vector<4x512xf32>
    %c0_18 = arith.constant 0 : index
    %c0_19 = arith.constant 0 : index
    %22 = vector.load %arg3[%c0_18, %c0_19] : memref<4x1xf32, #tpu.memory_space<vmem>>, vector<4x1xf32>
    %23 = vector.broadcast %22 : vector<4x1xf32> to vector<4x512xf32>
    %24 = arith.mulf %21, %23 : vector<4x512xf32>
    %c0_20 = arith.constant 0 : index
    %c0_21 = arith.constant 0 : index
    %25 = vector.load %arg4[%c0_20, %c0_21] : memref<4x1xf32, #tpu.memory_space<vmem>>, vector<4x1xf32>
    %26 = vector.broadcast %25 : vector<4x1xf32> to vector<4x512xf32>
    %27 = arith.addf %24, %26 : vector<4x512xf32>
    %cst_22 = arith.constant 0.000000e+00 : f32
    %28 = vector.broadcast %cst_22 : f32 to vector<4x512xf32>
    %29 = arith.cmpf ogt, %27, %28 : vector<4x512xf32>
    %cst_23 = arith.constant 0.000000e+00 : f32
    %30 = vector.broadcast %cst_23 : f32 to vector<4x512xf32>
    %31 = arith.minimumf %27, %30 : vector<4x512xf32>
    %32 = math.exp %31 : vector<4x512xf32>
    %cst_24 = arith.constant 1.000000e+00 : f32
    %33 = vector.broadcast %cst_24 : f32 to vector<4x512xf32>
    %34 = arith.subf %32, %33 : vector<4x512xf32>
    %35 = arith.select %29, %27, %34 : vector<4x512xi1>, vector<4x512xf32>
    %36 = vector.extract_strided_slice %0 {offsets = [16, 0], sizes = [4, 512], strides = [1, 1]} : vector<36x512xbf16> to vector<4x512xbf16>
    %37 = arith.extf %36 : vector<4x512xbf16> to vector<4x512xf32>
    %38 = arith.addf %35, %37 : vector<4x512xf32>
    %c0_25 = arith.constant 0 : index
    %c0_26 = arith.constant 0 : index
    %39 = vector.load %arg8[%c0_25, %c0_26] : memref<4x512xf32, #tpu.memory_space<vmem>>, vector<4x512xf32>
    tpu.vector_store %arg8[%c0_25, %c0_26], %38 {strides = array<i32>} : memref<4x512xf32, #tpu.memory_space<vmem>>, vector<4x512xf32>,
    return
  }
  func.func @transform_0(%arg0: i32) -> (i32, i32) {
    %c0_i32 = arith.constant 0 : i32
    %c0_i32_0 = arith.constant 0 : i32
    %c0_i32_1 = arith.constant 0 : i32
    return %c0_i32, %c0_i32_0 : i32, i32
  }
  func.func @transform_1(%arg0: i32) -> (i32, i32) {
    %c0_i32 = arith.constant 0 : i32
    %c0_i32_0 = arith.constant 0 : i32
    %c0_i32_1 = arith.constant 0 : i32
    return %c0_i32, %c0_i32_0 : i32, i32
  }
  func.func @transform_2(%arg0: i32) -> (i32, i32) {
    %c0_i32 = arith.constant 0 : i32
    %c0_i32_0 = arith.constant 0 : i32
    %c0_i32_1 = arith.constant 0 : i32
    return %c0_i32, %c0_i32_0 : i32, i32
  }
  func.func @transform_3(%arg0: i32) -> (i32, i32) {
    %c0_i32 = arith.constant 0 : i32
    %c0_i32_0 = arith.constant 0 : i32
    %c0_i32_1 = arith.constant 0 : i32
    return %c0_i32, %c0_i32_0 : i32, i32
  }
  func.func @transform_4(%arg0: i32) -> (i32, i32) {
    %c0_i32 = arith.constant 0 : i32
    %c0_i32_0 = arith.constant 0 : i32
    %c0_i32_1 = arith.constant 0 : i32
    return %c0_i32, %c0_i32_0 : i32, i32
  }
  func.func @transform_5(%arg0: i32) -> (i32, i32) {
    %c0_i32 = arith.constant 0 : i32
    %c0_i32_0 = arith.constant 0 : i32
    %c0_i32_1 = arith.constant 0 : i32
    return %c0_i32, %c0_i32_0 : i32, i32
  }
  func.func @transform_6(%arg0: i32) -> (i32, i32) {
    %c0_i32 = arith.constant 0 : i32
    %c0_i32_0 = arith.constant 0 : i32
    %c0_i32_1 = arith.constant 0 : i32
    return %c0_i32, %c0_i32_0 : i32, i32
  }
  func.func @transform_7(%arg0: i32) -> (i32, i32) {
    %c0_i32 = arith.constant 0 : i32
    %c0_i32_0 = arith.constant 0 : i32
    %c0_i32_1 = arith.constant 0 : i32
    return %c0_i32, %c0_i32_0 : i32, i32
  }
}

module attributes {stable_mosaic.version = 11 : i64} {
  func.func @_conv_gn_elu_kernel(%arg0: i32, %arg1: memref<36x128xbf16, #tpu.memory_space<vmem>>, %arg2: memref<8x36xbf16, #tpu.memory_space<vmem>>, %arg3: memref<8x1xf32, #tpu.memory_space<vmem>>, %arg4: memref<8x1xf32, #tpu.memory_space<vmem>>, %arg5: memref<8x8xf32, #tpu.memory_space<vmem>>, %arg6: memref<128x2xf32, #tpu.memory_space<vmem>>, %arg7: memref<2x128xf32, #tpu.memory_space<vmem>>, %arg8: memref<8x128xf32, #tpu.memory_space<vmem>>) attributes {dimension_semantics = [#tpu.dimension_semantics<arbitrary>], iteration_bounds = array<i64: 1>, scalar_prefetch = 0 : i64, scratch_operands = 0 : i64, tpu.core_type = #tpu.core_type<tc>, window_params = [{pipeline_mode = #tpu.pipeline_mode<synchronous>, transform_indices = @transform_0, window_bounds = array<i64: 36, 128>}, {pipeline_mode = #tpu.pipeline_mode<synchronous>, transform_indices = @transform_1, window_bounds = array<i64: 8, 36>}, {pipeline_mode = #tpu.pipeline_mode<synchronous>, transform_indices = @transform_2, window_bounds = array<i64: 8, 1>}, {pipeline_mode = #tpu.pipeline_mode<synchronous>, transform_indices = @transform_3, window_bounds = array<i64: 8, 1>}, {pipeline_mode = #tpu.pipeline_mode<synchronous>, transform_indices = @transform_4, window_bounds = array<i64: 8, 8>}, {pipeline_mode = #tpu.pipeline_mode<synchronous>, transform_indices = @transform_5, window_bounds = array<i64: 128, 2>}, {pipeline_mode = #tpu.pipeline_mode<synchronous>, transform_indices = @transform_6, window_bounds = array<i64: 2, 128>}, {pipeline_mode = #tpu.pipeline_mode<synchronous>, transform_indices = @transform_7, window_bounds = array<i64: 8, 128>}]} {
    %c0 = arith.constant 0 : index
    %c0_0 = arith.constant 0 : index
    %0 = vector.load %arg1[%c0, %c0_0] : memref<36x128xbf16, #tpu.memory_space<vmem>>, vector<36x128xbf16>
    %c0_1 = arith.constant 0 : index
    %c0_2 = arith.constant 0 : index
    %1 = vector.load %arg2[%c0_1, %c0_2] : memref<8x36xbf16, #tpu.memory_space<vmem>>, vector<8x36xbf16>
    %cst = arith.constant dense<0.000000e+00> : vector<8x128xf32>
    %2 = tpu.matmul %1, %0, %cst {dimension_numbers = #tpu.dot_dimension_numbers<[1], [0], [0], [1], [0, 0, 1, 1], [], []>} : vector<8x36xbf16>, vector<36x128xbf16>, vector<8x128xf32> -> vector<8x128xf32>
    %c0_3 = arith.constant 0 : index
    %c0_4 = arith.constant 0 : index
    %3 = vector.load %arg6[%c0_3, %c0_4] : memref<128x2xf32, #tpu.memory_space<vmem>>, vector<128x2xf32>
    %c0_5 = arith.constant 0 : index
    %c0_6 = arith.constant 0 : index
    %4 = vector.load %arg7[%c0_5, %c0_6] : memref<2x128xf32, #tpu.memory_space<vmem>>, vector<2x128xf32>
    %c0_7 = arith.constant 0 : index
    %c0_8 = arith.constant 0 : index
    %5 = vector.load %arg5[%c0_7, %c0_8] : memref<8x8xf32, #tpu.memory_space<vmem>>, vector<8x8xf32>
    %cst_9 = arith.constant dense<0.000000e+00> : vector<8x2xf32>
    %6 = tpu.matmul %2, %3, %cst_9 {dimension_numbers = #tpu.dot_dimension_numbers<[1], [0], [0], [1], [0, 0, 1, 1], [], []>} : vector<8x128xf32>, vector<128x2xf32>, vector<8x2xf32> -> vector<8x2xf32>
    %cst_10 = arith.constant dense<0.000000e+00> : vector<8x2xf32>
    %7 = tpu.matmul %5, %6, %cst_10 {dimension_numbers = #tpu.dot_dimension_numbers<[1], [0], [0], [1], [0, 0, 1, 1], [], []>} : vector<8x8xf32>, vector<8x2xf32>, vector<8x2xf32> -> vector<8x2xf32>
    %cst_11 = arith.constant 3.906250e-03 : f32
    %8 = vector.broadcast %cst_11 : f32 to vector<8x2xf32>
    %9 = arith.mulf %7, %8 : vector<8x2xf32>
    %cst_12 = arith.constant dense<0.000000e+00> : vector<8x128xf32>
    %10 = tpu.matmul %9, %4, %cst_12 {dimension_numbers = #tpu.dot_dimension_numbers<[1], [0], [0], [1], [0, 0, 1, 1], [], []>} : vector<8x2xf32>, vector<2x128xf32>, vector<8x128xf32> -> vector<8x128xf32>
    %11 = arith.subf %2, %10 : vector<8x128xf32>
    %12 = arith.mulf %11, %11 : vector<8x128xf32>
    %cst_13 = arith.constant dense<0.000000e+00> : vector<8x2xf32>
    %13 = tpu.matmul %12, %3, %cst_13 {dimension_numbers = #tpu.dot_dimension_numbers<[1], [0], [0], [1], [0, 0, 1, 1], [], []>} : vector<8x128xf32>, vector<128x2xf32>, vector<8x2xf32> -> vector<8x2xf32>
    %cst_14 = arith.constant dense<0.000000e+00> : vector<8x2xf32>
    %14 = tpu.matmul %5, %13, %cst_14 {dimension_numbers = #tpu.dot_dimension_numbers<[1], [0], [0], [1], [0, 0, 1, 1], [], []>} : vector<8x8xf32>, vector<8x2xf32>, vector<8x2xf32> -> vector<8x2xf32>
    %cst_15 = arith.constant 3.906250e-03 : f32
    %15 = vector.broadcast %cst_15 : f32 to vector<8x2xf32>
    %16 = arith.mulf %14, %15 : vector<8x2xf32>
    %cst_16 = arith.constant dense<0.000000e+00> : vector<8x128xf32>
    %17 = tpu.matmul %16, %4, %cst_16 {dimension_numbers = #tpu.dot_dimension_numbers<[1], [0], [0], [1], [0, 0, 1, 1], [], []>} : vector<8x2xf32>, vector<2x128xf32>, vector<8x128xf32> -> vector<8x128xf32>
    %cst_17 = arith.constant 9.99999974E-6 : f32
    %18 = vector.broadcast %cst_17 : f32 to vector<8x128xf32>
    %19 = arith.addf %17, %18 : vector<8x128xf32>
    %20 = math.rsqrt %19 : vector<8x128xf32>
    %21 = arith.mulf %11, %20 : vector<8x128xf32>
    %c0_18 = arith.constant 0 : index
    %c0_19 = arith.constant 0 : index
    %22 = vector.load %arg3[%c0_18, %c0_19] : memref<8x1xf32, #tpu.memory_space<vmem>>, vector<8x1xf32>
    %23 = vector.broadcast %22 : vector<8x1xf32> to vector<8x128xf32>
    %24 = arith.mulf %21, %23 : vector<8x128xf32>
    %c0_20 = arith.constant 0 : index
    %c0_21 = arith.constant 0 : index
    %25 = vector.load %arg4[%c0_20, %c0_21] : memref<8x1xf32, #tpu.memory_space<vmem>>, vector<8x1xf32>
    %26 = vector.broadcast %25 : vector<8x1xf32> to vector<8x128xf32>
    %27 = arith.addf %24, %26 : vector<8x128xf32>
    %cst_22 = arith.constant 0.000000e+00 : f32
    %28 = vector.broadcast %cst_22 : f32 to vector<8x128xf32>
    %29 = arith.cmpf ogt, %27, %28 : vector<8x128xf32>
    %cst_23 = arith.constant 0.000000e+00 : f32
    %30 = vector.broadcast %cst_23 : f32 to vector<8x128xf32>
    %31 = arith.minimumf %27, %30 : vector<8x128xf32>
    %32 = math.exp %31 : vector<8x128xf32>
    %cst_24 = arith.constant 1.000000e+00 : f32
    %33 = vector.broadcast %cst_24 : f32 to vector<8x128xf32>
    %34 = arith.subf %32, %33 : vector<8x128xf32>
    %35 = arith.select %29, %27, %34 : vector<8x128xi1>, vector<8x128xf32>
    %c0_25 = arith.constant 0 : index
    %c0_26 = arith.constant 0 : index
    %36 = vector.load %arg8[%c0_25, %c0_26] : memref<8x128xf32, #tpu.memory_space<vmem>>, vector<8x128xf32>
    tpu.vector_store %arg8[%c0_25, %c0_26], %35 {strides = array<i32>} : memref<8x128xf32, #tpu.memory_space<vmem>>, vector<8x128xf32>,
    return
  }
  func.func @transform_0(%arg0: i32) -> (i32, i32) {
    %c0_i32 = arith.constant 0 : i32
    %c0_i32_0 = arith.constant 0 : i32
    %c0_i32_1 = arith.constant 0 : i32
    return %c0_i32, %c0_i32_0 : i32, i32
  }
  func.func @transform_1(%arg0: i32) -> (i32, i32) {
    %c0_i32 = arith.constant 0 : i32
    %c0_i32_0 = arith.constant 0 : i32
    %c0_i32_1 = arith.constant 0 : i32
    return %c0_i32, %c0_i32_0 : i32, i32
  }
  func.func @transform_2(%arg0: i32) -> (i32, i32) {
    %c0_i32 = arith.constant 0 : i32
    %c0_i32_0 = arith.constant 0 : i32
    %c0_i32_1 = arith.constant 0 : i32
    return %c0_i32, %c0_i32_0 : i32, i32
  }
  func.func @transform_3(%arg0: i32) -> (i32, i32) {
    %c0_i32 = arith.constant 0 : i32
    %c0_i32_0 = arith.constant 0 : i32
    %c0_i32_1 = arith.constant 0 : i32
    return %c0_i32, %c0_i32_0 : i32, i32
  }
  func.func @transform_4(%arg0: i32) -> (i32, i32) {
    %c0_i32 = arith.constant 0 : i32
    %c0_i32_0 = arith.constant 0 : i32
    %c0_i32_1 = arith.constant 0 : i32
    return %c0_i32, %c0_i32_0 : i32, i32
  }
  func.func @transform_5(%arg0: i32) -> (i32, i32) {
    %c0_i32 = arith.constant 0 : i32
    %c0_i32_0 = arith.constant 0 : i32
    %c0_i32_1 = arith.constant 0 : i32
    return %c0_i32, %c0_i32_0 : i32, i32
  }
  func.func @transform_6(%arg0: i32) -> (i32, i32) {
    %c0_i32 = arith.constant 0 : i32
    %c0_i32_0 = arith.constant 0 : i32
    %c0_i32_1 = arith.constant 0 : i32
    return %c0_i32, %c0_i32_0 : i32, i32
  }
  func.func @transform_7(%arg0: i32) -> (i32, i32) {
    %c0_i32 = arith.constant 0 : i32
    %c0_i32_0 = arith.constant 0 : i32
    %c0_i32_1 = arith.constant 0 : i32
    return %c0_i32, %c0_i32_0 : i32, i32
  }
}

module attributes {stable_mosaic.version = 11 : i64} {
  func.func @_conv_gn_elu_kernel(%arg0: i32, %arg1: memref<72x128xbf16, #tpu.memory_space<vmem>>, %arg2: memref<8x72xbf16, #tpu.memory_space<vmem>>, %arg3: memref<8x1xf32, #tpu.memory_space<vmem>>, %arg4: memref<8x1xf32, #tpu.memory_space<vmem>>, %arg5: memref<8x8xf32, #tpu.memory_space<vmem>>, %arg6: memref<128x2xf32, #tpu.memory_space<vmem>>, %arg7: memref<2x128xf32, #tpu.memory_space<vmem>>, %arg8: memref<8x128xf32, #tpu.memory_space<vmem>>) attributes {dimension_semantics = [#tpu.dimension_semantics<arbitrary>], iteration_bounds = array<i64: 1>, scalar_prefetch = 0 : i64, scratch_operands = 0 : i64, tpu.core_type = #tpu.core_type<tc>, window_params = [{pipeline_mode = #tpu.pipeline_mode<synchronous>, transform_indices = @transform_0, window_bounds = array<i64: 72, 128>}, {pipeline_mode = #tpu.pipeline_mode<synchronous>, transform_indices = @transform_1, window_bounds = array<i64: 8, 72>}, {pipeline_mode = #tpu.pipeline_mode<synchronous>, transform_indices = @transform_2, window_bounds = array<i64: 8, 1>}, {pipeline_mode = #tpu.pipeline_mode<synchronous>, transform_indices = @transform_3, window_bounds = array<i64: 8, 1>}, {pipeline_mode = #tpu.pipeline_mode<synchronous>, transform_indices = @transform_4, window_bounds = array<i64: 8, 8>}, {pipeline_mode = #tpu.pipeline_mode<synchronous>, transform_indices = @transform_5, window_bounds = array<i64: 128, 2>}, {pipeline_mode = #tpu.pipeline_mode<synchronous>, transform_indices = @transform_6, window_bounds = array<i64: 2, 128>}, {pipeline_mode = #tpu.pipeline_mode<synchronous>, transform_indices = @transform_7, window_bounds = array<i64: 8, 128>}]} {
    %c0 = arith.constant 0 : index
    %c0_0 = arith.constant 0 : index
    %0 = vector.load %arg1[%c0, %c0_0] : memref<72x128xbf16, #tpu.memory_space<vmem>>, vector<72x128xbf16>
    %c0_1 = arith.constant 0 : index
    %c0_2 = arith.constant 0 : index
    %1 = vector.load %arg2[%c0_1, %c0_2] : memref<8x72xbf16, #tpu.memory_space<vmem>>, vector<8x72xbf16>
    %cst = arith.constant dense<0.000000e+00> : vector<8x128xf32>
    %2 = tpu.matmul %1, %0, %cst {dimension_numbers = #tpu.dot_dimension_numbers<[1], [0], [0], [1], [0, 0, 1, 1], [], []>} : vector<8x72xbf16>, vector<72x128xbf16>, vector<8x128xf32> -> vector<8x128xf32>
    %c0_3 = arith.constant 0 : index
    %c0_4 = arith.constant 0 : index
    %3 = vector.load %arg6[%c0_3, %c0_4] : memref<128x2xf32, #tpu.memory_space<vmem>>, vector<128x2xf32>
    %c0_5 = arith.constant 0 : index
    %c0_6 = arith.constant 0 : index
    %4 = vector.load %arg7[%c0_5, %c0_6] : memref<2x128xf32, #tpu.memory_space<vmem>>, vector<2x128xf32>
    %c0_7 = arith.constant 0 : index
    %c0_8 = arith.constant 0 : index
    %5 = vector.load %arg5[%c0_7, %c0_8] : memref<8x8xf32, #tpu.memory_space<vmem>>, vector<8x8xf32>
    %cst_9 = arith.constant dense<0.000000e+00> : vector<8x2xf32>
    %6 = tpu.matmul %2, %3, %cst_9 {dimension_numbers = #tpu.dot_dimension_numbers<[1], [0], [0], [1], [0, 0, 1, 1], [], []>} : vector<8x128xf32>, vector<128x2xf32>, vector<8x2xf32> -> vector<8x2xf32>
    %cst_10 = arith.constant dense<0.000000e+00> : vector<8x2xf32>
    %7 = tpu.matmul %5, %6, %cst_10 {dimension_numbers = #tpu.dot_dimension_numbers<[1], [0], [0], [1], [0, 0, 1, 1], [], []>} : vector<8x8xf32>, vector<8x2xf32>, vector<8x2xf32> -> vector<8x2xf32>
    %cst_11 = arith.constant 3.906250e-03 : f32
    %8 = vector.broadcast %cst_11 : f32 to vector<8x2xf32>
    %9 = arith.mulf %7, %8 : vector<8x2xf32>
    %cst_12 = arith.constant dense<0.000000e+00> : vector<8x128xf32>
    %10 = tpu.matmul %9, %4, %cst_12 {dimension_numbers = #tpu.dot_dimension_numbers<[1], [0], [0], [1], [0, 0, 1, 1], [], []>} : vector<8x2xf32>, vector<2x128xf32>, vector<8x128xf32> -> vector<8x128xf32>
    %11 = arith.subf %2, %10 : vector<8x128xf32>
    %12 = arith.mulf %11, %11 : vector<8x128xf32>
    %cst_13 = arith.constant dense<0.000000e+00> : vector<8x2xf32>
    %13 = tpu.matmul %12, %3, %cst_13 {dimension_numbers = #tpu.dot_dimension_numbers<[1], [0], [0], [1], [0, 0, 1, 1], [], []>} : vector<8x128xf32>, vector<128x2xf32>, vector<8x2xf32> -> vector<8x2xf32>
    %cst_14 = arith.constant dense<0.000000e+00> : vector<8x2xf32>
    %14 = tpu.matmul %5, %13, %cst_14 {dimension_numbers = #tpu.dot_dimension_numbers<[1], [0], [0], [1], [0, 0, 1, 1], [], []>} : vector<8x8xf32>, vector<8x2xf32>, vector<8x2xf32> -> vector<8x2xf32>
    %cst_15 = arith.constant 3.906250e-03 : f32
    %15 = vector.broadcast %cst_15 : f32 to vector<8x2xf32>
    %16 = arith.mulf %14, %15 : vector<8x2xf32>
    %cst_16 = arith.constant dense<0.000000e+00> : vector<8x128xf32>
    %17 = tpu.matmul %16, %4, %cst_16 {dimension_numbers = #tpu.dot_dimension_numbers<[1], [0], [0], [1], [0, 0, 1, 1], [], []>} : vector<8x2xf32>, vector<2x128xf32>, vector<8x128xf32> -> vector<8x128xf32>
    %cst_17 = arith.constant 9.99999974E-6 : f32
    %18 = vector.broadcast %cst_17 : f32 to vector<8x128xf32>
    %19 = arith.addf %17, %18 : vector<8x128xf32>
    %20 = math.rsqrt %19 : vector<8x128xf32>
    %21 = arith.mulf %11, %20 : vector<8x128xf32>
    %c0_18 = arith.constant 0 : index
    %c0_19 = arith.constant 0 : index
    %22 = vector.load %arg3[%c0_18, %c0_19] : memref<8x1xf32, #tpu.memory_space<vmem>>, vector<8x1xf32>
    %23 = vector.broadcast %22 : vector<8x1xf32> to vector<8x128xf32>
    %24 = arith.mulf %21, %23 : vector<8x128xf32>
    %c0_20 = arith.constant 0 : index
    %c0_21 = arith.constant 0 : index
    %25 = vector.load %arg4[%c0_20, %c0_21] : memref<8x1xf32, #tpu.memory_space<vmem>>, vector<8x1xf32>
    %26 = vector.broadcast %25 : vector<8x1xf32> to vector<8x128xf32>
    %27 = arith.addf %24, %26 : vector<8x128xf32>
    %cst_22 = arith.constant 0.000000e+00 : f32
    %28 = vector.broadcast %cst_22 : f32 to vector<8x128xf32>
    %29 = arith.cmpf ogt, %27, %28 : vector<8x128xf32>
    %cst_23 = arith.constant 0.000000e+00 : f32
    %30 = vector.broadcast %cst_23 : f32 to vector<8x128xf32>
    %31 = arith.minimumf %27, %30 : vector<8x128xf32>
    %32 = math.exp %31 : vector<8x128xf32>
    %cst_24 = arith.constant 1.000000e+00 : f32
    %33 = vector.broadcast %cst_24 : f32 to vector<8x128xf32>
    %34 = arith.subf %32, %33 : vector<8x128xf32>
    %35 = arith.select %29, %27, %34 : vector<8x128xi1>, vector<8x128xf32>
    %36 = vector.extract_strided_slice %0 {offsets = [32, 0], sizes = [8, 128], strides = [1, 1]} : vector<72x128xbf16> to vector<8x128xbf16>
    %37 = arith.extf %36 : vector<8x128xbf16> to vector<8x128xf32>
    %38 = arith.addf %35, %37 : vector<8x128xf32>
    %c0_25 = arith.constant 0 : index
    %c0_26 = arith.constant 0 : index
    %39 = vector.load %arg8[%c0_25, %c0_26] : memref<8x128xf32, #tpu.memory_space<vmem>>, vector<8x128xf32>
    tpu.vector_store %arg8[%c0_25, %c0_26], %38 {strides = array<i32>} : memref<8x128xf32, #tpu.memory_space<vmem>>, vector<8x128xf32>,
    return
  }
  func.func @transform_0(%arg0: i32) -> (i32, i32) {
    %c0_i32 = arith.constant 0 : i32
    %c0_i32_0 = arith.constant 0 : i32
    %c0_i32_1 = arith.constant 0 : i32
    return %c0_i32, %c0_i32_0 : i32, i32
  }
  func.func @transform_1(%arg0: i32) -> (i32, i32) {
    %c0_i32 = arith.constant 0 : i32
    %c0_i32_0 = arith.constant 0 : i32
    %c0_i32_1 = arith.constant 0 : i32
    return %c0_i32, %c0_i32_0 : i32, i32
  }
  func.func @transform_2(%arg0: i32) -> (i32, i32) {
    %c0_i32 = arith.constant 0 : i32
    %c0_i32_0 = arith.constant 0 : i32
    %c0_i32_1 = arith.constant 0 : i32
    return %c0_i32, %c0_i32_0 : i32, i32
  }
  func.func @transform_3(%arg0: i32) -> (i32, i32) {
    %c0_i32 = arith.constant 0 : i32
    %c0_i32_0 = arith.constant 0 : i32
    %c0_i32_1 = arith.constant 0 : i32
    return %c0_i32, %c0_i32_0 : i32, i32
  }
  func.func @transform_4(%arg0: i32) -> (i32, i32) {
    %c0_i32 = arith.constant 0 : i32
    %c0_i32_0 = arith.constant 0 : i32
    %c0_i32_1 = arith.constant 0 : i32
    return %c0_i32, %c0_i32_0 : i32, i32
  }
  func.func @transform_5(%arg0: i32) -> (i32, i32) {
    %c0_i32 = arith.constant 0 : i32
    %c0_i32_0 = arith.constant 0 : i32
    %c0_i32_1 = arith.constant 0 : i32
    return %c0_i32, %c0_i32_0 : i32, i32
  }
  func.func @transform_6(%arg0: i32) -> (i32, i32) {
    %c0_i32 = arith.constant 0 : i32
    %c0_i32_0 = arith.constant 0 : i32
    %c0_i32_1 = arith.constant 0 : i32
    return %c0_i32, %c0_i32_0 : i32, i32
  }
  func.func @transform_7(%arg0: i32) -> (i32, i32) {
    %c0_i32 = arith.constant 0 : i32
    %c0_i32_0 = arith.constant 0 : i32
    %c0_i32_1 = arith.constant 0 : i32
    return %c0_i32, %c0_i32_0 : i32, i32
  }
}

module attributes {stable_mosaic.version = 11 : i64} {
  func.func @_conv_gn_elu_kernel(%arg0: i32, %arg1: memref<72x32xbf16, #tpu.memory_space<vmem>>, %arg2: memref<16x72xbf16, #tpu.memory_space<vmem>>, %arg3: memref<16x1xf32, #tpu.memory_space<vmem>>, %arg4: memref<16x1xf32, #tpu.memory_space<vmem>>, %arg5: memref<16x16xf32, #tpu.memory_space<vmem>>, %arg6: memref<32x2xf32, #tpu.memory_space<vmem>>, %arg7: memref<2x32xf32, #tpu.memory_space<vmem>>, %arg8: memref<16x32xf32, #tpu.memory_space<vmem>>) attributes {dimension_semantics = [#tpu.dimension_semantics<arbitrary>], iteration_bounds = array<i64: 1>, scalar_prefetch = 0 : i64, scratch_operands = 0 : i64, tpu.core_type = #tpu.core_type<tc>, window_params = [{pipeline_mode = #tpu.pipeline_mode<synchronous>, transform_indices = @transform_0, window_bounds = array<i64: 72, 32>}, {pipeline_mode = #tpu.pipeline_mode<synchronous>, transform_indices = @transform_1, window_bounds = array<i64: 16, 72>}, {pipeline_mode = #tpu.pipeline_mode<synchronous>, transform_indices = @transform_2, window_bounds = array<i64: 16, 1>}, {pipeline_mode = #tpu.pipeline_mode<synchronous>, transform_indices = @transform_3, window_bounds = array<i64: 16, 1>}, {pipeline_mode = #tpu.pipeline_mode<synchronous>, transform_indices = @transform_4, window_bounds = array<i64: 16, 16>}, {pipeline_mode = #tpu.pipeline_mode<synchronous>, transform_indices = @transform_5, window_bounds = array<i64: 32, 2>}, {pipeline_mode = #tpu.pipeline_mode<synchronous>, transform_indices = @transform_6, window_bounds = array<i64: 2, 32>}, {pipeline_mode = #tpu.pipeline_mode<synchronous>, transform_indices = @transform_7, window_bounds = array<i64: 16, 32>}]} {
    %c0 = arith.constant 0 : index
    %c0_0 = arith.constant 0 : index
    %0 = vector.load %arg1[%c0, %c0_0] : memref<72x32xbf16, #tpu.memory_space<vmem>>, vector<72x32xbf16>
    %c0_1 = arith.constant 0 : index
    %c0_2 = arith.constant 0 : index
    %1 = vector.load %arg2[%c0_1, %c0_2] : memref<16x72xbf16, #tpu.memory_space<vmem>>, vector<16x72xbf16>
    %cst = arith.constant dense<0.000000e+00> : vector<16x32xf32>
    %2 = tpu.matmul %1, %0, %cst {dimension_numbers = #tpu.dot_dimension_numbers<[1], [0], [0], [1], [0, 0, 1, 1], [], []>} : vector<16x72xbf16>, vector<72x32xbf16>, vector<16x32xf32> -> vector<16x32xf32>
    %c0_3 = arith.constant 0 : index
    %c0_4 = arith.constant 0 : index
    %3 = vector.load %arg6[%c0_3, %c0_4] : memref<32x2xf32, #tpu.memory_space<vmem>>, vector<32x2xf32>
    %c0_5 = arith.constant 0 : index
    %c0_6 = arith.constant 0 : index
    %4 = vector.load %arg7[%c0_5, %c0_6] : memref<2x32xf32, #tpu.memory_space<vmem>>, vector<2x32xf32>
    %c0_7 = arith.constant 0 : index
    %c0_8 = arith.constant 0 : index
    %5 = vector.load %arg5[%c0_7, %c0_8] : memref<16x16xf32, #tpu.memory_space<vmem>>, vector<16x16xf32>
    %cst_9 = arith.constant dense<0.000000e+00> : vector<16x2xf32>
    %6 = tpu.matmul %2, %3, %cst_9 {dimension_numbers = #tpu.dot_dimension_numbers<[1], [0], [0], [1], [0, 0, 1, 1], [], []>} : vector<16x32xf32>, vector<32x2xf32>, vector<16x2xf32> -> vector<16x2xf32>
    %cst_10 = arith.constant dense<0.000000e+00> : vector<16x2xf32>
    %7 = tpu.matmul %5, %6, %cst_10 {dimension_numbers = #tpu.dot_dimension_numbers<[1], [0], [0], [1], [0, 0, 1, 1], [], []>} : vector<16x16xf32>, vector<16x2xf32>, vector<16x2xf32> -> vector<16x2xf32>
    %cst_11 = arith.constant 1.562500e-02 : f32
    %8 = vector.broadcast %cst_11 : f32 to vector<16x2xf32>
    %9 = arith.mulf %7, %8 : vector<16x2xf32>
    %cst_12 = arith.constant dense<0.000000e+00> : vector<16x32xf32>
    %10 = tpu.matmul %9, %4, %cst_12 {dimension_numbers = #tpu.dot_dimension_numbers<[1], [0], [0], [1], [0, 0, 1, 1], [], []>} : vector<16x2xf32>, vector<2x32xf32>, vector<16x32xf32> -> vector<16x32xf32>
    %11 = arith.subf %2, %10 : vector<16x32xf32>
    %12 = arith.mulf %11, %11 : vector<16x32xf32>
    %cst_13 = arith.constant dense<0.000000e+00> : vector<16x2xf32>
    %13 = tpu.matmul %12, %3, %cst_13 {dimension_numbers = #tpu.dot_dimension_numbers<[1], [0], [0], [1], [0, 0, 1, 1], [], []>} : vector<16x32xf32>, vector<32x2xf32>, vector<16x2xf32> -> vector<16x2xf32>
    %cst_14 = arith.constant dense<0.000000e+00> : vector<16x2xf32>
    %14 = tpu.matmul %5, %13, %cst_14 {dimension_numbers = #tpu.dot_dimension_numbers<[1], [0], [0], [1], [0, 0, 1, 1], [], []>} : vector<16x16xf32>, vector<16x2xf32>, vector<16x2xf32> -> vector<16x2xf32>
    %cst_15 = arith.constant 1.562500e-02 : f32
    %15 = vector.broadcast %cst_15 : f32 to vector<16x2xf32>
    %16 = arith.mulf %14, %15 : vector<16x2xf32>
    %cst_16 = arith.constant dense<0.000000e+00> : vector<16x32xf32>
    %17 = tpu.matmul %16, %4, %cst_16 {dimension_numbers = #tpu.dot_dimension_numbers<[1], [0], [0], [1], [0, 0, 1, 1], [], []>} : vector<16x2xf32>, vector<2x32xf32>, vector<16x32xf32> -> vector<16x32xf32>
    %cst_17 = arith.constant 9.99999974E-6 : f32
    %18 = vector.broadcast %cst_17 : f32 to vector<16x32xf32>
    %19 = arith.addf %17, %18 : vector<16x32xf32>
    %20 = math.rsqrt %19 : vector<16x32xf32>
    %21 = arith.mulf %11, %20 : vector<16x32xf32>
    %c0_18 = arith.constant 0 : index
    %c0_19 = arith.constant 0 : index
    %22 = vector.load %arg3[%c0_18, %c0_19] : memref<16x1xf32, #tpu.memory_space<vmem>>, vector<16x1xf32>
    %23 = vector.broadcast %22 : vector<16x1xf32> to vector<16x32xf32>
    %24 = arith.mulf %21, %23 : vector<16x32xf32>
    %c0_20 = arith.constant 0 : index
    %c0_21 = arith.constant 0 : index
    %25 = vector.load %arg4[%c0_20, %c0_21] : memref<16x1xf32, #tpu.memory_space<vmem>>, vector<16x1xf32>
    %26 = vector.broadcast %25 : vector<16x1xf32> to vector<16x32xf32>
    %27 = arith.addf %24, %26 : vector<16x32xf32>
    %cst_22 = arith.constant 0.000000e+00 : f32
    %28 = vector.broadcast %cst_22 : f32 to vector<16x32xf32>
    %29 = arith.cmpf ogt, %27, %28 : vector<16x32xf32>
    %cst_23 = arith.constant 0.000000e+00 : f32
    %30 = vector.broadcast %cst_23 : f32 to vector<16x32xf32>
    %31 = arith.minimumf %27, %30 : vector<16x32xf32>
    %32 = math.exp %31 : vector<16x32xf32>
    %cst_24 = arith.constant 1.000000e+00 : f32
    %33 = vector.broadcast %cst_24 : f32 to vector<16x32xf32>
    %34 = arith.subf %32, %33 : vector<16x32xf32>
    %35 = arith.select %29, %27, %34 : vector<16x32xi1>, vector<16x32xf32>
    %c0_25 = arith.constant 0 : index
    %c0_26 = arith.constant 0 : index
    %36 = vector.load %arg8[%c0_25, %c0_26] : memref<16x32xf32, #tpu.memory_space<vmem>>, vector<16x32xf32>
    tpu.vector_store %arg8[%c0_25, %c0_26], %35 {strides = array<i32>} : memref<16x32xf32, #tpu.memory_space<vmem>>, vector<16x32xf32>,
    return
  }
  func.func @transform_0(%arg0: i32) -> (i32, i32) {
    %c0_i32 = arith.constant 0 : i32
    %c0_i32_0 = arith.constant 0 : i32
    %c0_i32_1 = arith.constant 0 : i32
    return %c0_i32, %c0_i32_0 : i32, i32
  }
  func.func @transform_1(%arg0: i32) -> (i32, i32) {
    %c0_i32 = arith.constant 0 : i32
    %c0_i32_0 = arith.constant 0 : i32
    %c0_i32_1 = arith.constant 0 : i32
    return %c0_i32, %c0_i32_0 : i32, i32
  }
  func.func @transform_2(%arg0: i32) -> (i32, i32) {
    %c0_i32 = arith.constant 0 : i32
    %c0_i32_0 = arith.constant 0 : i32
    %c0_i32_1 = arith.constant 0 : i32
    return %c0_i32, %c0_i32_0 : i32, i32
  }
  func.func @transform_3(%arg0: i32) -> (i32, i32) {
    %c0_i32 = arith.constant 0 : i32
    %c0_i32_0 = arith.constant 0 : i32
    %c0_i32_1 = arith.constant 0 : i32
    return %c0_i32, %c0_i32_0 : i32, i32
  }
  func.func @transform_4(%arg0: i32) -> (i32, i32) {
    %c0_i32 = arith.constant 0 : i32
    %c0_i32_0 = arith.constant 0 : i32
    %c0_i32_1 = arith.constant 0 : i32
    return %c0_i32, %c0_i32_0 : i32, i32
  }
  func.func @transform_5(%arg0: i32) -> (i32, i32) {
    %c0_i32 = arith.constant 0 : i32
    %c0_i32_0 = arith.constant 0 : i32
    %c0_i32_1 = arith.constant 0 : i32
    return %c0_i32, %c0_i32_0 : i32, i32
  }
  func.func @transform_6(%arg0: i32) -> (i32, i32) {
    %c0_i32 = arith.constant 0 : i32
    %c0_i32_0 = arith.constant 0 : i32
    %c0_i32_1 = arith.constant 0 : i32
    return %c0_i32, %c0_i32_0 : i32, i32
  }
  func.func @transform_7(%arg0: i32) -> (i32, i32) {
    %c0_i32 = arith.constant 0 : i32
    %c0_i32_0 = arith.constant 0 : i32
    %c0_i32_1 = arith.constant 0 : i32
    return %c0_i32, %c0_i32_0 : i32, i32
  }
}

module attributes {stable_mosaic.version = 11 : i64} {
  func.func @_latent_kernel(%arg0: i32, %arg1: memref<2x256xf32, #tpu.memory_space<vmem>>, %arg2: memref<256x32xf32, #tpu.memory_space<vmem>>, %arg3: memref<1x32xf32, #tpu.memory_space<vmem>>, %arg4: memref<256x32xf32, #tpu.memory_space<vmem>>, %arg5: memref<1x32xf32, #tpu.memory_space<vmem>>, %arg6: memref<2x32xf32, #tpu.memory_space<vmem>>, %arg7: memref<32x256xf32, #tpu.memory_space<vmem>>, %arg8: memref<1x256xf32, #tpu.memory_space<vmem>>, %arg9: memref<2x32xf32, #tpu.memory_space<vmem>>, %arg10: memref<2x32xf32, #tpu.memory_space<vmem>>, %arg11: memref<2x256xf32, #tpu.memory_space<vmem>>) attributes {dimension_semantics = [#tpu.dimension_semantics<arbitrary>], iteration_bounds = array<i64: 1>, scalar_prefetch = 0 : i64, scratch_operands = 0 : i64, tpu.core_type = #tpu.core_type<tc>, window_params = [{pipeline_mode = #tpu.pipeline_mode<synchronous>, transform_indices = @transform_0, window_bounds = array<i64: 2, 256>}, {pipeline_mode = #tpu.pipeline_mode<synchronous>, transform_indices = @transform_1, window_bounds = array<i64: 256, 32>}, {pipeline_mode = #tpu.pipeline_mode<synchronous>, transform_indices = @transform_2, window_bounds = array<i64: 1, 32>}, {pipeline_mode = #tpu.pipeline_mode<synchronous>, transform_indices = @transform_3, window_bounds = array<i64: 256, 32>}, {pipeline_mode = #tpu.pipeline_mode<synchronous>, transform_indices = @transform_4, window_bounds = array<i64: 1, 32>}, {pipeline_mode = #tpu.pipeline_mode<synchronous>, transform_indices = @transform_5, window_bounds = array<i64: 2, 32>}, {pipeline_mode = #tpu.pipeline_mode<synchronous>, transform_indices = @transform_6, window_bounds = array<i64: 32, 256>}, {pipeline_mode = #tpu.pipeline_mode<synchronous>, transform_indices = @transform_7, window_bounds = array<i64: 1, 256>}, {pipeline_mode = #tpu.pipeline_mode<synchronous>, transform_indices = @transform_8, window_bounds = array<i64: 2, 32>}, {pipeline_mode = #tpu.pipeline_mode<synchronous>, transform_indices = @transform_9, window_bounds = array<i64: 2, 32>}, {pipeline_mode = #tpu.pipeline_mode<synchronous>, transform_indices = @transform_10, window_bounds = array<i64: 2, 256>}]} {
    %c0 = arith.constant 0 : index
    %c0_0 = arith.constant 0 : index
    %0 = vector.load %arg1[%c0, %c0_0] : memref<2x256xf32, #tpu.memory_space<vmem>>, vector<2x256xf32>
    %c0_1 = arith.constant 0 : index
    %c0_2 = arith.constant 0 : index
    %1 = vector.load %arg2[%c0_1, %c0_2] : memref<256x32xf32, #tpu.memory_space<vmem>>, vector<256x32xf32>
    %cst = arith.constant dense<0.000000e+00> : vector<2x32xf32>
    %2 = tpu.matmul %0, %1, %cst {dimension_numbers = #tpu.dot_dimension_numbers<[1], [0], [0], [1], [0, 0, 1, 1], [], []>} : vector<2x256xf32>, vector<256x32xf32>, vector<2x32xf32> -> vector<2x32xf32>
    %c0_3 = arith.constant 0 : index
    %c0_4 = arith.constant 0 : index
    %3 = vector.load %arg3[%c0_3, %c0_4] : memref<1x32xf32, #tpu.memory_space<vmem>>, vector<1x32xf32>
    %4 = vector.broadcast %3 : vector<1x32xf32> to vector<2x32xf32>
    %5 = arith.addf %2, %4 : vector<2x32xf32>
    %c0_5 = arith.constant 0 : index
    %c0_6 = arith.constant 0 : index
    %6 = vector.load %arg4[%c0_5, %c0_6] : memref<256x32xf32, #tpu.memory_space<vmem>>, vector<256x32xf32>
    %cst_7 = arith.constant dense<0.000000e+00> : vector<2x32xf32>
    %7 = tpu.matmul %0, %6, %cst_7 {dimension_numbers = #tpu.dot_dimension_numbers<[1], [0], [0], [1], [0, 0, 1, 1], [], []>} : vector<2x256xf32>, vector<256x32xf32>, vector<2x32xf32> -> vector<2x32xf32>
    %c0_8 = arith.constant 0 : index
    %c0_9 = arith.constant 0 : index
    %8 = vector.load %arg5[%c0_8, %c0_9] : memref<1x32xf32, #tpu.memory_space<vmem>>, vector<1x32xf32>
    %9 = vector.broadcast %8 : vector<1x32xf32> to vector<2x32xf32>
    %10 = arith.addf %7, %9 : vector<2x32xf32>
    %c0_10 = arith.constant 0 : index
    %c0_11 = arith.constant 0 : index
    %11 = vector.load %arg6[%c0_10, %c0_11] : memref<2x32xf32, #tpu.memory_space<vmem>>, vector<2x32xf32>
    %cst_12 = arith.constant 5.000000e-01 : f32
    %12 = vector.broadcast %cst_12 : f32 to vector<2x32xf32>
    %13 = arith.mulf %12, %10 : vector<2x32xf32>
    %14 = math.exp %13 : vector<2x32xf32>
    %15 = arith.mulf %11, %14 : vector<2x32xf32>
    %16 = arith.addf %15, %5 : vector<2x32xf32>
    %c0_13 = arith.constant 0 : index
    %c0_14 = arith.constant 0 : index
    %17 = vector.load %arg9[%c0_13, %c0_14] : memref<2x32xf32, #tpu.memory_space<vmem>>, vector<2x32xf32>
    tpu.vector_store %arg9[%c0_13, %c0_14], %5 {strides = array<i32>} : memref<2x32xf32, #tpu.memory_space<vmem>>, vector<2x32xf32>,
    %c0_15 = arith.constant 0 : index
    %c0_16 = arith.constant 0 : index
    %18 = vector.load %arg10[%c0_15, %c0_16] : memref<2x32xf32, #tpu.memory_space<vmem>>, vector<2x32xf32>
    tpu.vector_store %arg10[%c0_15, %c0_16], %10 {strides = array<i32>} : memref<2x32xf32, #tpu.memory_space<vmem>>, vector<2x32xf32>,
    %c0_17 = arith.constant 0 : index
    %c0_18 = arith.constant 0 : index
    %19 = vector.load %arg7[%c0_17, %c0_18] : memref<32x256xf32, #tpu.memory_space<vmem>>, vector<32x256xf32>
    %cst_19 = arith.constant dense<0.000000e+00> : vector<2x256xf32>
    %20 = tpu.matmul %16, %19, %cst_19 {dimension_numbers = #tpu.dot_dimension_numbers<[1], [0], [0], [1], [0, 0, 1, 1], [], []>} : vector<2x32xf32>, vector<32x256xf32>, vector<2x256xf32> -> vector<2x256xf32>
    %c0_20 = arith.constant 0 : index
    %c0_21 = arith.constant 0 : index
    %21 = vector.load %arg8[%c0_20, %c0_21] : memref<1x256xf32, #tpu.memory_space<vmem>>, vector<1x256xf32>
    %22 = vector.broadcast %21 : vector<1x256xf32> to vector<2x256xf32>
    %23 = arith.addf %20, %22 : vector<2x256xf32>
    %c0_22 = arith.constant 0 : index
    %c0_23 = arith.constant 0 : index
    %24 = vector.load %arg11[%c0_22, %c0_23] : memref<2x256xf32, #tpu.memory_space<vmem>>, vector<2x256xf32>
    tpu.vector_store %arg11[%c0_22, %c0_23], %23 {strides = array<i32>} : memref<2x256xf32, #tpu.memory_space<vmem>>, vector<2x256xf32>,
    return
  }
  func.func @transform_0(%arg0: i32) -> (i32, i32) {
    %c0_i32 = arith.constant 0 : i32
    %c0_i32_0 = arith.constant 0 : i32
    %c0_i32_1 = arith.constant 0 : i32
    return %c0_i32, %c0_i32_0 : i32, i32
  }
  func.func @transform_1(%arg0: i32) -> (i32, i32) {
    %c0_i32 = arith.constant 0 : i32
    %c0_i32_0 = arith.constant 0 : i32
    %c0_i32_1 = arith.constant 0 : i32
    return %c0_i32, %c0_i32_0 : i32, i32
  }
  func.func @transform_2(%arg0: i32) -> (i32, i32) {
    %c0_i32 = arith.constant 0 : i32
    %c0_i32_0 = arith.constant 0 : i32
    %c0_i32_1 = arith.constant 0 : i32
    return %c0_i32, %c0_i32_0 : i32, i32
  }
  func.func @transform_3(%arg0: i32) -> (i32, i32) {
    %c0_i32 = arith.constant 0 : i32
    %c0_i32_0 = arith.constant 0 : i32
    %c0_i32_1 = arith.constant 0 : i32
    return %c0_i32, %c0_i32_0 : i32, i32
  }
  func.func @transform_4(%arg0: i32) -> (i32, i32) {
    %c0_i32 = arith.constant 0 : i32
    %c0_i32_0 = arith.constant 0 : i32
    %c0_i32_1 = arith.constant 0 : i32
    return %c0_i32, %c0_i32_0 : i32, i32
  }
  func.func @transform_5(%arg0: i32) -> (i32, i32) {
    %c0_i32 = arith.constant 0 : i32
    %c0_i32_0 = arith.constant 0 : i32
    %c0_i32_1 = arith.constant 0 : i32
    return %c0_i32, %c0_i32_0 : i32, i32
  }
  func.func @transform_6(%arg0: i32) -> (i32, i32) {
    %c0_i32 = arith.constant 0 : i32
    %c0_i32_0 = arith.constant 0 : i32
    %c0_i32_1 = arith.constant 0 : i32
    return %c0_i32, %c0_i32_0 : i32, i32
  }
  func.func @transform_7(%arg0: i32) -> (i32, i32) {
    %c0_i32 = arith.constant 0 : i32
    %c0_i32_0 = arith.constant 0 : i32
    %c0_i32_1 = arith.constant 0 : i32
    return %c0_i32, %c0_i32_0 : i32, i32
  }
  func.func @transform_8(%arg0: i32) -> (i32, i32) {
    %c0_i32 = arith.constant 0 : i32
    %c0_i32_0 = arith.constant 0 : i32
    %c0_i32_1 = arith.constant 0 : i32
    return %c0_i32, %c0_i32_0 : i32, i32
  }
  func.func @transform_9(%arg0: i32) -> (i32, i32) {
    %c0_i32 = arith.constant 0 : i32
    %c0_i32_0 = arith.constant 0 : i32
    %c0_i32_1 = arith.constant 0 : i32
    return %c0_i32, %c0_i32_0 : i32, i32
  }
  func.func @transform_10(%arg0: i32) -> (i32, i32) {
    %c0_i32 = arith.constant 0 : i32
    %c0_i32_0 = arith.constant 0 : i32
    %c0_i32_1 = arith.constant 0 : i32
    return %c0_i32, %c0_i32_0 : i32, i32
  }
}

module attributes {stable_mosaic.version = 11 : i64} {
  func.func @_conv_gn_elu_kernel(%arg0: i32, %arg1: memref<144x32xbf16, #tpu.memory_space<vmem>>, %arg2: memref<16x144xbf16, #tpu.memory_space<vmem>>, %arg3: memref<16x1xf32, #tpu.memory_space<vmem>>, %arg4: memref<16x1xf32, #tpu.memory_space<vmem>>, %arg5: memref<16x16xf32, #tpu.memory_space<vmem>>, %arg6: memref<32x2xf32, #tpu.memory_space<vmem>>, %arg7: memref<2x32xf32, #tpu.memory_space<vmem>>, %arg8: memref<16x32xf32, #tpu.memory_space<vmem>>) attributes {dimension_semantics = [#tpu.dimension_semantics<arbitrary>], iteration_bounds = array<i64: 1>, scalar_prefetch = 0 : i64, scratch_operands = 0 : i64, tpu.core_type = #tpu.core_type<tc>, window_params = [{pipeline_mode = #tpu.pipeline_mode<synchronous>, transform_indices = @transform_0, window_bounds = array<i64: 144, 32>}, {pipeline_mode = #tpu.pipeline_mode<synchronous>, transform_indices = @transform_1, window_bounds = array<i64: 16, 144>}, {pipeline_mode = #tpu.pipeline_mode<synchronous>, transform_indices = @transform_2, window_bounds = array<i64: 16, 1>}, {pipeline_mode = #tpu.pipeline_mode<synchronous>, transform_indices = @transform_3, window_bounds = array<i64: 16, 1>}, {pipeline_mode = #tpu.pipeline_mode<synchronous>, transform_indices = @transform_4, window_bounds = array<i64: 16, 16>}, {pipeline_mode = #tpu.pipeline_mode<synchronous>, transform_indices = @transform_5, window_bounds = array<i64: 32, 2>}, {pipeline_mode = #tpu.pipeline_mode<synchronous>, transform_indices = @transform_6, window_bounds = array<i64: 2, 32>}, {pipeline_mode = #tpu.pipeline_mode<synchronous>, transform_indices = @transform_7, window_bounds = array<i64: 16, 32>}]} {
    %c0 = arith.constant 0 : index
    %c0_0 = arith.constant 0 : index
    %0 = vector.load %arg1[%c0, %c0_0] : memref<144x32xbf16, #tpu.memory_space<vmem>>, vector<144x32xbf16>
    %c0_1 = arith.constant 0 : index
    %c0_2 = arith.constant 0 : index
    %1 = vector.load %arg2[%c0_1, %c0_2] : memref<16x144xbf16, #tpu.memory_space<vmem>>, vector<16x144xbf16>
    %cst = arith.constant dense<0.000000e+00> : vector<16x32xf32>
    %2 = tpu.matmul %1, %0, %cst {dimension_numbers = #tpu.dot_dimension_numbers<[1], [0], [0], [1], [0, 0, 1, 1], [], []>} : vector<16x144xbf16>, vector<144x32xbf16>, vector<16x32xf32> -> vector<16x32xf32>
    %c0_3 = arith.constant 0 : index
    %c0_4 = arith.constant 0 : index
    %3 = vector.load %arg6[%c0_3, %c0_4] : memref<32x2xf32, #tpu.memory_space<vmem>>, vector<32x2xf32>
    %c0_5 = arith.constant 0 : index
    %c0_6 = arith.constant 0 : index
    %4 = vector.load %arg7[%c0_5, %c0_6] : memref<2x32xf32, #tpu.memory_space<vmem>>, vector<2x32xf32>
    %c0_7 = arith.constant 0 : index
    %c0_8 = arith.constant 0 : index
    %5 = vector.load %arg5[%c0_7, %c0_8] : memref<16x16xf32, #tpu.memory_space<vmem>>, vector<16x16xf32>
    %cst_9 = arith.constant dense<0.000000e+00> : vector<16x2xf32>
    %6 = tpu.matmul %2, %3, %cst_9 {dimension_numbers = #tpu.dot_dimension_numbers<[1], [0], [0], [1], [0, 0, 1, 1], [], []>} : vector<16x32xf32>, vector<32x2xf32>, vector<16x2xf32> -> vector<16x2xf32>
    %cst_10 = arith.constant dense<0.000000e+00> : vector<16x2xf32>
    %7 = tpu.matmul %5, %6, %cst_10 {dimension_numbers = #tpu.dot_dimension_numbers<[1], [0], [0], [1], [0, 0, 1, 1], [], []>} : vector<16x16xf32>, vector<16x2xf32>, vector<16x2xf32> -> vector<16x2xf32>
    %cst_11 = arith.constant 1.562500e-02 : f32
    %8 = vector.broadcast %cst_11 : f32 to vector<16x2xf32>
    %9 = arith.mulf %7, %8 : vector<16x2xf32>
    %cst_12 = arith.constant dense<0.000000e+00> : vector<16x32xf32>
    %10 = tpu.matmul %9, %4, %cst_12 {dimension_numbers = #tpu.dot_dimension_numbers<[1], [0], [0], [1], [0, 0, 1, 1], [], []>} : vector<16x2xf32>, vector<2x32xf32>, vector<16x32xf32> -> vector<16x32xf32>
    %11 = arith.subf %2, %10 : vector<16x32xf32>
    %12 = arith.mulf %11, %11 : vector<16x32xf32>
    %cst_13 = arith.constant dense<0.000000e+00> : vector<16x2xf32>
    %13 = tpu.matmul %12, %3, %cst_13 {dimension_numbers = #tpu.dot_dimension_numbers<[1], [0], [0], [1], [0, 0, 1, 1], [], []>} : vector<16x32xf32>, vector<32x2xf32>, vector<16x2xf32> -> vector<16x2xf32>
    %cst_14 = arith.constant dense<0.000000e+00> : vector<16x2xf32>
    %14 = tpu.matmul %5, %13, %cst_14 {dimension_numbers = #tpu.dot_dimension_numbers<[1], [0], [0], [1], [0, 0, 1, 1], [], []>} : vector<16x16xf32>, vector<16x2xf32>, vector<16x2xf32> -> vector<16x2xf32>
    %cst_15 = arith.constant 1.562500e-02 : f32
    %15 = vector.broadcast %cst_15 : f32 to vector<16x2xf32>
    %16 = arith.mulf %14, %15 : vector<16x2xf32>
    %cst_16 = arith.constant dense<0.000000e+00> : vector<16x32xf32>
    %17 = tpu.matmul %16, %4, %cst_16 {dimension_numbers = #tpu.dot_dimension_numbers<[1], [0], [0], [1], [0, 0, 1, 1], [], []>} : vector<16x2xf32>, vector<2x32xf32>, vector<16x32xf32> -> vector<16x32xf32>
    %cst_17 = arith.constant 9.99999974E-6 : f32
    %18 = vector.broadcast %cst_17 : f32 to vector<16x32xf32>
    %19 = arith.addf %17, %18 : vector<16x32xf32>
    %20 = math.rsqrt %19 : vector<16x32xf32>
    %21 = arith.mulf %11, %20 : vector<16x32xf32>
    %c0_18 = arith.constant 0 : index
    %c0_19 = arith.constant 0 : index
    %22 = vector.load %arg3[%c0_18, %c0_19] : memref<16x1xf32, #tpu.memory_space<vmem>>, vector<16x1xf32>
    %23 = vector.broadcast %22 : vector<16x1xf32> to vector<16x32xf32>
    %24 = arith.mulf %21, %23 : vector<16x32xf32>
    %c0_20 = arith.constant 0 : index
    %c0_21 = arith.constant 0 : index
    %25 = vector.load %arg4[%c0_20, %c0_21] : memref<16x1xf32, #tpu.memory_space<vmem>>, vector<16x1xf32>
    %26 = vector.broadcast %25 : vector<16x1xf32> to vector<16x32xf32>
    %27 = arith.addf %24, %26 : vector<16x32xf32>
    %cst_22 = arith.constant 0.000000e+00 : f32
    %28 = vector.broadcast %cst_22 : f32 to vector<16x32xf32>
    %29 = arith.cmpf ogt, %27, %28 : vector<16x32xf32>
    %cst_23 = arith.constant 0.000000e+00 : f32
    %30 = vector.broadcast %cst_23 : f32 to vector<16x32xf32>
    %31 = arith.minimumf %27, %30 : vector<16x32xf32>
    %32 = math.exp %31 : vector<16x32xf32>
    %cst_24 = arith.constant 1.000000e+00 : f32
    %33 = vector.broadcast %cst_24 : f32 to vector<16x32xf32>
    %34 = arith.subf %32, %33 : vector<16x32xf32>
    %35 = arith.select %29, %27, %34 : vector<16x32xi1>, vector<16x32xf32>
    %36 = vector.extract_strided_slice %0 {offsets = [64, 0], sizes = [16, 32], strides = [1, 1]} : vector<144x32xbf16> to vector<16x32xbf16>
    %37 = arith.extf %36 : vector<16x32xbf16> to vector<16x32xf32>
    %38 = arith.addf %35, %37 : vector<16x32xf32>
    %c0_25 = arith.constant 0 : index
    %c0_26 = arith.constant 0 : index
    %39 = vector.load %arg8[%c0_25, %c0_26] : memref<16x32xf32, #tpu.memory_space<vmem>>, vector<16x32xf32>
    tpu.vector_store %arg8[%c0_25, %c0_26], %38 {strides = array<i32>} : memref<16x32xf32, #tpu.memory_space<vmem>>, vector<16x32xf32>,
    return
  }
  func.func @transform_0(%arg0: i32) -> (i32, i32) {
    %c0_i32 = arith.constant 0 : i32
    %c0_i32_0 = arith.constant 0 : i32
    %c0_i32_1 = arith.constant 0 : i32
    return %c0_i32, %c0_i32_0 : i32, i32
  }
  func.func @transform_1(%arg0: i32) -> (i32, i32) {
    %c0_i32 = arith.constant 0 : i32
    %c0_i32_0 = arith.constant 0 : i32
    %c0_i32_1 = arith.constant 0 : i32
    return %c0_i32, %c0_i32_0 : i32, i32
  }
  func.func @transform_2(%arg0: i32) -> (i32, i32) {
    %c0_i32 = arith.constant 0 : i32
    %c0_i32_0 = arith.constant 0 : i32
    %c0_i32_1 = arith.constant 0 : i32
    return %c0_i32, %c0_i32_0 : i32, i32
  }
  func.func @transform_3(%arg0: i32) -> (i32, i32) {
    %c0_i32 = arith.constant 0 : i32
    %c0_i32_0 = arith.constant 0 : i32
    %c0_i32_1 = arith.constant 0 : i32
    return %c0_i32, %c0_i32_0 : i32, i32
  }
  func.func @transform_4(%arg0: i32) -> (i32, i32) {
    %c0_i32 = arith.constant 0 : i32
    %c0_i32_0 = arith.constant 0 : i32
    %c0_i32_1 = arith.constant 0 : i32
    return %c0_i32, %c0_i32_0 : i32, i32
  }
  func.func @transform_5(%arg0: i32) -> (i32, i32) {
    %c0_i32 = arith.constant 0 : i32
    %c0_i32_0 = arith.constant 0 : i32
    %c0_i32_1 = arith.constant 0 : i32
    return %c0_i32, %c0_i32_0 : i32, i32
  }
  func.func @transform_6(%arg0: i32) -> (i32, i32) {
    %c0_i32 = arith.constant 0 : i32
    %c0_i32_0 = arith.constant 0 : i32
    %c0_i32_1 = arith.constant 0 : i32
    return %c0_i32, %c0_i32_0 : i32, i32
  }
  func.func @transform_7(%arg0: i32) -> (i32, i32) {
    %c0_i32 = arith.constant 0 : i32
    %c0_i32_0 = arith.constant 0 : i32
    %c0_i32_1 = arith.constant 0 : i32
    return %c0_i32, %c0_i32_0 : i32, i32
  }
}

module attributes {stable_mosaic.version = 11 : i64} {
  func.func @_conv_gn_elu_kernel(%arg0: i32, %arg1: memref<144x128xbf16, #tpu.memory_space<vmem>>, %arg2: memref<8x144xbf16, #tpu.memory_space<vmem>>, %arg3: memref<8x1xf32, #tpu.memory_space<vmem>>, %arg4: memref<8x1xf32, #tpu.memory_space<vmem>>, %arg5: memref<8x8xf32, #tpu.memory_space<vmem>>, %arg6: memref<128x2xf32, #tpu.memory_space<vmem>>, %arg7: memref<2x128xf32, #tpu.memory_space<vmem>>, %arg8: memref<8x128xf32, #tpu.memory_space<vmem>>) attributes {dimension_semantics = [#tpu.dimension_semantics<arbitrary>], iteration_bounds = array<i64: 1>, scalar_prefetch = 0 : i64, scratch_operands = 0 : i64, tpu.core_type = #tpu.core_type<tc>, window_params = [{pipeline_mode = #tpu.pipeline_mode<synchronous>, transform_indices = @transform_0, window_bounds = array<i64: 144, 128>}, {pipeline_mode = #tpu.pipeline_mode<synchronous>, transform_indices = @transform_1, window_bounds = array<i64: 8, 144>}, {pipeline_mode = #tpu.pipeline_mode<synchronous>, transform_indices = @transform_2, window_bounds = array<i64: 8, 1>}, {pipeline_mode = #tpu.pipeline_mode<synchronous>, transform_indices = @transform_3, window_bounds = array<i64: 8, 1>}, {pipeline_mode = #tpu.pipeline_mode<synchronous>, transform_indices = @transform_4, window_bounds = array<i64: 8, 8>}, {pipeline_mode = #tpu.pipeline_mode<synchronous>, transform_indices = @transform_5, window_bounds = array<i64: 128, 2>}, {pipeline_mode = #tpu.pipeline_mode<synchronous>, transform_indices = @transform_6, window_bounds = array<i64: 2, 128>}, {pipeline_mode = #tpu.pipeline_mode<synchronous>, transform_indices = @transform_7, window_bounds = array<i64: 8, 128>}]} {
    %c0 = arith.constant 0 : index
    %c0_0 = arith.constant 0 : index
    %0 = vector.load %arg1[%c0, %c0_0] : memref<144x128xbf16, #tpu.memory_space<vmem>>, vector<144x128xbf16>
    %c0_1 = arith.constant 0 : index
    %c0_2 = arith.constant 0 : index
    %1 = vector.load %arg2[%c0_1, %c0_2] : memref<8x144xbf16, #tpu.memory_space<vmem>>, vector<8x144xbf16>
    %cst = arith.constant dense<0.000000e+00> : vector<8x128xf32>
    %2 = tpu.matmul %1, %0, %cst {dimension_numbers = #tpu.dot_dimension_numbers<[1], [0], [0], [1], [0, 0, 1, 1], [], []>} : vector<8x144xbf16>, vector<144x128xbf16>, vector<8x128xf32> -> vector<8x128xf32>
    %c0_3 = arith.constant 0 : index
    %c0_4 = arith.constant 0 : index
    %3 = vector.load %arg6[%c0_3, %c0_4] : memref<128x2xf32, #tpu.memory_space<vmem>>, vector<128x2xf32>
    %c0_5 = arith.constant 0 : index
    %c0_6 = arith.constant 0 : index
    %4 = vector.load %arg7[%c0_5, %c0_6] : memref<2x128xf32, #tpu.memory_space<vmem>>, vector<2x128xf32>
    %c0_7 = arith.constant 0 : index
    %c0_8 = arith.constant 0 : index
    %5 = vector.load %arg5[%c0_7, %c0_8] : memref<8x8xf32, #tpu.memory_space<vmem>>, vector<8x8xf32>
    %cst_9 = arith.constant dense<0.000000e+00> : vector<8x2xf32>
    %6 = tpu.matmul %2, %3, %cst_9 {dimension_numbers = #tpu.dot_dimension_numbers<[1], [0], [0], [1], [0, 0, 1, 1], [], []>} : vector<8x128xf32>, vector<128x2xf32>, vector<8x2xf32> -> vector<8x2xf32>
    %cst_10 = arith.constant dense<0.000000e+00> : vector<8x2xf32>
    %7 = tpu.matmul %5, %6, %cst_10 {dimension_numbers = #tpu.dot_dimension_numbers<[1], [0], [0], [1], [0, 0, 1, 1], [], []>} : vector<8x8xf32>, vector<8x2xf32>, vector<8x2xf32> -> vector<8x2xf32>
    %cst_11 = arith.constant 3.906250e-03 : f32
    %8 = vector.broadcast %cst_11 : f32 to vector<8x2xf32>
    %9 = arith.mulf %7, %8 : vector<8x2xf32>
    %cst_12 = arith.constant dense<0.000000e+00> : vector<8x128xf32>
    %10 = tpu.matmul %9, %4, %cst_12 {dimension_numbers = #tpu.dot_dimension_numbers<[1], [0], [0], [1], [0, 0, 1, 1], [], []>} : vector<8x2xf32>, vector<2x128xf32>, vector<8x128xf32> -> vector<8x128xf32>
    %11 = arith.subf %2, %10 : vector<8x128xf32>
    %12 = arith.mulf %11, %11 : vector<8x128xf32>
    %cst_13 = arith.constant dense<0.000000e+00> : vector<8x2xf32>
    %13 = tpu.matmul %12, %3, %cst_13 {dimension_numbers = #tpu.dot_dimension_numbers<[1], [0], [0], [1], [0, 0, 1, 1], [], []>} : vector<8x128xf32>, vector<128x2xf32>, vector<8x2xf32> -> vector<8x2xf32>
    %cst_14 = arith.constant dense<0.000000e+00> : vector<8x2xf32>
    %14 = tpu.matmul %5, %13, %cst_14 {dimension_numbers = #tpu.dot_dimension_numbers<[1], [0], [0], [1], [0, 0, 1, 1], [], []>} : vector<8x8xf32>, vector<8x2xf32>, vector<8x2xf32> -> vector<8x2xf32>
    %cst_15 = arith.constant 3.906250e-03 : f32
    %15 = vector.broadcast %cst_15 : f32 to vector<8x2xf32>
    %16 = arith.mulf %14, %15 : vector<8x2xf32>
    %cst_16 = arith.constant dense<0.000000e+00> : vector<8x128xf32>
    %17 = tpu.matmul %16, %4, %cst_16 {dimension_numbers = #tpu.dot_dimension_numbers<[1], [0], [0], [1], [0, 0, 1, 1], [], []>} : vector<8x2xf32>, vector<2x128xf32>, vector<8x128xf32> -> vector<8x128xf32>
    %cst_17 = arith.constant 9.99999974E-6 : f32
    %18 = vector.broadcast %cst_17 : f32 to vector<8x128xf32>
    %19 = arith.addf %17, %18 : vector<8x128xf32>
    %20 = math.rsqrt %19 : vector<8x128xf32>
    %21 = arith.mulf %11, %20 : vector<8x128xf32>
    %c0_18 = arith.constant 0 : index
    %c0_19 = arith.constant 0 : index
    %22 = vector.load %arg3[%c0_18, %c0_19] : memref<8x1xf32, #tpu.memory_space<vmem>>, vector<8x1xf32>
    %23 = vector.broadcast %22 : vector<8x1xf32> to vector<8x128xf32>
    %24 = arith.mulf %21, %23 : vector<8x128xf32>
    %c0_20 = arith.constant 0 : index
    %c0_21 = arith.constant 0 : index
    %25 = vector.load %arg4[%c0_20, %c0_21] : memref<8x1xf32, #tpu.memory_space<vmem>>, vector<8x1xf32>
    %26 = vector.broadcast %25 : vector<8x1xf32> to vector<8x128xf32>
    %27 = arith.addf %24, %26 : vector<8x128xf32>
    %cst_22 = arith.constant 0.000000e+00 : f32
    %28 = vector.broadcast %cst_22 : f32 to vector<8x128xf32>
    %29 = arith.cmpf ogt, %27, %28 : vector<8x128xf32>
    %cst_23 = arith.constant 0.000000e+00 : f32
    %30 = vector.broadcast %cst_23 : f32 to vector<8x128xf32>
    %31 = arith.minimumf %27, %30 : vector<8x128xf32>
    %32 = math.exp %31 : vector<8x128xf32>
    %cst_24 = arith.constant 1.000000e+00 : f32
    %33 = vector.broadcast %cst_24 : f32 to vector<8x128xf32>
    %34 = arith.subf %32, %33 : vector<8x128xf32>
    %35 = arith.select %29, %27, %34 : vector<8x128xi1>, vector<8x128xf32>
    %c0_25 = arith.constant 0 : index
    %c0_26 = arith.constant 0 : index
    %36 = vector.load %arg8[%c0_25, %c0_26] : memref<8x128xf32, #tpu.memory_space<vmem>>, vector<8x128xf32>
    tpu.vector_store %arg8[%c0_25, %c0_26], %35 {strides = array<i32>} : memref<8x128xf32, #tpu.memory_space<vmem>>, vector<8x128xf32>,
    return
  }
  func.func @transform_0(%arg0: i32) -> (i32, i32) {
    %c0_i32 = arith.constant 0 : i32
    %c0_i32_0 = arith.constant 0 : i32
    %c0_i32_1 = arith.constant 0 : i32
    return %c0_i32, %c0_i32_0 : i32, i32
  }
  func.func @transform_1(%arg0: i32) -> (i32, i32) {
    %c0_i32 = arith.constant 0 : i32
    %c0_i32_0 = arith.constant 0 : i32
    %c0_i32_1 = arith.constant 0 : i32
    return %c0_i32, %c0_i32_0 : i32, i32
  }
  func.func @transform_2(%arg0: i32) -> (i32, i32) {
    %c0_i32 = arith.constant 0 : i32
    %c0_i32_0 = arith.constant 0 : i32
    %c0_i32_1 = arith.constant 0 : i32
    return %c0_i32, %c0_i32_0 : i32, i32
  }
  func.func @transform_3(%arg0: i32) -> (i32, i32) {
    %c0_i32 = arith.constant 0 : i32
    %c0_i32_0 = arith.constant 0 : i32
    %c0_i32_1 = arith.constant 0 : i32
    return %c0_i32, %c0_i32_0 : i32, i32
  }
  func.func @transform_4(%arg0: i32) -> (i32, i32) {
    %c0_i32 = arith.constant 0 : i32
    %c0_i32_0 = arith.constant 0 : i32
    %c0_i32_1 = arith.constant 0 : i32
    return %c0_i32, %c0_i32_0 : i32, i32
  }
  func.func @transform_5(%arg0: i32) -> (i32, i32) {
    %c0_i32 = arith.constant 0 : i32
    %c0_i32_0 = arith.constant 0 : i32
    %c0_i32_1 = arith.constant 0 : i32
    return %c0_i32, %c0_i32_0 : i32, i32
  }
  func.func @transform_6(%arg0: i32) -> (i32, i32) {
    %c0_i32 = arith.constant 0 : i32
    %c0_i32_0 = arith.constant 0 : i32
    %c0_i32_1 = arith.constant 0 : i32
    return %c0_i32, %c0_i32_0 : i32, i32
  }
  func.func @transform_7(%arg0: i32) -> (i32, i32) {
    %c0_i32 = arith.constant 0 : i32
    %c0_i32_0 = arith.constant 0 : i32
    %c0_i32_1 = arith.constant 0 : i32
    return %c0_i32, %c0_i32_0 : i32, i32
  }
}

module attributes {stable_mosaic.version = 11 : i64} {
  func.func @_conv_gn_elu_kernel(%arg0: i32, %arg1: memref<72x512xbf16, #tpu.memory_space<vmem>>, %arg2: memref<8x72xbf16, #tpu.memory_space<vmem>>, %arg3: memref<8x1xf32, #tpu.memory_space<vmem>>, %arg4: memref<8x1xf32, #tpu.memory_space<vmem>>, %arg5: memref<8x8xf32, #tpu.memory_space<vmem>>, %arg6: memref<512x2xf32, #tpu.memory_space<vmem>>, %arg7: memref<2x512xf32, #tpu.memory_space<vmem>>, %arg8: memref<8x512xf32, #tpu.memory_space<vmem>>) attributes {dimension_semantics = [#tpu.dimension_semantics<arbitrary>], iteration_bounds = array<i64: 1>, scalar_prefetch = 0 : i64, scratch_operands = 0 : i64, tpu.core_type = #tpu.core_type<tc>, window_params = [{pipeline_mode = #tpu.pipeline_mode<synchronous>, transform_indices = @transform_0, window_bounds = array<i64: 72, 512>}, {pipeline_mode = #tpu.pipeline_mode<synchronous>, transform_indices = @transform_1, window_bounds = array<i64: 8, 72>}, {pipeline_mode = #tpu.pipeline_mode<synchronous>, transform_indices = @transform_2, window_bounds = array<i64: 8, 1>}, {pipeline_mode = #tpu.pipeline_mode<synchronous>, transform_indices = @transform_3, window_bounds = array<i64: 8, 1>}, {pipeline_mode = #tpu.pipeline_mode<synchronous>, transform_indices = @transform_4, window_bounds = array<i64: 8, 8>}, {pipeline_mode = #tpu.pipeline_mode<synchronous>, transform_indices = @transform_5, window_bounds = array<i64: 512, 2>}, {pipeline_mode = #tpu.pipeline_mode<synchronous>, transform_indices = @transform_6, window_bounds = array<i64: 2, 512>}, {pipeline_mode = #tpu.pipeline_mode<synchronous>, transform_indices = @transform_7, window_bounds = array<i64: 8, 512>}]} {
    %c0 = arith.constant 0 : index
    %c0_0 = arith.constant 0 : index
    %0 = vector.load %arg1[%c0, %c0_0] : memref<72x512xbf16, #tpu.memory_space<vmem>>, vector<72x512xbf16>
    %c0_1 = arith.constant 0 : index
    %c0_2 = arith.constant 0 : index
    %1 = vector.load %arg2[%c0_1, %c0_2] : memref<8x72xbf16, #tpu.memory_space<vmem>>, vector<8x72xbf16>
    %cst = arith.constant dense<0.000000e+00> : vector<8x512xf32>
    %2 = tpu.matmul %1, %0, %cst {dimension_numbers = #tpu.dot_dimension_numbers<[1], [0], [0], [1], [0, 0, 1, 1], [], []>} : vector<8x72xbf16>, vector<72x512xbf16>, vector<8x512xf32> -> vector<8x512xf32>
    %c0_3 = arith.constant 0 : index
    %c0_4 = arith.constant 0 : index
    %3 = vector.load %arg6[%c0_3, %c0_4] : memref<512x2xf32, #tpu.memory_space<vmem>>, vector<512x2xf32>
    %c0_5 = arith.constant 0 : index
    %c0_6 = arith.constant 0 : index
    %4 = vector.load %arg7[%c0_5, %c0_6] : memref<2x512xf32, #tpu.memory_space<vmem>>, vector<2x512xf32>
    %c0_7 = arith.constant 0 : index
    %c0_8 = arith.constant 0 : index
    %5 = vector.load %arg5[%c0_7, %c0_8] : memref<8x8xf32, #tpu.memory_space<vmem>>, vector<8x8xf32>
    %cst_9 = arith.constant dense<0.000000e+00> : vector<8x2xf32>
    %6 = tpu.matmul %2, %3, %cst_9 {dimension_numbers = #tpu.dot_dimension_numbers<[1], [0], [0], [1], [0, 0, 1, 1], [], []>} : vector<8x512xf32>, vector<512x2xf32>, vector<8x2xf32> -> vector<8x2xf32>
    %cst_10 = arith.constant dense<0.000000e+00> : vector<8x2xf32>
    %7 = tpu.matmul %5, %6, %cst_10 {dimension_numbers = #tpu.dot_dimension_numbers<[1], [0], [0], [1], [0, 0, 1, 1], [], []>} : vector<8x8xf32>, vector<8x2xf32>, vector<8x2xf32> -> vector<8x2xf32>
    %cst_11 = arith.constant 9.765625E-4 : f32
    %8 = vector.broadcast %cst_11 : f32 to vector<8x2xf32>
    %9 = arith.mulf %7, %8 : vector<8x2xf32>
    %cst_12 = arith.constant dense<0.000000e+00> : vector<8x512xf32>
    %10 = tpu.matmul %9, %4, %cst_12 {dimension_numbers = #tpu.dot_dimension_numbers<[1], [0], [0], [1], [0, 0, 1, 1], [], []>} : vector<8x2xf32>, vector<2x512xf32>, vector<8x512xf32> -> vector<8x512xf32>
    %11 = arith.subf %2, %10 : vector<8x512xf32>
    %12 = arith.mulf %11, %11 : vector<8x512xf32>
    %cst_13 = arith.constant dense<0.000000e+00> : vector<8x2xf32>
    %13 = tpu.matmul %12, %3, %cst_13 {dimension_numbers = #tpu.dot_dimension_numbers<[1], [0], [0], [1], [0, 0, 1, 1], [], []>} : vector<8x512xf32>, vector<512x2xf32>, vector<8x2xf32> -> vector<8x2xf32>
    %cst_14 = arith.constant dense<0.000000e+00> : vector<8x2xf32>
    %14 = tpu.matmul %5, %13, %cst_14 {dimension_numbers = #tpu.dot_dimension_numbers<[1], [0], [0], [1], [0, 0, 1, 1], [], []>} : vector<8x8xf32>, vector<8x2xf32>, vector<8x2xf32> -> vector<8x2xf32>
    %cst_15 = arith.constant 9.765625E-4 : f32
    %15 = vector.broadcast %cst_15 : f32 to vector<8x2xf32>
    %16 = arith.mulf %14, %15 : vector<8x2xf32>
    %cst_16 = arith.constant dense<0.000000e+00> : vector<8x512xf32>
    %17 = tpu.matmul %16, %4, %cst_16 {dimension_numbers = #tpu.dot_dimension_numbers<[1], [0], [0], [1], [0, 0, 1, 1], [], []>} : vector<8x2xf32>, vector<2x512xf32>, vector<8x512xf32> -> vector<8x512xf32>
    %cst_17 = arith.constant 9.99999974E-6 : f32
    %18 = vector.broadcast %cst_17 : f32 to vector<8x512xf32>
    %19 = arith.addf %17, %18 : vector<8x512xf32>
    %20 = math.rsqrt %19 : vector<8x512xf32>
    %21 = arith.mulf %11, %20 : vector<8x512xf32>
    %c0_18 = arith.constant 0 : index
    %c0_19 = arith.constant 0 : index
    %22 = vector.load %arg3[%c0_18, %c0_19] : memref<8x1xf32, #tpu.memory_space<vmem>>, vector<8x1xf32>
    %23 = vector.broadcast %22 : vector<8x1xf32> to vector<8x512xf32>
    %24 = arith.mulf %21, %23 : vector<8x512xf32>
    %c0_20 = arith.constant 0 : index
    %c0_21 = arith.constant 0 : index
    %25 = vector.load %arg4[%c0_20, %c0_21] : memref<8x1xf32, #tpu.memory_space<vmem>>, vector<8x1xf32>
    %26 = vector.broadcast %25 : vector<8x1xf32> to vector<8x512xf32>
    %27 = arith.addf %24, %26 : vector<8x512xf32>
    %cst_22 = arith.constant 0.000000e+00 : f32
    %28 = vector.broadcast %cst_22 : f32 to vector<8x512xf32>
    %29 = arith.cmpf ogt, %27, %28 : vector<8x512xf32>
    %cst_23 = arith.constant 0.000000e+00 : f32
    %30 = vector.broadcast %cst_23 : f32 to vector<8x512xf32>
    %31 = arith.minimumf %27, %30 : vector<8x512xf32>
    %32 = math.exp %31 : vector<8x512xf32>
    %cst_24 = arith.constant 1.000000e+00 : f32
    %33 = vector.broadcast %cst_24 : f32 to vector<8x512xf32>
    %34 = arith.subf %32, %33 : vector<8x512xf32>
    %35 = arith.select %29, %27, %34 : vector<8x512xi1>, vector<8x512xf32>
    %c0_25 = arith.constant 0 : index
    %c0_26 = arith.constant 0 : index
    %36 = vector.load %arg8[%c0_25, %c0_26] : memref<8x512xf32, #tpu.memory_space<vmem>>, vector<8x512xf32>
    tpu.vector_store %arg8[%c0_25, %c0_26], %35 {strides = array<i32>} : memref<8x512xf32, #tpu.memory_space<vmem>>, vector<8x512xf32>,
    return
  }
  func.func @transform_0(%arg0: i32) -> (i32, i32) {
    %c0_i32 = arith.constant 0 : i32
    %c0_i32_0 = arith.constant 0 : i32
    %c0_i32_1 = arith.constant 0 : i32
    return %c0_i32, %c0_i32_0 : i32, i32
  }
  func.func @transform_1(%arg0: i32) -> (i32, i32) {
    %c0_i32 = arith.constant 0 : i32
    %c0_i32_0 = arith.constant 0 : i32
    %c0_i32_1 = arith.constant 0 : i32
    return %c0_i32, %c0_i32_0 : i32, i32
  }
  func.func @transform_2(%arg0: i32) -> (i32, i32) {
    %c0_i32 = arith.constant 0 : i32
    %c0_i32_0 = arith.constant 0 : i32
    %c0_i32_1 = arith.constant 0 : i32
    return %c0_i32, %c0_i32_0 : i32, i32
  }
  func.func @transform_3(%arg0: i32) -> (i32, i32) {
    %c0_i32 = arith.constant 0 : i32
    %c0_i32_0 = arith.constant 0 : i32
    %c0_i32_1 = arith.constant 0 : i32
    return %c0_i32, %c0_i32_0 : i32, i32
  }
  func.func @transform_4(%arg0: i32) -> (i32, i32) {
    %c0_i32 = arith.constant 0 : i32
    %c0_i32_0 = arith.constant 0 : i32
    %c0_i32_1 = arith.constant 0 : i32
    return %c0_i32, %c0_i32_0 : i32, i32
  }
  func.func @transform_5(%arg0: i32) -> (i32, i32) {
    %c0_i32 = arith.constant 0 : i32
    %c0_i32_0 = arith.constant 0 : i32
    %c0_i32_1 = arith.constant 0 : i32
    return %c0_i32, %c0_i32_0 : i32, i32
  }
  func.func @transform_6(%arg0: i32) -> (i32, i32) {
    %c0_i32 = arith.constant 0 : i32
    %c0_i32_0 = arith.constant 0 : i32
    %c0_i32_1 = arith.constant 0 : i32
    return %c0_i32, %c0_i32_0 : i32, i32
  }
  func.func @transform_7(%arg0: i32) -> (i32, i32) {
    %c0_i32 = arith.constant 0 : i32
    %c0_i32_0 = arith.constant 0 : i32
    %c0_i32_1 = arith.constant 0 : i32
    return %c0_i32, %c0_i32_0 : i32, i32
  }
}

module attributes {stable_mosaic.version = 11 : i64} {
  func.func @_conv_bias_kernel(%arg0: i32, %arg1: memref<72x512xbf16, #tpu.memory_space<vmem>>, %arg2: memref<4x72xbf16, #tpu.memory_space<vmem>>, %arg3: memref<4x1xf32, #tpu.memory_space<vmem>>, %arg4: memref<4x512xf32, #tpu.memory_space<vmem>>) attributes {dimension_semantics = [#tpu.dimension_semantics<arbitrary>], iteration_bounds = array<i64: 1>, scalar_prefetch = 0 : i64, scratch_operands = 0 : i64, tpu.core_type = #tpu.core_type<tc>, window_params = [{pipeline_mode = #tpu.pipeline_mode<synchronous>, transform_indices = @transform_0, window_bounds = array<i64: 72, 512>}, {pipeline_mode = #tpu.pipeline_mode<synchronous>, transform_indices = @transform_1, window_bounds = array<i64: 4, 72>}, {pipeline_mode = #tpu.pipeline_mode<synchronous>, transform_indices = @transform_2, window_bounds = array<i64: 4, 1>}, {pipeline_mode = #tpu.pipeline_mode<synchronous>, transform_indices = @transform_3, window_bounds = array<i64: 4, 512>}]} {
    %c0 = arith.constant 0 : index
    %c0_0 = arith.constant 0 : index
    %0 = vector.load %arg2[%c0, %c0_0] : memref<4x72xbf16, #tpu.memory_space<vmem>>, vector<4x72xbf16>
    %c0_1 = arith.constant 0 : index
    %c0_2 = arith.constant 0 : index
    %1 = vector.load %arg1[%c0_1, %c0_2] : memref<72x512xbf16, #tpu.memory_space<vmem>>, vector<72x512xbf16>
    %cst = arith.constant dense<0.000000e+00> : vector<4x512xf32>
    %2 = tpu.matmul %0, %1, %cst {dimension_numbers = #tpu.dot_dimension_numbers<[1], [0], [0], [1], [0, 0, 1, 1], [], []>} : vector<4x72xbf16>, vector<72x512xbf16>, vector<4x512xf32> -> vector<4x512xf32>
    %c0_3 = arith.constant 0 : index
    %c0_4 = arith.constant 0 : index
    %3 = vector.load %arg3[%c0_3, %c0_4] : memref<4x1xf32, #tpu.memory_space<vmem>>, vector<4x1xf32>
    %4 = vector.broadcast %3 : vector<4x1xf32> to vector<4x512xf32>
    %5 = arith.addf %2, %4 : vector<4x512xf32>
    %c0_5 = arith.constant 0 : index
    %c0_6 = arith.constant 0 : index
    %6 = vector.load %arg4[%c0_5, %c0_6] : memref<4x512xf32, #tpu.memory_space<vmem>>, vector<4x512xf32>
    tpu.vector_store %arg4[%c0_5, %c0_6], %5 {strides = array<i32>} : memref<4x512xf32, #tpu.memory_space<vmem>>, vector<4x512xf32>,
    return
  }
  func.func @transform_0(%arg0: i32) -> (i32, i32) {
    %c0_i32 = arith.constant 0 : i32
    %c0_i32_0 = arith.constant 0 : i32
    %c0_i32_1 = arith.constant 0 : i32
    return %c0_i32, %c0_i32_0 : i32, i32
  }
  func.func @transform_1(%arg0: i32) -> (i32, i32) {
    %c0_i32 = arith.constant 0 : i32
    %c0_i32_0 = arith.constant 0 : i32
    %c0_i32_1 = arith.constant 0 : i32
    return %c0_i32, %c0_i32_0 : i32, i32
  }
  func.func @transform_2(%arg0: i32) -> (i32, i32) {
    %c0_i32 = arith.constant 0 : i32
    %c0_i32_0 = arith.constant 0 : i32
    %c0_i32_1 = arith.constant 0 : i32
    return %c0_i32, %c0_i32_0 : i32, i32
  }
  func.func @transform_3(%arg0: i32) -> (i32, i32) {
    %c0_i32 = arith.constant 0 : i32
    %c0_i32_0 = arith.constant 0 : i32
    %c0_i32_1 = arith.constant 0 : i32
    return %c0_i32, %c0_i32_0 : i32, i32
  }
}

</mosaic_0001>

<bundles_post_ra>
// kernel: run.10
= control target key start
LH: loop header
LB: loop body
LE: loop exit
PB: predicated region body
PF: predicated region fallthrough
CT: control target
= control target key end

     0   :  { %v1439_v1 = vmov 0   ;;  %vm92_vm0 = vcmask 1041408   ;;  %vm88_vm1 = vcmask 293888   ;;  %vm1441_vm2 = vmmov 0   ;;  %s1934_s0 = inlined_call_operand.vmem [shape: bf16[36,512], index: 0, kind: input, shape index: {}]   ;;  %s1935_s5 = inlined_call_operand.vmem [shape: f32[512,2], index: 5, kind: input, shape index: {}]   ;;  %s1936_s1 = inlined_call_operand.vmem [shape: bf16[4,36], index: 1, kind: input, shape index: {}]   ;;  %s1937_s4 = inlined_call_operand.vmem [shape: f32[4,4], index: 4, kind: input, shape index: {}]   ;;  %s1938_s6 = inlined_call_operand.vmem [shape: f32[2,512], index: 6, kind: input, shape index: {}]   ;;  %s1939_s2 = inlined_call_operand.vmem [shape: f32[4,1], index: 2, kind: input, shape index: {}]   ;;  %s1940_s3 = inlined_call_operand.vmem [shape: f32[4,1], index: 3, kind: input, shape index: {}]   ;;  %s1941_s7 = inlined_call_operand.vmem [shape: f32[4,512], index: 7, kind: output, shape index: {}]  }
   0x1   :  { %v1408_v0 = vld [vmem:[%s1934_s0 + $0x4] ss:$16 sps:$4 sm:$0xff]   ;;  %137 = vmatprep.mubr.bf16.mxu0 %v1439_v1  ;;  %178 = vmatprep.mubr.bf16.mxu1 %v1439_v1  ;;  %v1410_v2 = vld [vmem:[%s1934_s0 + $0xc] ss:$16 sps:$4 sm:$0xff]   ;;  %v1412_v3 = vld [vmem:[%s1934_s0] ss:$16 sps:$4 sm:$0xff]  }
   0x2   :  { %1407 = vset.pattern.permute.xlu0 %v1439_v1  ;;  %105 = vmatprep.subr.bf16.mxu0 %v1408_v0  ;;  %v1413_v4 = vld [vmem:[%s1934_s0 + $0x8] ss:$16 sps:$4 sm:$0xff]   ;;  %v1498_v5 = vld [vmem:[%s1934_s0 + $0x20] sm:$0xff]  ;;  %v33_v6 = vld [vmem:[%s1934_s0 + $0x30] sm:$0xff]  ;;  %vm397_vm3 = vcmask 1043456   ;;  %vm393_vm4 = vcmask 31744  }
   0x3   :  { %146 = vmatprep.subr.bf16.mxu1 %v1410_v2  ;;  %v1506_v7 = vld [vmem:[%s1934_s0 + $0x28] sm:$0xff]  ;;  %v34_v8 = vld [vmem:[%s1934_s0 + $0x38] sm:$0xff]  ;;  %106 = vmatpush1.bf16.msra.mxu0 %v1412_v3  ;;  %v1090_v9 = vcombine.high %v1498_v5, %v33_v6  ;;  %v1089_v11 = vcombine.low %v1498_v5, %v33_v6  ;;  %v35_v12 = vld [vmem:[%s1934_s0 + $0x40] sm:$0x33]  ;;  %vm490_vm5 = vcmask 15360  }
   0x4   :  { %147 = vmatpush1.bf16.msra.mxu1 %v1413_v4  ;;  %v1092_v10 = vcombine.high %v1506_v7, %v34_v8  ;;  %v36_v13 = vld [vmem:[%s1934_s0 + $0x48] sm:$0x33]  ;;  %v1091_v14 = vcombine.low %v1506_v7, %v34_v8  ;;  %v1094_v15 = vcombine.high %v35_v12, %v35_v12  ;;  %v1093_v17 = vcombine.low %v35_v12, %v35_v12  ;;  %v203_v18 = vld [vmem:[%s1935_s5 + $0x80] sm:$0xff]  ;;  %v205_v31 = vld [vmem:[%s1935_s5 + $0x90] sm:$0xff] }
   0x5   :  { %v1096_v16 = vcombine.high %v36_v13, %v36_v13  ;;  %107 = vmatprep.subr.bf16.mxu0 %v1090_v9  ;;  %v1095_v19 = vcombine.low %v36_v13, %v36_v13  ;;  %v204_v20 = vld [vmem:[%s1935_s5 + $0x88] sm:$0xff]  ;;  %v235_v21 = vld [vmem:[%s1935_s5 + $0x180] sm:$0xff]  ;;  %v206_v32 = vld [vmem:[%s1935_s5 + $0x98] sm:$0xff] }
   0x6   :  { %148 = vmatprep.subr.bf16.mxu1 %v1092_v10  ;;  %v236_v22 = vld [vmem:[%s1935_s5 + $0x188] sm:$0xff]  ;;  %v187_v23 = vld [vmem:[%s1935_s5] sm:$0xff]  ;;  %v94_v25 = vsel %vm92_vm0, %v1093_v17, 0  ;;  %v1543_v27 = vpack.c.bf16 %v204_v20, %v203_v18  ;;  %v237_v33 = vld [vmem:[%s1935_s5 + $0x190] sm:$0xff]  ;;  %v1580_v40 = vpack.c.bf16 %v206_v32, %v205_v31 }
   0x7   :  { %108 = vmatpush1.bf16.msra.mxu0 %v1089_v11  ;;  %v188_v24 = vld [vmem:[%s1935_s5 + $0x8] sm:$0xff]  ;;  %v100_v26 = vsel %vm92_vm0, %v1095_v19, 0  ;;  %v1545_v28 = vpack.c.bf16 %v236_v22, %v235_v21  ;;  %v219_v29 = vld [vmem:[%s1935_s5 + $0x100] sm:$0xff]  ;;  %v238_v34 = vld [vmem:[%s1935_s5 + $0x198] sm:$0xff] }
   0x8   :  { %149 = vmatpush1.bf16.msra.mxu1 %v1091_v14  ;;  %1097 = vmatprep.subr.msk.bf16.mxu0 %vm92_vm0, %v1094_v15  ;;  %v220_v30 = vld [vmem:[%s1935_s5 + $0x108] sm:$0xff]  ;;  %v37_v35 = vld [vmem:[%s1936_s1] sm:$0x3]  ;;  %v1568_v36 = vpack.c.bf16 %v188_v24, %v187_v23  ;;  %v189_v38 = vld [vmem:[%s1935_s5 + $0x10] sm:$0xff]  ;;  %v1582_v41 = vpack.c.bf16 %v238_v34, %v237_v33 }
   0x9   :  { %1099 = vmatprep.subr.msk.bf16.mxu1 %vm92_vm0, %v1096_v16  ;;  %v1570_v37 = vpack.c.bf16 %v220_v30, %v219_v29  ;;  %v190_v39 = vld [vmem:[%s1935_s5 + $0x18] sm:$0xff]  ;;  %v221_v42 = vld [vmem:[%s1935_s5 + $0x110] sm:$0xff]  ;;  %v207_v44 = vld [vmem:[%s1935_s5 + $0xa0] sm:$0xff] }
   0xa   :  { %v222_v43 = vld [vmem:[%s1935_s5 + $0x118] sm:$0xff]  ;;  %v208_v45 = vld [vmem:[%s1935_s5 + $0xa8] sm:$0xff]  ;;  %v239_v46 = vld [vmem:[%s1935_s5 + $0x1a0] sm:$0xff]  ;;  %v1606_v48 = vpack.c.bf16 %v190_v39, %v189_v38 }
   0xb   :  { %110 = vmatpush1.bf16.msra.mxu0 %v94_v25  ;;  %v240_v47 = vld [vmem:[%s1935_s5 + $0x1a8] sm:$0xff]  ;;  %v1608_v49 = vpack.c.bf16 %v222_v43, %v221_v42  ;;  %v191_v50 = vld [vmem:[%s1935_s5 + $0x20] sm:$0xff]  ;;  %v1618_v52 = vpack.c.bf16 %v208_v45, %v207_v44  ;;  %v209_v56 = vld [vmem:[%s1935_s5 + $0xb0] sm:$0xff] }
   0xc   :  { %151 = vmatpush1.bf16.msra.mxu1 %v100_v26  ;;  %1276 = vmatprep.subr.bf16.mxu0 %v1543_v27  ;;  %v192_v51 = vld [vmem:[%s1935_s5 + $0x28] sm:$0xff]  ;;  %v1620_v53 = vpack.c.bf16 %v240_v47, %v239_v46  ;;  %v223_v54 = vld [vmem:[%s1935_s5 + $0x120] sm:$0xff]  ;;  %v210_v57 = vld [vmem:[%s1935_s5 + $0xb8] sm:$0xff] }
   0xd   :  { %1308 = vmatprep.subr.bf16.mxu1 %v1545_v28  ;;  %v224_v55 = vld [vmem:[%s1935_s5 + $0x128] sm:$0xff]  ;;  %v241_v58 = vld [vmem:[%s1935_s5 + $0x1b0] sm:$0xff]  ;;  %v242_v59 = vld [vmem:[%s1935_s5 + $0x1b8] sm:$0xff]  ;;  %v1642_v60 = vpack.c.bf16 %v192_v51, %v191_v50  ;;  %v1654_v0 = vpack.c.bf16 %v210_v57, %v209_v56 }
   0xe   :  { %1098 = vmatmul.mubr.msk.bf16.vlgmr.msra.gmra.mrb[0].mxu0 %vm88_vm1, %v37_v35  ;;  %v1644_v61 = vpack.c.bf16 %v224_v55, %v223_v54  ;;  %v193_v62 = vld [vmem:[%s1935_s5 + $0x30] sm:$0xff]  ;;  %v194_v63 = vld [vmem:[%s1935_s5 + $0x38] sm:$0xff]  ;;  %v1656_v1 = vpack.c.bf16 %v242_v59, %v241_v58  ;;  %v211_v4 = vld [vmem:[%s1935_s5 + $0xc0] sm:$0xff] }
   0xf   :  { %1100 = vmatmul.mubr.msk.bf16.vlgmr.msra.gmra.mrb[0].mxu1 %vm88_vm1, %v37_v35  ;;  %1278 = vmatpush3.bf16.msra.mxu0 %v1568_v36  ;;  %v225_v2 = vld [vmem:[%s1935_s5 + $0x130] sm:$0xff]  ;;  %v226_v3 = vld [vmem:[%s1935_s5 + $0x138] sm:$0xff]  ;;  %v212_v6 = vld [vmem:[%s1935_s5 + $0xc8] sm:$0xff]  ;;  %v1678_v10 = vpack.c.bf16 %v194_v63, %v193_v62 }
  0x10   :  { %1310 = vmatpush3.bf16.msra.mxu1 %v1570_v37  ;;  %1280 = vmatprep.subr.bf16.mxu0 %v1580_v40  ;;  %v243_v8 = vld [vmem:[%s1935_s5 + $0x1c0] sm:$0xff]  ;;  %v244_v9 = vld [vmem:[%s1935_s5 + $0x1c8] sm:$0xff]  ;;  %v1680_v11 = vpack.c.bf16 %v226_v3, %v225_v2  ;;  %v1690_v14 = vpack.c.bf16 %v212_v6, %v211_v4  ;;  %v213_v18 = vld [vmem:[%s1935_s5 + $0xd0] sm:$0xff] }
  0x11   :  { %1312 = vmatprep.subr.bf16.mxu1 %v1582_v41  ;;  %v195_v12 = vld [vmem:[%s1935_s5 + $0x40] sm:$0xff]  ;;  %v196_v13 = vld [vmem:[%s1935_s5 + $0x48] sm:$0xff]  ;;  %v1692_v15 = vpack.c.bf16 %v244_v9, %v243_v8  ;;  %v214_v19 = vld [vmem:[%s1935_s5 + $0xd8] sm:$0xff] }
  0x12   :  { %v227_v16 = vld [vmem:[%s1935_s5 + $0x140] sm:$0xff]  ;;  %v228_v17 = vld [vmem:[%s1935_s5 + $0x148] sm:$0xff]  ;;  %v245_v20 = vld [vmem:[%s1935_s5 + $0x1d0] sm:$0xff]  ;;  %v1714_v22 = vpack.c.bf16 %v196_v13, %v195_v12  ;;  %v1726_v26 = vpack.c.bf16 %v214_v19, %v213_v18 }
  0x13   :  { %1282 = vmatpush3.bf16.msra.mxu0 %v1606_v48  ;;  %v246_v21 = vld [vmem:[%s1935_s5 + $0x1d8] sm:$0xff]  ;;  %v1716_v23 = vpack.c.bf16 %v228_v17, %v227_v16  ;;  %v197_v24 = vld [vmem:[%s1935_s5 + $0x50] sm:$0xff]  ;;  %v215_v32 = vld [vmem:[%s1935_s5 + $0xe0] sm:$0xff] }
  0x14   :  { %1314 = vmatpush3.bf16.msra.mxu1 %v1608_v49  ;;  %1284 = vmatprep.subr.bf16.mxu0 %v1618_v52  ;;  %v198_v25 = vld [vmem:[%s1935_s5 + $0x58] sm:$0xff]  ;;  %v1728_v29 = vpack.c.bf16 %v246_v21, %v245_v20  ;;  %v229_v30 = vld [vmem:[%s1935_s5 + $0x150] sm:$0xff]  ;;  %v216_v33 = vld [vmem:[%s1935_s5 + $0xe8] sm:$0xff]  ;;  %v1440_v20 = vmov 0.0  }
  0x15   :  { %1316 = vmatprep.subr.bf16.mxu1 %v1620_v53  ;;  %v230_v31 = vld [vmem:[%s1935_s5 + $0x158] sm:$0xff]  ;;  %v247_v34 = vld [vmem:[%s1935_s5 + $0x1e0] sm:$0xff]  ;;  %v248_v35 = vld [vmem:[%s1935_s5 + $0x1e8] sm:$0xff]  ;;  %v1750_v38 = vpack.c.bf16 %v198_v25, %v197_v24  ;;  %v1762_v44 = vpack.c.bf16 %v216_v33, %v215_v32 }
  0x16   :  { %v1752_v39 = vpack.c.bf16 %v230_v31, %v229_v30  ;;  %v199_v42 = vld [vmem:[%s1935_s5 + $0x60] sm:$0xff]  ;;  %v200_v43 = vld [vmem:[%s1935_s5 + $0x68] sm:$0xff]  ;;  %v1764_v45 = vpack.c.bf16 %v248_v35, %v247_v34  ;;  %v217_v50 = vld [vmem:[%s1935_s5 + $0xf0] sm:$0xff]  ;;  %v1442_v35 = vmov 1983009808  }
  0x17   :  { %1286 = vmatpush3.bf16.msra.mxu0 %v1642_v60  ;;  %v231_v46 = vld [vmem:[%s1935_s5 + $0x160] sm:$0xff]  ;;  %v232_v47 = vld [vmem:[%s1935_s5 + $0x168] sm:$0xff]  ;;  %v218_v51 = vld [vmem:[%s1935_s5 + $0xf8] sm:$0xff]  ;;  %v1786_v56 = vpack.c.bf16 %v200_v43, %v199_v42  ;;  %v475_v42 = vunpack.c.l.s4 %v1442_v35  ;;  %v477_v43 = vlaneseq }
  0x18   :  { %1318 = vmatpush3.bf16.msra.mxu1 %v1644_v61  ;;  %1288 = vmatprep.subr.bf16.mxu0 %v1654_v0  ;;  %v249_v54 = vld [vmem:[%s1935_s5 + $0x1f0] sm:$0xff]  ;;  %v250_v55 = vld [vmem:[%s1935_s5 + $0x1f8] sm:$0xff]  ;;  %v1788_v57 = vpack.c.bf16 %v232_v47, %v231_v46  ;;  %v1792_v58 = vpack.c.bf16 %v218_v51, %v217_v50  ;;  %v1837_v34 = vld [vmem:[%s1937_s4] sm:$0xf] }
  0x19   :  { %1320 = vmatprep.subr.bf16.mxu1 %v1656_v1  ;;  %v1794_v59 = vpack.c.bf16 %v250_v55, %v249_v54  ;;  %v201_v62 = vld [vmem:[%s1935_s5 + $0x70] sm:$0xff]  ;;  %v202_v63 = vld [vmem:[%s1935_s5 + $0x78] sm:$0xff]  ;;  %v476_v46 = vunpack.c.0.s8 %v475_v42  ;;  %v478_v47 = vshrl.u32 %v477_v43, 7  ;;  %v251_v50 = vld [vmem:[%s1938_s6] sm:$0xff] }
  0x1a   :  { %v233_v2 = vld [vmem:[%s1935_s5 + $0x170] sm:$0xff]  ;;  %v1809_v3 = vpack.c.bf16 %v202_v63, %v201_v62  ;;  %v234_v4 = vld [vmem:[%s1935_s5 + $0x178] sm:$0xff]  ;;  %v473_v54 = vcombine.high %v251_v50, %v251_v50 }
  0x1b   :  { %1290 = vmatpush3.bf16.msra.mxu0 %v1678_v10  ;;  %v1814_v6 = vpack.c.bf16 %v234_v4, %v233_v2  ;;  %v479_v51 = vsub.s32 %v476_v46, %v478_v47 }
  0x1c   :  { %1322 = vmatpush3.bf16.msra.mxu1 %v1680_v11  ;;  %1292 = vmatprep.subr.bf16.mxu0 %v1690_v14 }
  0x1d   :  { %1324 = vmatprep.subr.bf16.mxu1 %v1692_v15  ;;  %v1846_v55 = vrot.slane %v251_v50, %v479_v51  ;;  %v1848_v62 = vrot.slane %v473_v54, %v479_v51 }
  0x1f   :  { %1294 = vmatpush3.bf16.msra.mxu0 %v1714_v22  ;;  %v488_v63 = vcombine.high %v1846_v55, %v1846_v55  ;;  %v1854_v2 = vcombine.high %v1848_v62, %v1848_v62 }
  0x20   :  { %1326 = vmatpush3.bf16.msra.mxu1 %v1716_v23  ;;  %1296 = vmatprep.subr.bf16.mxu0 %v1726_v26 }
  0x21   :  { %1328 = vmatprep.subr.bf16.mxu1 %v1728_v29 }
  0x23   :  { %1298 = vmatpush3.bf16.msra.mxu0 %v1750_v38 }
  0x24   :  { %1330 = vmatpush3.bf16.msra.mxu1 %v1752_v39  ;;  %1300 = vmatprep.subr.bf16.mxu0 %v1762_v44 }
  0x25   :  { %1332 = vmatprep.subr.bf16.mxu1 %v1764_v45 }
  0x27   :  { %1302 = vmatpush3.bf16.msra.mxu0 %v1786_v56 }
  0x28   :  { %1334 = vmatpush3.bf16.msra.mxu1 %v1788_v57  ;;  %1304 = vmatprep.subr.bf16.mxu0 %v1792_v58 }
  0x29   :  { %1336 = vmatprep.subr.bf16.mxu1 %v1794_v59 }
  0x2b   :  { %1306 = vmatpush3.bf16.msra.mxu0 %v1809_v3 }
  0x2c   :  { %1338 = vmatpush3.bf16.msra.mxu1 %v1814_v6  ;;  %1265 = vmatprep.subr.mxu0 %v1440_v20 }
  0x2d   :  { %1103 = vmatprep.subr.msk.mxu1 %vm92_vm0, %v488_v63 }
  0xe1   :  { %v1818_v8 = vpop.f32.mrb[0].mxu0 }
  0xe2   :  { %v1820_v9 = vpop.f32.mrb[0].mxu1  ;;  %v1822_v12 = vpop.f32.mrb[1].mxu0 }
  0xe3   :  { %v1824_v13 = vpop.f32.mrb[1].mxu1  ;;  %v143_v16 = vpop.f32.mrb[2].mxu0  ;;  %317 = vmatprep.mubr.f32.mxu0 %v1822_v12 }
  0xe4   :  { %v184_v17 = vpop.f32.mrb[2].mxu1  ;;  %387 = vmatprep.mubr.f32.mxu1 %v1824_v13  ;;  %v144_v18 = vpop.f32.mrb[3].mxu0  ;;  %318 = vmatmul.mubr.f32.vlgmr.msra.gmra.mrb[4].mxu0 %v1818_v8 }
  0xe5   :  { %v185_v19 = vpop.f32.mrb[3].mxu1  ;;  %388 = vmatmul.mubr.f32.vlgmr.msra.gmra.mrb[4].mxu1 %v1820_v9  ;;  %1267 = vmatprep.mubr.msk.f32.mxu0 %vm1441_vm2, %v1440_v20 }
  0xe6   :  { %566 = vmatprep.mubr.f32.mxu1 %v1440_v20  ;;  %1104 = vmatpush1.msk.msra.mxu1 %vm92_vm0, %v1846_v55 }
  0xe7   :  { %1340 = vmatprep.subr.bf16.mxu1 %v1543_v27 }
 0x1b7   :  { %v1153_v21 = vpop.f32.mrb[4].mxu0 }
 0x1b8   :  { %v1188_v24 = vpop.f32.mrb[4].mxu1  ;;  %v1154_v25 = vpop.f32.mrb[5].mxu0 }
 0x1b9   :  { %v1189_v30 = vpop.f32.mrb[5].mxu1  ;;  %v1155_v31 = vadd.f32 %v1154_v25, %v1153_v21 }
 0x1ba   :  { %v1190_v32 = vadd.f32 %v1189_v30, %v1188_v24 }
 0x1bc   :  { %v390_v33 = vadd.f32 %v1190_v32, %v1155_v31 }
 0x1be   :  { %1266 = vmatpush3.msk.msra.mxu0 %vm397_vm3, %v390_v33 }
 0x1bf   :  { %1268 = vmatmul.mubr.msk.f32.vlgmr.msra.gmra.mrb[6].mxu0 %vm393_vm4, %v1837_v34  ;;  %1106 = vmatprep.subr.msk.mxu0 %vm92_vm0, %v1854_v2 }
 0x1c0   :  { %637 = vmatprep.mubr.f32.mxu0 %v1440_v20  ;;  %1107 = vmatpush1.msk.msra.mxu0 %vm92_vm0, %v1848_v62 }
 0x1c1   :  { %1372 = vmatprep.subr.bf16.mxu0 %v1545_v28 }
 0x292   :  { %v467_v4 = vpop.f32.mrb[6].mxu0 }
 0x293   :  { %v471_v16 = vmul.f32 0.0009765625, %v467_v4  ;;  %v1269_v17 = vpop.f32.mrb[7].mxu0  ;;  %v1063_v4 = vunpack.c.l.bf16 %v1498_v5 }
 0x295   :  { %1105 = vmatmul.mubr.msk.f32.vlgmr.msra.gmra.mrb[6].mxu1 %vm490_vm5, %v471_v16  ;;  %1108 = vmatmul.mubr.msk.f32.vlgmr.msra.gmra.mrb[8].mxu0 %vm490_vm5, %v471_v16 }
 0x296   :  { %1342 = vmatpush3.bf16.msra.mxu1 %v1568_v36  ;;  %1374 = vmatpush3.bf16.msra.mxu0 %v1570_v37 }
 0x297   :  { %1344 = vmatprep.subr.bf16.mxu1 %v1580_v40  ;;  %1376 = vmatprep.subr.bf16.mxu0 %v1582_v41 }
 0x29a   :  { %1346 = vmatpush3.bf16.msra.mxu1 %v1606_v48  ;;  %1378 = vmatpush3.bf16.msra.mxu0 %v1608_v49 }
 0x29b   :  { %1348 = vmatprep.subr.bf16.mxu1 %v1618_v52  ;;  %1380 = vmatprep.subr.bf16.mxu0 %v1620_v53 }
 0x29e   :  { %1350 = vmatpush3.bf16.msra.mxu1 %v1642_v60  ;;  %1382 = vmatpush3.bf16.msra.mxu0 %v1644_v61 }
 0x29f   :  { %1352 = vmatprep.subr.bf16.mxu1 %v1654_v0  ;;  %1384 = vmatprep.subr.bf16.mxu0 %v1656_v1 }
 0x2a2   :  { %1354 = vmatpush3.bf16.msra.mxu1 %v1678_v10  ;;  %1386 = vmatpush3.bf16.msra.mxu0 %v1680_v11 }
 0x2a3   :  { %1356 = vmatprep.subr.bf16.mxu1 %v1690_v14  ;;  %1388 = vmatprep.subr.bf16.mxu0 %v1692_v15 }
 0x2a6   :  { %1358 = vmatpush3.bf16.msra.mxu1 %v1714_v22  ;;  %1390 = vmatpush3.bf16.msra.mxu0 %v1716_v23  ;;  %v1019_v23 = vld [vmem:[%s1939_s2] sm:$0xf] }
 0x2a7   :  { %1360 = vmatprep.subr.bf16.mxu1 %v1726_v26  ;;  %1392 = vmatprep.subr.bf16.mxu0 %v1728_v29  ;;  %v1029_v26 = vld [vmem:[%s1940_s3] sm:$0xf] }
 0x2a8   :  { %1022 = vperm.xlu0 %1407, %v1019_v23  }
 0x2aa   :  { %1362 = vmatpush3.bf16.msra.mxu1 %v1750_v38  ;;  %1394 = vmatpush3.bf16.msra.mxu0 %v1752_v39 }
 0x2ab   :  { %1364 = vmatprep.subr.bf16.mxu1 %v1762_v44  ;;  %1396 = vmatprep.subr.bf16.mxu0 %v1764_v45 }
 0x2ac   :  { %1032 = vperm.xlu0 %1407, %v1029_v26  }
 0x2ae   :  { %1366 = vmatpush3.bf16.msra.mxu1 %v1786_v56  ;;  %1398 = vmatpush3.bf16.msra.mxu0 %v1788_v57 }
 0x2af   :  { %1368 = vmatprep.subr.bf16.mxu1 %v1792_v58  ;;  %1400 = vmatprep.subr.bf16.mxu0 %v1794_v59 }
 0x2b2   :  { %1370 = vmatpush3.bf16.msra.mxu1 %v1809_v3  ;;  %1402 = vmatpush3.bf16.msra.mxu0 %v1814_v6 }
 0x2b3   :  { %1270 = vmatprep.subr.mxu1 %v1440_v20  ;;  %1111 = vmatprep.subr.msk.mxu0 %vm92_vm0, %v488_v63 }
 0x368   :  { %v568_v27 = vpop.f32.mrb[6].mxu1  ;;  %v639_v28 = vpop.f32.mrb[8].mxu0 }
 0x369   :  { %v644_v36 = vsub.f32 %v1818_v8, %v568_v27  ;;  %v646_v37 = vsub.f32 %v1820_v9, %v639_v28  ;;  %v570_v40 = vpop.f32.mrb[7].mxu1  ;;  %v641_v41 = vpop.f32.mrb[9].mxu0  ;;  %v1065_v27 = vunpack.c.l.bf16 %v1506_v7 }
 0x36a   :  { %v645_v48 = vsub.f32 %v1822_v12, %v570_v40  ;;  %v647_v49 = vsub.f32 %v1824_v13, %v641_v41  ;;  %v1023_v8 = vpop.permute.xlu0 %1022 }
 0x36b   :  { %v648_v60 = vmul.f32 %v644_v36, %v644_v36  ;;  %v650_v61 = vmul.f32 %v646_v37, %v646_v37 }
 0x36c   :  { %v649_v52 = vmul.f32 %v645_v48, %v645_v48  ;;  %v651_v53 = vmul.f32 %v647_v49, %v647_v49 }
 0x36e   :  { %716 = vmatprep.mubr.f32.mxu1 %v649_v52  ;;  %786 = vmatprep.mubr.f32.mxu0 %v651_v53  ;;  %v1033_v25 = vpop.permute.xlu0 %1032 }
 0x36f   :  { %717 = vmatmul.mubr.f32.vlgmr.msra.gmra.mrb[8].mxu1 %v648_v60  ;;  %787 = vmatmul.mubr.f32.vlgmr.msra.gmra.mrb[10].mxu0 %v650_v61 }
 0x370   :  { %1272 = vmatprep.mubr.msk.f32.mxu1 %vm1441_vm2, %v1440_v20  ;;  %1112 = vmatpush1.msk.msra.mxu0 %vm92_vm0, %v1846_v55 }
 0x371   :  { %933 = vmatprep.mubr.f32.mxu0 %v1440_v20 }
 0x442   :  { %v1225_v0 = vpop.f32.mrb[8].mxu1  ;;  %v1260_v1 = vpop.f32.mrb[10].mxu0 }
 0x443   :  { %v1226_v10 = vpop.f32.mrb[9].mxu1  ;;  %v1261_v11 = vpop.f32.mrb[11].mxu0 }
 0x444   :  { %v1227_v14 = vadd.f32 %v1226_v10, %v1225_v0  ;;  %v1262_v15 = vadd.f32 %v1261_v11, %v1260_v1 }
 0x446   :  { %v789_v22 = vadd.f32 %v1262_v15, %v1227_v14 }
 0x448   :  { %1271 = vmatpush3.msk.msra.mxu1 %vm397_vm3, %v789_v22 }
 0x449   :  { %1273 = vmatmul.mubr.msk.f32.vlgmr.msra.gmra.mrb[10].mxu1 %vm393_vm4, %v1837_v34  ;;  %1114 = vmatprep.subr.msk.mxu1 %vm92_vm0, %v1854_v2 }
 0x44a   :  { %1115 = vmatpush1.msk.msra.mxu1 %vm92_vm0, %v1848_v62  ;;  %1004 = vmatprep.mubr.f32.mxu1 %v1440_v20 }
 0x51c   :  { %v861_v29 = vpop.f32.mrb[10].mxu1 }
 0x51d   :  { %v865_v38 = vmul.f32 0.0009765625, %v861_v29  ;;  %v1274_v39 = vpop.f32.mrb[11].mxu1 }
 0x51f   :  { %1113 = vmatmul.mubr.msk.f32.vlgmr.msra.gmra.mrb[12].mxu0 %vm490_vm5, %v865_v38  ;;  %1116 = vmatmul.mubr.msk.f32.vlgmr.msra.gmra.mrb[12].mxu1 %vm490_vm5, %v865_v38 }
 0x5f2   :  { %v935_v44 = vpop.f32.mrb[12].mxu0  ;;  %v1006_v45 = vpop.f32.mrb[12].mxu1 }
 0x5f3   :  { %v936_v56 = vadd.f32 1e-05, %v935_v44  ;;  %v1007_v57 = vadd.f32 1e-05, %v1006_v45  ;;  %v937_v58 = vpop.f32.mrb[13].mxu0  ;;  %v1008_v59 = vpop.f32.mrb[13].mxu1 }
 0x5f4   :  { %v938_v3 = vadd.f32 1e-05, %v937_v58  ;;  %v1009_v6 = vadd.f32 1e-05, %v1008_v59 }
 0x5f5   :  { %1423 = vrsqrt.f32 %v936_v56 }
 0x5f6   :  { %1425 = vrsqrt.f32 %v1007_v57 }
 0x5f7   :  { %1427 = vrsqrt.f32 %v938_v3 }
 0x5f8   :  { %1429 = vrsqrt.f32 %v1009_v6 }
 0x5ff   :  { %v1424_v9 = vpop.eup %1423 }
 0x600   :  { %v1426_v12 = vpop.eup %1425  ;;  %v1015_v13 = vmul.f32 %v1424_v9, %v644_v36 }
 0x601   :  { %v1428_v18 = vpop.eup %1427  ;;  %v1017_v19 = vmul.f32 %v1426_v12, %v646_v37  ;;  %v1064_v37 = vunpack.c.h.bf16 %v1498_v5 }
 0x602   :  { %v1430_v20 = vpop.eup %1429  ;;  %v1016_v21 = vmul.f32 %v1428_v18, %v645_v48  ;;  %v1025_v24 = vmul.f32 %v1023_v8, %v1015_v13 }
 0x603   :  { %v1018_v30 = vmul.f32 %v1430_v20, %v647_v49  ;;  %v1027_v31 = vmul.f32 %v1023_v8, %v1017_v19  ;;  %v1066_v49 = vunpack.c.h.bf16 %v1506_v7 }
 0x604   :  { %v1026_v32 = vmul.f32 %v1023_v8, %v1016_v21  ;;  %v1035_v33 = vadd.f32 %v1033_v25, %v1025_v24 }
 0x605   :  { %v1028_v34 = vmul.f32 %v1023_v8, %v1018_v30  ;;  %v1037_v35 = vadd.f32 %v1033_v25, %v1027_v31 }
 0x606   :  { %v1036_v42 = vadd.f32 %v1033_v25, %v1026_v32  ;;  %v1043_v43 = vmin.f32 %v1035_v33, 0.0  ;;  %vm1039_vm6 = vcmp.gt.f32.partialorder %v1035_v33, 0.0 }
 0x607   :  { %v1038_v46 = vadd.f32 %v1033_v25, %v1028_v34  ;;  %v1045_v47 = vmin.f32 %v1037_v35, 0.0  ;;  %vm1041_vm7 = vcmp.gt.f32.partialorder %v1037_v35, 0.0 }
 0x608   :  { %v1044_v50 = vmin.f32 %v1036_v42, 0.0  ;;  %v1047_v51 = vmul.f32 1.442695, %v1043_v43  ;;  %vm1040_vm8 = vcmp.gt.f32.partialorder %v1036_v42, 0.0 }
 0x609   :  { %v1046_v54 = vmin.f32 %v1038_v46, 0.0  ;;  %v1051_v55 = vmul.f32 1.442695, %v1045_v47  ;;  %vm1042_vm9 = vcmp.gt.f32.partialorder %v1038_v46, 0.0 }
 0x60a   :  { %1431 = vpow2.f32 %v1047_v51  ;;  %v1049_v62 = vmul.f32 1.442695, %v1044_v50 }
 0x60b   :  { %1433 = vpow2.f32 %v1051_v55  ;;  %v1053_v63 = vmul.f32 1.442695, %v1046_v54 }
 0x60c   :  { %1435 = vpow2.f32 %v1049_v62 }
 0x60d   :  { %1437 = vpow2.f32 %v1053_v63 }
 0x614   :  { %v1432_v2 = vpop.eup %1431 }
 0x615   :  { %v1434_v16 = vpop.eup %1433  ;;  %v1117_v17 = vadd.f32 -1.0, %v1432_v2 }
 0x616   :  { %v1436_v28 = vpop.eup %1435  ;;  %v1119_v36 = vadd.f32 -1.0, %v1434_v16 }
 0x617   :  { %v1438_v40 = vpop.eup %1437  ;;  %v1118_v41 = vadd.f32 -1.0, %v1436_v28  ;;  %v1059_v48 = vsel %vm1039_vm6, %v1035_v33, %v1117_v17 }
 0x618   :  { %v1120_v52 = vadd.f32 -1.0, %v1438_v40  ;;  %v1061_v53 = vsel %vm1041_vm7, %v1037_v35, %v1119_v36  ;;  %v1067_v60 = vadd.f32 %v1063_v4, %v1059_v48 }
 0x619   :  { %v1060_v61 = vsel %vm1040_vm8, %v1036_v42, %v1118_v41  ;;  %v1069_v0 = vadd.f32 %v1065_v27, %v1061_v53 }
 0x61a   :  { %v1062_v1 = vsel %vm1042_vm9, %v1038_v46, %v1120_v52  ;;  %v1068_v10 = vadd.f32 %v1064_v37, %v1060_v61 }
 0x61b   :  { %v1070_v11 = vadd.f32 %v1066_v49, %v1062_v1 }
 0x61c   :  { %v1075_v14 = vcombine.low %v1067_v60, %v1068_v10 }
 0x61d   :  { %v1076_v15 = vcombine.low %v1069_v0, %v1070_v11 }
 0x61e   :  { %1079 = vst [vmem:[%s1941_s7] sm:$0xff] %v1075_v14 }
 0x61f   :  { %1080 = vst [vmem:[%s1941_s7 + $0x8] sm:$0xff] %v1076_v15 }

// kernel: run.11
= control target key start
LH: loop header
LB: loop body
LE: loop exit
PB: predicated region body
PF: predicated region fallthrough
CT: control target
= control target key end

     0   :  { %v796_v0 = vmov 0.0   ;;  %vm797_vm0 = vmmov 0   ;;  %vm52_vm1 = vcmask 1041408   ;;  %vm48_vm2 = vcmask 293888   ;;  %s963_s0 = inlined_call_operand.vmem [shape: bf16[36,128], index: 0, kind: input, shape index: {}]   ;;  %s964_s5 = inlined_call_operand.vmem [shape: f32[128,2], index: 5, kind: input, shape index: {}]   ;;  %s965_s1 = inlined_call_operand.vmem [shape: bf16[8,36], index: 1, kind: input, shape index: {}]   ;;  %s966_s4 = inlined_call_operand.vmem [shape: f32[8,8], index: 4, kind: input, shape index: {}]   ;;  %s967_s6 = inlined_call_operand.vmem [shape: f32[2,128], index: 6, kind: input, shape index: {}]   ;;  %s968_s2 = inlined_call_operand.vmem [shape: f32[8,1], index: 2, kind: input, shape index: {}]   ;;  %s969_s3 = inlined_call_operand.vmem [shape: f32[8,1], index: 3, kind: input, shape index: {}]   ;;  %s970_s7 = inlined_call_operand.vmem [shape: f32[8,128], index: 7, kind: output, shape index: {}]  }
   0x1   :  { %636 = vmatprep.subr.bf16.mxu1 %v796_v0  ;;  %v789_v1 = vld [vmem:[%s963_s0] sm:$0xff]   ;;  %642 = vmatprep.mubr.msk.bf16.mxu1 %vm797_vm0, %v796_v0  ;;  %v790_v2 = vld [vmem:[%s963_s0 + $0x8] sm:$0xff]   ;;  %v791_v3 = vld [vmem:[%s963_s0 + $0x10] ss:$0 sps:$4 sm:$0x33]   ;;  %v798_v9 = vmov 0.0|0.0  }
   0x2   :  { %681 = vmatprep.subr.mxu0 %v796_v0  ;;  %683 = vmatprep.mubr.msk.f32.mxu0 %vm797_vm0, %v796_v0  ;;  %v54_v4 = vsel %vm52_vm1, %v791_v3, 0  ;;  %v96_v5 = vld [vmem:[%s964_s5] sm:$0xff]  ;;  %v97_v6 = vld [vmem:[%s964_s5 + $0x8] sm:$0xff]  ;;  %v98_v10 = vld [vmem:[%s964_s5 + $0x10] sm:$0xff]  ;;  %vm184_vm3 = vcmask 64512   ;;  %vm259_vm4 = vcmask 15360  }
   0x3   :  { %637 = vmatpush3.bf16.msra.mxu1 %v789_v1  ;;  %v32_v7 = vld [vmem:[%s965_s1] sm:$0xf]  ;;  %v867_v8 = vpack.c.bf16 %v97_v6, %v96_v5  ;;  %v99_v11 = vld [vmem:[%s964_s5 + $0x18] sm:$0xff]  ;;  %v101_v14 = vld [vmem:[%s964_s5 + $0x28] sm:$0xff]  ;;  %v799_v48 = vmov 0  }
   0x4   :  { %638 = vmatprep.subr.bf16.mxu1 %v796_v0  ;;  %v740_v12 = vpack.c.bf16 %v99_v11, %v98_v10  ;;  %v100_v13 = vld [vmem:[%s964_s5 + $0x20] sm:$0xff]  ;;  %v102_v16 = vld [vmem:[%s964_s5 + $0x30] sm:$0xff]  ;;  %v103_v17 = vld [vmem:[%s964_s5 + $0x38] sm:$0xff]  ;;  %788 = vset.pattern.permute.xlu0 %v799_v48 }
   0x5   :  { %v743_v15 = vpack.c.bf16 %v101_v14, %v100_v13  ;;  %v746_v18 = vpack.c.bf16 %v103_v17, %v102_v16  ;;  %v104_v19 = vld [vmem:[%s964_s5 + $0x40] sm:$0xff]  ;;  %v105_v20 = vld [vmem:[%s964_s5 + $0x48] sm:$0xff]  ;;  %v106_v22 = vld [vmem:[%s964_s5 + $0x50] sm:$0xff] }
   0x6   :  { %v749_v21 = vpack.c.bf16 %v105_v20, %v104_v19  ;;  %v107_v23 = vld [vmem:[%s964_s5 + $0x58] sm:$0xff]  ;;  %v108_v25 = vld [vmem:[%s964_s5 + $0x60] sm:$0xff]  ;;  %v109_v26 = vld [vmem:[%s964_s5 + $0x68] sm:$0xff] }
   0x7   :  { %639 = vmatpush3.bf16.msra.mxu1 %v790_v2  ;;  %v752_v24 = vpack.c.bf16 %v107_v23, %v106_v22  ;;  %v755_v27 = vpack.c.bf16 %v109_v26, %v108_v25  ;;  %v110_v28 = vld [vmem:[%s964_s5 + $0x70] sm:$0xff]  ;;  %v111_v29 = vld [vmem:[%s964_s5 + $0x78] sm:$0xff]  ;;  %v113_v35 = vld [vmem:[%s966_s4] sm:$0xff] }
   0x8   :  { %640 = vmatprep.subr.bf16.mxu1 %v796_v0  ;;  %v758_v30 = vpack.c.bf16 %v111_v29, %v110_v28  ;;  %v112_v38 = vld [vmem:[%s967_s6] sm:$0x3] }
   0x9   :  { %v554_v49 = vld [vmem:[%s968_s2] sm:$0xff] }
   0xa   :  { %557 = vperm.xlu0 %788, %v554_v49   ;;  %v561_v50 = vld [vmem:[%s969_s3] sm:$0xff] }
   0xb   :  { %641 = vmatpush3.bf16.msra.mxu1 %v54_v4 }
   0xc   :  { %736 = vmatprep.subr.bf16.mxu1 %v798_v9 }
   0xe   :  { %643 = vmatmul.mubr.msk.bf16.vlgmr.msra.gmra.mrb[0].mxu1 %vm48_vm2, %v32_v7  ;;  %564 = vperm.xlu0 %788, %v561_v50  }
   0xf   :  { %738 = vmatpush3.bf16.msra.mxu1 %v867_v8  ;;  %678 = vmatprep.mubr.msk.f32.mxu1 %vm797_vm0, %v796_v0 }
  0x10   :  { %739 = vmatprep.subr.bf16.mxu1 %v798_v9 }
  0x13   :  { %741 = vmatpush3.bf16.msra.mxu1 %v740_v12 }
  0x14   :  { %742 = vmatprep.subr.bf16.mxu1 %v798_v9 }
  0x17   :  { %744 = vmatpush3.bf16.msra.mxu1 %v743_v15 }
  0x18   :  { %745 = vmatprep.subr.bf16.mxu1 %v798_v9 }
  0x1b   :  { %747 = vmatpush3.bf16.msra.mxu1 %v746_v18 }
  0x1c   :  { %748 = vmatprep.subr.bf16.mxu1 %v798_v9 }
  0x1f   :  { %750 = vmatpush3.bf16.msra.mxu1 %v749_v21 }
  0x20   :  { %751 = vmatprep.subr.bf16.mxu1 %v798_v9 }
  0x23   :  { %753 = vmatpush3.bf16.msra.mxu1 %v752_v24 }
  0x24   :  { %754 = vmatprep.subr.bf16.mxu1 %v798_v9 }
  0x27   :  { %756 = vmatpush3.bf16.msra.mxu1 %v755_v27 }
  0x28   :  { %757 = vmatprep.subr.bf16.mxu1 %v798_v9 }
  0x2b   :  { %759 = vmatpush3.bf16.msra.mxu1 %v758_v30 }
  0x89   :  { %v558_v57 = vpop.permute.xlu0 %557 }
  0x8d   :  { %v565_v61 = vpop.permute.xlu0 %564 }
  0xe1   :  { %v90_v31 = vpop.f32.mrb[0].mxu1 }
  0xe2   :  { %v644_v32 = vpop.f32.mrb[1].mxu1  ;;  %679 = vmatmul.mubr.f32.vlgmr.msra.gmra.mrb[4].mxu1 %v90_v31 }
  0xe3   :  { %v93_v33 = vpop.f32.mrb[2].mxu1 }
  0xe4   :  { %v645_v34 = vpop.f32.mrb[3].mxu1 }
 0x1b5   :  { %v180_v36 = vpop.f32.mrb[4].mxu1 }
 0x1b6   :  { %v680_v37 = vpop.f32.mrb[5].mxu1  ;;  %682 = vmatpush3.msra.mxu0 %v180_v36 }
 0x1b7   :  { %684 = vmatmul.mubr.msk.f32.vlgmr.msra.gmra.mrb[0].mxu0 %vm184_vm3, %v113_v35  ;;  %686 = vmatprep.subr.mxu0 %v796_v0 }
 0x1b8   :  { %688 = vmatprep.mubr.msk.f32.mxu0 %vm797_vm0, %v796_v0  ;;  %687 = vmatpush3.msk.msra.mxu0 %vm52_vm1, %v112_v38 }
 0x1b9   :  { %760 = vmatprep.subr.bf16.mxu0 %v798_v9 }
 0x28a   :  { %v254_v39 = vpop.f32.mrb[0].mxu0 }
 0x28b   :  { %v258_v40 = vmul.f32 0.00390625, %v254_v39  ;;  %v685_v41 = vpop.f32.mrb[1].mxu0 }
 0x28d   :  { %689 = vmatmul.mubr.msk.f32.vlgmr.msra.gmra.mrb[2].mxu0 %vm259_vm4, %v258_v40 }
 0x28e   :  { %762 = vmatpush3.bf16.msra.mxu0 %v867_v8  ;;  %723 = vmatprep.mubr.msk.f32.mxu0 %vm797_vm0, %v796_v0 }
 0x28f   :  { %763 = vmatprep.subr.bf16.mxu0 %v798_v9 }
 0x292   :  { %765 = vmatpush3.bf16.msra.mxu0 %v740_v12 }
 0x293   :  { %766 = vmatprep.subr.bf16.mxu0 %v798_v9 }
 0x296   :  { %768 = vmatpush3.bf16.msra.mxu0 %v743_v15 }
 0x297   :  { %769 = vmatprep.subr.bf16.mxu0 %v798_v9 }
 0x29a   :  { %771 = vmatpush3.bf16.msra.mxu0 %v746_v18 }
 0x29b   :  { %772 = vmatprep.subr.bf16.mxu0 %v798_v9 }
 0x29e   :  { %774 = vmatpush3.bf16.msra.mxu0 %v749_v21 }
 0x29f   :  { %775 = vmatprep.subr.bf16.mxu0 %v798_v9 }
 0x2a2   :  { %777 = vmatpush3.bf16.msra.mxu0 %v752_v24 }
 0x2a3   :  { %778 = vmatprep.subr.bf16.mxu0 %v798_v9 }
 0x2a6   :  { %780 = vmatpush3.bf16.msra.mxu0 %v755_v27 }
 0x2a7   :  { %781 = vmatprep.subr.bf16.mxu0 %v798_v9 }
 0x2aa   :  { %783 = vmatpush3.bf16.msra.mxu0 %v758_v30 }
 0x2ab   :  { %726 = vmatprep.subr.mxu0 %v796_v0 }
 0x360   :  { %v332_v42 = vpop.f32.mrb[2].mxu0 }
 0x361   :  { %v336_v43 = vsub.f32 %v90_v31, %v332_v42  ;;  %v690_v44 = vpop.f32.mrb[3].mxu0 }
 0x363   :  { %v337_v45 = vmul.f32 %v336_v43, %v336_v43 }
 0x365   :  { %724 = vmatmul.mubr.f32.vlgmr.msra.gmra.mrb[4].mxu0 %v337_v45 }
 0x366   :  { %728 = vmatprep.mubr.msk.f32.mxu0 %vm797_vm0, %v796_v0 }
 0x438   :  { %v404_v46 = vpop.f32.mrb[4].mxu0 }
 0x439   :  { %v725_v47 = vpop.f32.mrb[5].mxu0  ;;  %727 = vmatpush3.msra.mxu0 %v404_v46 }
 0x43a   :  { %729 = vmatmul.mubr.msk.f32.vlgmr.msra.gmra.mrb[6].mxu0 %vm184_vm3, %v113_v35  ;;  %731 = vmatprep.subr.mxu0 %v796_v0 }
 0x43b   :  { %732 = vmatpush3.msk.msra.mxu0 %vm52_vm1, %v112_v38  ;;  %733 = vmatprep.mubr.msk.f32.mxu0 %vm797_vm0, %v796_v0 }
 0x50d   :  { %v474_v51 = vpop.f32.mrb[6].mxu0 }
 0x50e   :  { %v478_v52 = vmul.f32 0.00390625, %v474_v51  ;;  %v730_v53 = vpop.f32.mrb[7].mxu0 }
 0x510   :  { %734 = vmatmul.mubr.msk.f32.vlgmr.msra.gmra.mrb[8].mxu0 %vm259_vm4, %v478_v52 }
 0x5e3   :  { %v548_v54 = vpop.f32.mrb[8].mxu0 }
 0x5e4   :  { %v549_v55 = vadd.f32 1e-05, %v548_v54  ;;  %v735_v56 = vpop.f32.mrb[9].mxu0 }
 0x5e6   :  { %792 = vrsqrt.f32 %v549_v55 }
 0x5f0   :  { %v793_v58 = vpop.eup %792 }
 0x5f1   :  { %v553_v59 = vmul.f32 %v793_v58, %v336_v43 }
 0x5f3   :  { %v560_v60 = vmul.f32 %v558_v57, %v553_v59 }
 0x5f5   :  { %v567_v62 = vadd.f32 %v565_v61, %v560_v60 }
 0x5f7   :  { %v569_v63 = vmin.f32 %v567_v62, 0.0  ;;  %vm568_vm5 = vcmp.gt.f32.partialorder %v567_v62, 0.0 }
 0x5f9   :  { %v570_v0 = vmul.f32 1.442695, %v569_v63 }
 0x5fb   :  { %794 = vpow2.f32 %v570_v0 }
 0x605   :  { %v795_v1 = vpop.eup %794 }
 0x606   :  { %v589_v2 = vadd.f32 -1.0, %v795_v1 }
 0x608   :  { %v573_v3 = vsel %vm568_vm5, %v567_v62, %v589_v2 }
 0x609   :  { %574 = vst [vmem:[%s970_s7] sm:$0xff] %v573_v3 }

// kernel: run.12
= control target key start
LH: loop header
LB: loop body
LE: loop exit
PB: predicated region body
PF: predicated region fallthrough
CT: control target
= control target key end

     0   :  { %v826_v0 = vmov 0.0   ;;  %vm827_vm0 = vmmov 0   ;;  %vm68_vm1 = vcmask 1043456   ;;  %vm64_vm2 = vcmask 588800   ;;  %s1004_s0 = inlined_call_operand.vmem [shape: bf16[72,128], index: 0, kind: input, shape index: {}]   ;;  %s1005_s5 = inlined_call_operand.vmem [shape: f32[128,2], index: 5, kind: input, shape index: {}]   ;;  %s1006_s1 = inlined_call_operand.vmem [shape: bf16[8,72], index: 1, kind: input, shape index: {}]   ;;  %s1007_s4 = inlined_call_operand.vmem [shape: f32[8,8], index: 4, kind: input, shape index: {}]   ;;  %s1008_s6 = inlined_call_operand.vmem [shape: f32[2,128], index: 6, kind: input, shape index: {}]   ;;  %s1009_s2 = inlined_call_operand.vmem [shape: f32[8,1], index: 2, kind: input, shape index: {}]   ;;  %s1010_s3 = inlined_call_operand.vmem [shape: f32[8,1], index: 3, kind: input, shape index: {}]   ;;  %s1011_s7 = inlined_call_operand.vmem [shape: f32[8,128], index: 7, kind: output, shape index: {}]  }
   0x1   :  { %659 = vmatprep.subr.bf16.mxu1 %v826_v0  ;;  %v816_v1 = vld [vmem:[%s1004_s0] sm:$0xff]   ;;  %669 = vmatprep.mubr.msk.bf16.mxu1 %vm827_vm0, %v826_v0  ;;  %v817_v2 = vld [vmem:[%s1004_s0 + $0x8] sm:$0xff]   ;;  %v886_v3 = vld [vmem:[%s1004_s0 + $0x10] sm:$0xff]   ;;  %v828_v11 = vmov 0.0|0.0   ;;  %vm200_vm3 = vcmask 64512   ;;  %vm279_vm4 = vcmask 1041408  }
   0x2   :  { %708 = vmatprep.subr.mxu0 %v826_v0  ;;  %710 = vmatprep.mubr.msk.f32.mxu0 %vm827_vm0, %v826_v0  ;;  %v819_v4 = vld [vmem:[%s1004_s0 + $0x18] sm:$0xff]   ;;  %v820_v5 = vld [vmem:[%s1004_s0 + $0x20] ss:$0 sps:$4 sm:$0xff]   ;;  %v113_v8 = vld [vmem:[%s1005_s5 + $0x8] sm:$0xff]  ;;  %vm275_vm5 = vcmask 15360   ;;  %v829_v50 = vmov 0  }
   0x3   :  { %660 = vmatpush3.bf16.msra.mxu1 %v816_v1  ;;  %v70_v6 = vsel %vm68_vm1, %v820_v5, 0  ;;  %v112_v7 = vld [vmem:[%s1005_s5] sm:$0xff]  ;;  %v114_v12 = vld [vmem:[%s1005_s5 + $0x10] sm:$0xff]  ;;  %v115_v13 = vld [vmem:[%s1005_s5 + $0x18] sm:$0xff]  ;;  %815 = vset.pattern.permute.xlu0 %v829_v50  ;;  %v591_v5 = vunpack.c.l.bf16 %v886_v3 }
   0x4   :  { %661 = vmatprep.subr.bf16.mxu1 %v826_v0  ;;  %v36_v9 = vld [vmem:[%s1006_s1] sm:$0xf]  ;;  %v907_v10 = vpack.c.bf16 %v113_v8, %v112_v7  ;;  %v767_v14 = vpack.c.bf16 %v115_v13, %v114_v12  ;;  %v117_v16 = vld [vmem:[%s1005_s5 + $0x28] sm:$0xff]  ;;  %v118_v18 = vld [vmem:[%s1005_s5 + $0x30] sm:$0xff] }
   0x5   :  { %v116_v15 = vld [vmem:[%s1005_s5 + $0x20] sm:$0xff]  ;;  %v119_v19 = vld [vmem:[%s1005_s5 + $0x38] sm:$0xff]  ;;  %v121_v22 = vld [vmem:[%s1005_s5 + $0x48] sm:$0xff] }
   0x6   :  { %v770_v17 = vpack.c.bf16 %v117_v16, %v116_v15  ;;  %v773_v20 = vpack.c.bf16 %v119_v19, %v118_v18  ;;  %v120_v21 = vld [vmem:[%s1005_s5 + $0x40] sm:$0xff]  ;;  %v122_v24 = vld [vmem:[%s1005_s5 + $0x50] sm:$0xff]  ;;  %v123_v25 = vld [vmem:[%s1005_s5 + $0x58] sm:$0xff] }
   0x7   :  { %662 = vmatpush3.bf16.msra.mxu1 %v817_v2  ;;  %v776_v23 = vpack.c.bf16 %v121_v22, %v120_v21  ;;  %v779_v26 = vpack.c.bf16 %v123_v25, %v122_v24  ;;  %v124_v27 = vld [vmem:[%s1005_s5 + $0x60] sm:$0xff]  ;;  %v125_v28 = vld [vmem:[%s1005_s5 + $0x68] sm:$0xff]  ;;  %v126_v30 = vld [vmem:[%s1005_s5 + $0x70] sm:$0xff] }
   0x8   :  { %663 = vmatprep.subr.bf16.mxu1 %v826_v0  ;;  %v782_v29 = vpack.c.bf16 %v125_v28, %v124_v27  ;;  %v127_v31 = vld [vmem:[%s1005_s5 + $0x78] sm:$0xff]  ;;  %v129_v37 = vld [vmem:[%s1007_s4] sm:$0xff] }
   0x9   :  { %v785_v32 = vpack.c.bf16 %v127_v31, %v126_v30  ;;  %v128_v40 = vld [vmem:[%s1008_s6] sm:$0x3] }
   0xa   :  { %v571_v51 = vld [vmem:[%s1009_s2] sm:$0xff] }
   0xb   :  { %664 = vmatpush3.bf16.msra.mxu1 %v886_v3  ;;  %574 = vperm.xlu0 %815, %v571_v51   ;;  %v578_v52 = vld [vmem:[%s1010_s3] sm:$0xff] }
   0xc   :  { %665 = vmatprep.subr.bf16.mxu1 %v826_v0 }
   0xf   :  { %666 = vmatpush3.bf16.msra.mxu1 %v819_v4  ;;  %581 = vperm.xlu0 %815, %v578_v52  }
  0x10   :  { %667 = vmatprep.subr.bf16.mxu1 %v826_v0 }
  0x13   :  { %668 = vmatpush3.bf16.msra.mxu1 %v70_v6 }
  0x14   :  { %763 = vmatprep.subr.bf16.mxu1 %v828_v11 }
  0x16   :  { %670 = vmatmul.mubr.msk.bf16.vlgmr.msra.gmra.mrb[0].mxu1 %vm64_vm2, %v36_v9 }
  0x17   :  { %765 = vmatpush3.bf16.msra.mxu1 %v907_v10  ;;  %705 = vmatprep.mubr.msk.f32.mxu1 %vm827_vm0, %v826_v0 }
  0x18   :  { %766 = vmatprep.subr.bf16.mxu1 %v828_v11 }
  0x1b   :  { %768 = vmatpush3.bf16.msra.mxu1 %v767_v14 }
  0x1c   :  { %769 = vmatprep.subr.bf16.mxu1 %v828_v11 }
  0x1f   :  { %771 = vmatpush3.bf16.msra.mxu1 %v770_v17 }
  0x20   :  { %772 = vmatprep.subr.bf16.mxu1 %v828_v11 }
  0x23   :  { %774 = vmatpush3.bf16.msra.mxu1 %v773_v20 }
  0x24   :  { %775 = vmatprep.subr.bf16.mxu1 %v828_v11 }
  0x27   :  { %777 = vmatpush3.bf16.msra.mxu1 %v776_v23 }
  0x28   :  { %778 = vmatprep.subr.bf16.mxu1 %v828_v11 }
  0x2b   :  { %780 = vmatpush3.bf16.msra.mxu1 %v779_v26 }
  0x2c   :  { %781 = vmatprep.subr.bf16.mxu1 %v828_v11 }
  0x2f   :  { %783 = vmatpush3.bf16.msra.mxu1 %v782_v29 }
  0x30   :  { %784 = vmatprep.subr.bf16.mxu1 %v828_v11 }
  0x33   :  { %786 = vmatpush3.bf16.msra.mxu1 %v785_v32 }
  0x8a   :  { %v575_v59 = vpop.permute.xlu0 %574 }
  0x8e   :  { %v582_v63 = vpop.permute.xlu0 %581 }
  0xe9   :  { %v106_v33 = vpop.f32.mrb[0].mxu1 }
  0xea   :  { %v671_v34 = vpop.f32.mrb[1].mxu1  ;;  %706 = vmatmul.mubr.f32.vlgmr.msra.gmra.mrb[4].mxu1 %v106_v33 }
  0xeb   :  { %v109_v35 = vpop.f32.mrb[2].mxu1 }
  0xec   :  { %v672_v36 = vpop.f32.mrb[3].mxu1 }
 0x1bd   :  { %v196_v38 = vpop.f32.mrb[4].mxu1 }
 0x1be   :  { %v707_v39 = vpop.f32.mrb[5].mxu1  ;;  %709 = vmatpush3.msra.mxu0 %v196_v38 }
 0x1bf   :  { %711 = vmatmul.mubr.msk.f32.vlgmr.msra.gmra.mrb[0].mxu0 %vm200_vm3, %v129_v37  ;;  %713 = vmatprep.subr.mxu0 %v826_v0 }
 0x1c0   :  { %715 = vmatprep.mubr.msk.f32.mxu0 %vm827_vm0, %v826_v0  ;;  %714 = vmatpush3.msk.msra.mxu0 %vm279_vm4, %v128_v40 }
 0x1c1   :  { %787 = vmatprep.subr.bf16.mxu0 %v828_v11 }
 0x292   :  { %v270_v41 = vpop.f32.mrb[0].mxu0 }
 0x293   :  { %v274_v42 = vmul.f32 0.00390625, %v270_v41  ;;  %v712_v43 = vpop.f32.mrb[1].mxu0 }
 0x295   :  { %716 = vmatmul.mubr.msk.f32.vlgmr.msra.gmra.mrb[2].mxu0 %vm275_vm5, %v274_v42 }
 0x296   :  { %789 = vmatpush3.bf16.msra.mxu0 %v907_v10  ;;  %750 = vmatprep.mubr.msk.f32.mxu0 %vm827_vm0, %v826_v0 }
 0x297   :  { %790 = vmatprep.subr.bf16.mxu0 %v828_v11 }
 0x29a   :  { %792 = vmatpush3.bf16.msra.mxu0 %v767_v14 }
 0x29b   :  { %793 = vmatprep.subr.bf16.mxu0 %v828_v11 }
 0x29e   :  { %795 = vmatpush3.bf16.msra.mxu0 %v770_v17 }
 0x29f   :  { %796 = vmatprep.subr.bf16.mxu0 %v828_v11 }
 0x2a2   :  { %798 = vmatpush3.bf16.msra.mxu0 %v773_v20 }
 0x2a3   :  { %799 = vmatprep.subr.bf16.mxu0 %v828_v11 }
 0x2a6   :  { %801 = vmatpush3.bf16.msra.mxu0 %v776_v23 }
 0x2a7   :  { %802 = vmatprep.subr.bf16.mxu0 %v828_v11 }
 0x2aa   :  { %804 = vmatpush3.bf16.msra.mxu0 %v779_v26 }
 0x2ab   :  { %805 = vmatprep.subr.bf16.mxu0 %v828_v11 }
 0x2ae   :  { %807 = vmatpush3.bf16.msra.mxu0 %v782_v29 }
 0x2af   :  { %808 = vmatprep.subr.bf16.mxu0 %v828_v11 }
 0x2b2   :  { %810 = vmatpush3.bf16.msra.mxu0 %v785_v32 }
 0x2b3   :  { %753 = vmatprep.subr.mxu0 %v826_v0 }
 0x368   :  { %v349_v44 = vpop.f32.mrb[2].mxu0 }
 0x369   :  { %v353_v45 = vsub.f32 %v106_v33, %v349_v44  ;;  %v717_v46 = vpop.f32.mrb[3].mxu0 }
 0x36b   :  { %v354_v47 = vmul.f32 %v353_v45, %v353_v45 }
 0x36d   :  { %751 = vmatmul.mubr.f32.vlgmr.msra.gmra.mrb[4].mxu0 %v354_v47 }
 0x36e   :  { %755 = vmatprep.mubr.msk.f32.mxu0 %vm827_vm0, %v826_v0 }
 0x440   :  { %v421_v48 = vpop.f32.mrb[4].mxu0 }
 0x441   :  { %v752_v49 = vpop.f32.mrb[5].mxu0  ;;  %754 = vmatpush3.msra.mxu0 %v421_v48 }
 0x442   :  { %756 = vmatmul.mubr.msk.f32.vlgmr.msra.gmra.mrb[6].mxu0 %vm200_vm3, %v129_v37  ;;  %758 = vmatprep.subr.mxu0 %v826_v0 }
 0x443   :  { %759 = vmatpush3.msk.msra.mxu0 %vm279_vm4, %v128_v40  ;;  %760 = vmatprep.mubr.msk.f32.mxu0 %vm827_vm0, %v826_v0 }
 0x515   :  { %v491_v53 = vpop.f32.mrb[6].mxu0 }
 0x516   :  { %v495_v54 = vmul.f32 0.00390625, %v491_v53  ;;  %v757_v55 = vpop.f32.mrb[7].mxu0 }
 0x518   :  { %761 = vmatmul.mubr.msk.f32.vlgmr.msra.gmra.mrb[8].mxu0 %vm275_vm5, %v495_v54 }
 0x5eb   :  { %v565_v56 = vpop.f32.mrb[8].mxu0 }
 0x5ec   :  { %v566_v57 = vadd.f32 1e-05, %v565_v56  ;;  %v762_v58 = vpop.f32.mrb[9].mxu0 }
 0x5ee   :  { %822 = vrsqrt.f32 %v566_v57 }
 0x5f8   :  { %v823_v60 = vpop.eup %822 }
 0x5f9   :  { %v570_v61 = vmul.f32 %v823_v60, %v353_v45 }
 0x5fb   :  { %v577_v62 = vmul.f32 %v575_v59, %v570_v61 }
 0x5fd   :  { %v584_v0 = vadd.f32 %v582_v63, %v577_v62 }
 0x5ff   :  { %v586_v1 = vmin.f32 %v584_v0, 0.0  ;;  %vm585_vm6 = vcmp.gt.f32.partialorder %v584_v0, 0.0 }
 0x601   :  { %v587_v2 = vmul.f32 1.442695, %v586_v1 }
 0x603   :  { %824 = vpow2.f32 %v587_v2 }
 0x60d   :  { %v825_v4 = vpop.eup %824 }
 0x60e   :  { %v610_v6 = vadd.f32 -1.0, %v825_v4 }
 0x610   :  { %v590_v7 = vsel %vm585_vm6, %v584_v0, %v610_v6 }
 0x611   :  { %v592_v8 = vadd.f32 %v591_v5, %v590_v7 }
 0x613   :  { %593 = vst [vmem:[%s1011_s7] sm:$0xff] %v592_v8 }

// kernel: run.13
= control target key start
LH: loop header
LB: loop body
LE: loop exit
PB: predicated region body
PF: predicated region fallthrough
CT: control target
= control target key end

     0   :  { %v829_v0 = vmov 0.0   ;;  %vm830_vm0 = vmmov 0   ;;  %vm74_vm1 = vcmask 1043456   ;;  %vm70_vm2 = vcmask 588800   ;;  %s947_s0 = inlined_call_operand.vmem [shape: bf16[72,32], index: 0, kind: input, shape index: {}]   ;;  %s948_s5 = inlined_call_operand.vmem [shape: f32[32,2], index: 5, kind: input, shape index: {}]   ;;  %s949_s1 = inlined_call_operand.vmem [shape: bf16[16,72], index: 1, kind: input, shape index: {}]   ;;  %s950_s4 = inlined_call_operand.vmem [shape: f32[16,16], index: 4, kind: input, shape index: {}]   ;;  %s951_s6 = inlined_call_operand.vmem [shape: f32[2,32], index: 6, kind: input, shape index: {}]   ;;  %s952_s2 = inlined_call_operand.vmem [shape: f32[16,1], index: 2, kind: input, shape index: {}]   ;;  %s953_s3 = inlined_call_operand.vmem [shape: f32[16,1], index: 3, kind: input, shape index: {}]   ;;  %s954_s7 = inlined_call_operand.vmem [shape: f32[16,32], index: 7, kind: output, shape index: {}]  }
   0x1   :  { %726 = vmatprep.subr.bf16.mxu0 %v829_v0  ;;  %v815_v1 = vld [vmem:[%s947_s0] sm:$0xff]   ;;  %736 = vmatprep.mubr.msk.bf16.mxu0 %vm830_vm0, %v829_v0  ;;  %v816_v2 = vld [vmem:[%s947_s0 + $0x8] sm:$0xff]   ;;  %v817_v3 = vld [vmem:[%s947_s0 + $0x10] sm:$0xff]   ;;  %vm126_vm3 = vcmask 261120   ;;  %vm208_vm4 = vcmask 130048   ;;  %vm299_vm5 = vcmask 1041408  }
   0x2   :  { %727 = vmatpush3.bf16.msra.mxu0 %v815_v1  ;;  %v119_v4 = vld [vmem:[%s948_s5] sm:$0xff]  ;;  %v120_v5 = vld [vmem:[%s948_s5 + $0x8] sm:$0xff]  ;;  %v121_v6 = vld [vmem:[%s948_s5 + $0x10] sm:$0xff]  ;;  %vm292_vm6 = vcmask 15360   ;;  %v831_v37 = vmov 0  }
   0x3   :  { %728 = vmatprep.subr.bf16.mxu0 %v829_v0  ;;  %v122_v7 = vld [vmem:[%s948_s5 + $0x18] sm:$0xff]  ;;  %v786_v8 = vpack.c.bf16 %v120_v5, %v119_v4  ;;  %v819_v11 = vld [vmem:[%s947_s0 + $0x20] ss:$0 sps:$4 sm:$0xff]   ;;  %v125_v22 = vld [vmem:[%s950_s4 + $0x8] sm:$0xff]  ;;  %813 = vset.pattern.permute.xlu0 %v831_v37 }
   0x4   :  { %v790_v9 = vpack.c.bf16 %v122_v7, %v121_v6  ;;  %v818_v10 = vld [vmem:[%s947_s0 + $0x18] sm:$0xff]   ;;  %v76_v12 = vsel %vm74_vm1, %v819_v11, 0  ;;  %v820_v13 = vld [vmem:[%s949_s1] sm:$0xff]   ;;  %814 = vset.pattern.permute.xlu1 %v831_v37  ;;  %v626_v40 = vld [vmem:[%s952_s2 + $0x8] sm:$0xff] }
   0x5   :  { %787 = vmatprep.subr.bf16.mxu1 %v786_v8  ;;  %v124_v18 = vld [vmem:[%s950_s4] sm:$0xff]  ;;  %v640_v41 = vld [vmem:[%s953_s3 + $0x8] sm:$0xff] }
   0x6   :  { %729 = vmatpush3.bf16.msra.mxu0 %v816_v2  ;;  %789 = vmatpush3.bf16.msra.mxu1 %v786_v8  ;;  %v123_v23 = vld [vmem:[%s951_s6] sm:$0x3] }
   0x7   :  { %730 = vmatprep.subr.bf16.mxu0 %v829_v0  ;;  %791 = vmatprep.subr.bf16.mxu1 %v790_v9  ;;  %v625_v38 = vld [vmem:[%s952_s2] sm:$0xff] }
   0x8   :  { %v639_v39 = vld [vmem:[%s953_s3] sm:$0xff]  ;;  %629 = vperm.xlu0 %813, %v625_v38  }
   0x9   :  { %643 = vperm.xlu1 %814, %v639_v39  }
   0xa   :  { %731 = vmatpush3.bf16.msra.mxu0 %v817_v3  ;;  %793 = vmatpush3.bf16.msra.mxu1 %v790_v9 }
   0xb   :  { %732 = vmatprep.subr.bf16.mxu0 %v829_v0 }
   0xc   :  { %634 = vperm.xlu0 %813, %v626_v40  }
   0xd   :  { %648 = vperm.xlu1 %814, %v640_v41  }
   0xe   :  { %733 = vmatpush3.bf16.msra.mxu0 %v818_v10 }
   0xf   :  { %734 = vmatprep.subr.bf16.mxu0 %v829_v0 }
  0x12   :  { %735 = vmatpush3.bf16.msra.mxu0 %v76_v12 }
  0x15   :  { %737 = vmatmul.mubr.msk.bf16.vlgmr.msra.gmra.mrb[0].mxu0 %vm70_vm2, %v820_v13 }
  0x16   :  { %778 = vmatprep.mubr.msk.f32.mxu0 %vm208_vm4, %v124_v18 }
  0x87   :  { %v630_v50 = vpop.permute.xlu0 %629 }
  0x88   :  { %v644_v51 = vpop.permute.xlu1 %643 }
  0x8b   :  { %v635_v56 = vpop.permute.xlu0 %634 }
  0x8c   :  { %v649_v59 = vpop.permute.xlu1 %648 }
  0xe8   :  { %v112_v14 = vpop.f32.mrb[0].mxu0 }
  0xe9   :  { %v738_v15 = vpop.f32.mrb[1].mxu0  ;;  %748 = vmatprep.mubr.msk.f32.mxu1 %vm126_vm3, %v112_v14 }
  0xea   :  { %v115_v16 = vpop.f32.mrb[2].mxu0 }
  0xeb   :  { %v739_v17 = vpop.f32.mrb[3].mxu0  ;;  %749 = vmatmul.mubr.msk.f32.vlgmr.msra.gmra.mrb[0].mxu1 %vm126_vm3, %v115_v16 }
  0xec   :  { %755 = vmatprep.mubr.msk.f32.mxu1 %vm208_vm4, %v124_v18 }
 0x1be   :  { %v750_v19 = vpop.f32.mrb[0].mxu1 }
 0x1bf   :  { %v199_v20 = vpop.f32.mrb[1].mxu1 }
 0x1c0   :  { %v794_v21 = vpack.c.bf16 %v750_v19, %v199_v20 }
 0x1c2   :  { %795 = vmatprep.subr.bf16.mxu1 %v794_v21 }
 0x1c3   :  { %797 = vmatpush3.bf16.msra.mxu1 %v794_v21 }
 0x1c4   :  { %758 = vmatprep.subr.msk.mxu1 %vm299_vm5, %v123_v23 }
 0x1c6   :  { %756 = vmatmul.mubr.msk.f32.vlgmr.msra.gmra.mrb[2].mxu1 %vm208_vm4, %v125_v22 }
 0x1c7   :  { %759 = vmatpush3.msk.msra.mxu1 %vm299_vm5, %v123_v23 }
 0x1c8   :  { %799 = vmatprep.subr.bf16.mxu1 %v786_v8 }
 0x299   :  { %v757_v24 = vpop.f32.mrb[2].mxu1 }
 0x29a   :  { %v281_v25 = vpop.f32.mrb[3].mxu1  ;;  %v291_v27 = vmul.f32 0.015625, %v757_v24 }
 0x29b   :  { %v290_v26 = vmul.f32 0.015625, %v281_v25 }
 0x29d   :  { %760 = vmatprep.mubr.msk.f32.mxu1 %vm292_vm6, %v290_v26 }
 0x29e   :  { %761 = vmatmul.mubr.msk.f32.vlgmr.msra.gmra.mrb[4].mxu1 %vm292_vm6, %v291_v27 }
 0x29f   :  { %801 = vmatpush3.bf16.msra.mxu1 %v786_v8 }
 0x2a0   :  { %803 = vmatprep.subr.bf16.mxu1 %v790_v9 }
 0x2a3   :  { %805 = vmatpush3.bf16.msra.mxu1 %v790_v9 }
 0x2a4   :  { %781 = vmatprep.subr.msk.mxu1 %vm299_vm5, %v123_v23 }
 0x371   :  { %v762_v28 = vpop.f32.mrb[4].mxu1 }
 0x372   :  { %v379_v29 = vsub.f32 %v115_v16, %v762_v28  ;;  %v369_v30 = vpop.f32.mrb[5].mxu1 }
 0x373   :  { %v378_v31 = vsub.f32 %v112_v14, %v369_v30 }
 0x374   :  { %v381_v33 = vmul.f32 %v379_v29, %v379_v29 }
 0x375   :  { %v380_v32 = vmul.f32 %v378_v31, %v378_v31 }
 0x377   :  { %771 = vmatprep.mubr.msk.f32.mxu1 %vm126_vm3, %v380_v32 }
 0x378   :  { %772 = vmatmul.mubr.msk.f32.vlgmr.msra.gmra.mrb[6].mxu1 %vm126_vm3, %v381_v33 }
 0x379   :  { %782 = vmatpush3.msk.msra.mxu1 %vm299_vm5, %v123_v23 }
 0x44b   :  { %v773_v34 = vpop.f32.mrb[6].mxu1 }
 0x44c   :  { %v454_v35 = vpop.f32.mrb[7].mxu1 }
 0x44d   :  { %v806_v36 = vpack.c.bf16 %v773_v34, %v454_v35 }
 0x44f   :  { %807 = vmatprep.subr.bf16.mxu0 %v806_v36 }
 0x450   :  { %809 = vmatpush3.bf16.msra.mxu0 %v806_v36 }
 0x453   :  { %779 = vmatmul.mubr.msk.f32.vlgmr.msra.gmra.mrb[4].mxu0 %vm208_vm4, %v125_v22 }
 0x526   :  { %v780_v42 = vpop.f32.mrb[4].mxu0 }
 0x527   :  { %v529_v43 = vpop.f32.mrb[5].mxu0  ;;  %v539_v45 = vmul.f32 0.015625, %v780_v42 }
 0x528   :  { %v538_v44 = vmul.f32 0.015625, %v529_v43 }
 0x52a   :  { %783 = vmatprep.mubr.msk.f32.mxu1 %vm292_vm6, %v538_v44 }
 0x52b   :  { %784 = vmatmul.mubr.msk.f32.vlgmr.msra.gmra.mrb[8].mxu1 %vm292_vm6, %v539_v45 }
 0x5fe   :  { %v785_v46 = vpop.f32.mrb[8].mxu1 }
 0x5ff   :  { %v618_v47 = vadd.f32 1e-05, %v785_v46  ;;  %v612_v48 = vpop.f32.mrb[9].mxu1 }
 0x600   :  { %v613_v49 = vadd.f32 1e-05, %v612_v48 }
 0x601   :  { %821 = vrsqrt.f32 %v618_v47 }
 0x602   :  { %823 = vrsqrt.f32 %v613_v49 }
 0x60b   :  { %v822_v52 = vpop.eup %821 }
 0x60c   :  { %v824_v53 = vpop.eup %823  ;;  %v624_v54 = vmul.f32 %v822_v52, %v379_v29 }
 0x60d   :  { %v623_v55 = vmul.f32 %v824_v53, %v378_v31 }
 0x60e   :  { %v638_v57 = vmul.f32 %v635_v56, %v624_v54 }
 0x60f   :  { %v637_v58 = vmul.f32 %v630_v50, %v623_v55 }
 0x610   :  { %v652_v60 = vadd.f32 %v649_v59, %v638_v57 }
 0x611   :  { %v651_v61 = vadd.f32 %v644_v51, %v637_v58 }
 0x612   :  { %v656_v62 = vmin.f32 %v652_v60, 0.0  ;;  %vm654_vm7 = vcmp.gt.f32.partialorder %v652_v60, 0.0 }
 0x613   :  { %v655_v63 = vmin.f32 %v651_v61, 0.0  ;;  %vm653_vm8 = vcmp.gt.f32.partialorder %v651_v61, 0.0 }
 0x614   :  { %v659_v0 = vmul.f32 1.442695, %v656_v62 }
 0x615   :  { %v657_v1 = vmul.f32 1.442695, %v655_v63 }
 0x616   :  { %825 = vpow2.f32 %v659_v0 }
 0x617   :  { %827 = vpow2.f32 %v657_v1 }
 0x620   :  { %v826_v2 = vpop.eup %825 }
 0x621   :  { %v828_v3 = vpop.eup %827  ;;  %v693_v4 = vadd.f32 -1.0, %v826_v2 }
 0x622   :  { %v692_v5 = vadd.f32 -1.0, %v828_v3 }
 0x623   :  { %v664_v6 = vsel %vm654_vm7, %v652_v60, %v693_v4 }
 0x624   :  { %v663_v7 = vsel %vm653_vm8, %v651_v61, %v692_v5  ;;  %666 = vst.msk [vmem:[%s954_s7 + $0x8] sm:$0xff] %vm126_vm3, %v664_v6 }
 0x625   :  { %665 = vst.msk [vmem:[%s954_s7] sm:$0xff] %vm126_vm3, %v663_v7 }

// kernel: run.14
= control target key start
LH: loop header
LB: loop body
LE: loop exit
PB: predicated region body
PF: predicated region fallthrough
CT: control target
= control target key end

     0   :  { %16 = vsyncpa [#allocation3], 0  ;;  %s934_s0 = inlined_call_operand.vmem [shape: f32[2,256], index: 0, kind: input, shape index: {}]   ;;  %s935_s1 = inlined_call_operand.vmem [shape: f32[256,32], index: 1, kind: input, shape index: {}]   ;;  %s936_s2 = inlined_call_operand.vmem [shape: f32[1,32], index: 2, kind: input, shape index: {}, may-alias: {2,4}]   ;;  %s937_s3 = inlined_call_operand.vmem [shape: f32[256,32], index: 3, kind: input, shape index: {}]   ;;  %s938_s4 = inlined_call_operand.vmem [shape: f32[1,32], index: 4, kind: input, shape index: {}, may-alias: {2,4}]   ;;  %s939_s5 = inlined_call_operand.vmem [shape: f32[2,32], index: 5, kind: input, shape index: {}]   ;;  %s940_s6 = inlined_call_operand.vmem [shape: f32[32,256], index: 6, kind: input, shape index: {}]   ;;  %s941_s7 = inlined_call_operand.vmem [shape: f32[1,256], index: 7, kind: input, shape index: {}]   ;;  %s942_s8 = inlined_call_operand.hbm [shape: f32[2,32], index: 8, kind: output, shape index: {0}]   ;;  %s943_s9 = inlined_call_operand.hbm [shape: f32[2,32], index: 9, kind: output, shape index: {1}]   ;;  %s944_s10 = inlined_call_operand.vmem [shape: f32[2,256], index: 10, kind: output, shape index: {2}]  }
   0x1   :  { %v171_v0 = vld [vmem:[%s937_s3 + $0x80] sm:$0xff]  ;;  %v172_v1 = vld [vmem:[%s937_s3 + $0x88] sm:$0xff]  ;;  %v173_v5 = vld [vmem:[%s937_s3 + $0x90] sm:$0xff] }
   0x2   :  { %v155_v2 = vld [vmem:[%s937_s3] sm:$0xff]  ;;  %v519_v3 = vpack.c.bf16 %v172_v1, %v171_v0  ;;  %v156_v4 = vld [vmem:[%s937_s3 + $0x8] sm:$0xff]  ;;  %v174_v6 = vld [vmem:[%s937_s3 + $0x98] sm:$0xff] }
   0x3   :  { %v521_v7 = vpack.c.bf16 %v156_v4, %v155_v2  ;;  %v523_v8 = vpack.c.bf16 %v174_v6, %v173_v5  ;;  %v157_v9 = vld [vmem:[%s937_s3 + $0x10] sm:$0xff]  ;;  %v158_v10 = vld [vmem:[%s937_s3 + $0x18] sm:$0xff]  ;;  %v175_v11 = vld [vmem:[%s937_s3 + $0xa0] sm:$0xff] }
   0x4   :  { %520 = vmatprep.subr.bf16.mxu1 %v519_v3  ;;  %v176_v12 = vld [vmem:[%s937_s3 + $0xa8] sm:$0xff]  ;;  %v525_v13 = vpack.c.bf16 %v158_v10, %v157_v9  ;;  %v159_v14 = vld [vmem:[%s937_s3 + $0x20] sm:$0xff]  ;;  %v177_v19 = vld [vmem:[%s937_s3 + $0xb0] sm:$0xff] }
   0x5   :  { %522 = vmatpush3.bf16.msra.mxu1 %v521_v7  ;;  %v527_v15 = vpack.c.bf16 %v176_v12, %v175_v11  ;;  %v160_v16 = vld [vmem:[%s937_s3 + $0x28] sm:$0xff]  ;;  %v51_v17 = vld [vmem:[%s935_s1 + $0x80] sm:$0xff]  ;;  %v178_v20 = vld [vmem:[%s937_s3 + $0xb8] sm:$0xff] }
   0x6   :  { %524 = vmatprep.subr.bf16.mxu1 %v523_v8  ;;  %v52_v18 = vld [vmem:[%s935_s1 + $0x88] sm:$0xff]  ;;  %v35_v22 = vld [vmem:[%s935_s1] sm:$0xff]  ;;  %v529_v24 = vpack.c.bf16 %v160_v16, %v159_v14  ;;  %v161_v25 = vld [vmem:[%s937_s3 + $0x30] sm:$0xff]  ;;  %v531_v29 = vpack.c.bf16 %v178_v20, %v177_v19 }
   0x7   :  { %v487_v21 = vpack.c.bf16 %v52_v18, %v51_v17  ;;  %v36_v23 = vld [vmem:[%s935_s1 + $0x8] sm:$0xff]  ;;  %v53_v27 = vld [vmem:[%s935_s1 + $0x90] sm:$0xff]  ;;  %v54_v28 = vld [vmem:[%s935_s1 + $0x98] sm:$0xff] }
   0x8   :  { %v489_v26 = vpack.c.bf16 %v36_v23, %v35_v22  ;;  %v162_v30 = vld [vmem:[%s937_s3 + $0x38] sm:$0xff]  ;;  %v491_v31 = vpack.c.bf16 %v54_v28, %v53_v27  ;;  %v37_v32 = vld [vmem:[%s935_s1 + $0x10] sm:$0xff]  ;;  %v179_v34 = vld [vmem:[%s937_s3 + $0xc0] sm:$0xff] }
   0x9   :  { %526 = vmatpush3.bf16.msra.mxu1 %v525_v13  ;;  %488 = vmatprep.subr.bf16.mxu0 %v487_v21  ;;  %v38_v33 = vld [vmem:[%s935_s1 + $0x18] sm:$0xff]  ;;  %v180_v35 = vld [vmem:[%s937_s3 + $0xc8] sm:$0xff]  ;;  %v55_v37 = vld [vmem:[%s935_s1 + $0xa0] sm:$0xff]  ;;  %v533_v39 = vpack.c.bf16 %v162_v30, %v161_v25 }
   0xa   :  { %528 = vmatprep.subr.bf16.mxu1 %v527_v15  ;;  %490 = vmatpush3.bf16.msra.mxu0 %v489_v26  ;;  %v493_v36 = vpack.c.bf16 %v38_v33, %v37_v32  ;;  %v56_v38 = vld [vmem:[%s935_s1 + $0xa8] sm:$0xff]  ;;  %v163_v40 = vld [vmem:[%s937_s3 + $0x40] sm:$0xff]  ;;  %v535_v44 = vpack.c.bf16 %v180_v35, %v179_v34  ;;  %v57_v46 = vld [vmem:[%s935_s1 + $0xb0] sm:$0xff] }
   0xb   :  { %492 = vmatprep.subr.bf16.mxu0 %v491_v31  ;;  %v495_v41 = vpack.c.bf16 %v56_v38, %v55_v37  ;;  %v39_v42 = vld [vmem:[%s935_s1 + $0x20] sm:$0xff]  ;;  %v40_v43 = vld [vmem:[%s935_s1 + $0x28] sm:$0xff]  ;;  %v58_v47 = vld [vmem:[%s935_s1 + $0xb8] sm:$0xff] }
   0xc   :  { %v164_v45 = vld [vmem:[%s937_s3 + $0x48] sm:$0xff]  ;;  %v181_v48 = vld [vmem:[%s937_s3 + $0xd0] sm:$0xff]  ;;  %v182_v49 = vld [vmem:[%s937_s3 + $0xd8] sm:$0xff]  ;;  %v497_v50 = vpack.c.bf16 %v40_v43, %v39_v42  ;;  %v499_v51 = vpack.c.bf16 %v58_v47, %v57_v46 }
   0xd   :  { %530 = vmatpush3.bf16.msra.mxu1 %v529_v24  ;;  %v41_v52 = vld [vmem:[%s935_s1 + $0x30] sm:$0xff]  ;;  %v42_v53 = vld [vmem:[%s935_s1 + $0x38] sm:$0xff]  ;;  %v537_v54 = vpack.c.bf16 %v164_v45, %v163_v40  ;;  %v787_v55 = vld.sshfl [vmem:[%s934_s0] sm:$0x33 pattern:$0x76325410]  ;;  %v539_v58 = vpack.c.bf16 %v182_v49, %v181_v48 }
   0xe   :  { %532 = vmatprep.subr.bf16.mxu1 %v531_v29  ;;  %494 = vmatpush3.bf16.msra.mxu0 %v493_v36  ;;  %v59_v56 = vld [vmem:[%s935_s1 + $0xc0] sm:$0xff]  ;;  %v60_v57 = vld [vmem:[%s935_s1 + $0xc8] sm:$0xff]  ;;  %v165_v59 = vld [vmem:[%s937_s3 + $0x50] sm:$0xff]  ;;  %v82_v61 = vcombine.high %v787_v55, %v787_v55  ;;  %v501_v0 = vpack.c.bf16 %v42_v53, %v41_v52 }
   0xf   :  { %496 = vmatprep.subr.bf16.mxu0 %v495_v41  ;;  %v166_v60 = vld [vmem:[%s937_s3 + $0x58] sm:$0xff]  ;;  %v183_v62 = vld [vmem:[%s937_s3 + $0xe0] sm:$0xff]  ;;  %v184_v63 = vld [vmem:[%s937_s3 + $0xe8] sm:$0xff]  ;;  %v503_v1 = vpack.c.bf16 %v60_v57, %v59_v56 }
  0x10   :  { %258 = vmatprep.mubr.f32.mxu1 %v82_v61  ;;  %v43_v2 = vld [vmem:[%s935_s1 + $0x40] sm:$0xff]  ;;  %v44_v3 = vld [vmem:[%s935_s1 + $0x48] sm:$0xff]  ;;  %v541_v4 = vpack.c.bf16 %v166_v60, %v165_v59  ;;  %v61_v5 = vld [vmem:[%s935_s1 + $0xd0] sm:$0xff]  ;;  %149 = vmatprep.mubr.f32.mxu0 %v82_v61  ;;  %v543_v7 = vpack.c.bf16 %v184_v63, %v183_v62 }
  0x11   :  { %534 = vmatpush3.bf16.msra.mxu1 %v533_v39  ;;  %v62_v6 = vld [vmem:[%s935_s1 + $0xd8] sm:$0xff]  ;;  %v167_v8 = vld [vmem:[%s937_s3 + $0x60] sm:$0xff]  ;;  %v168_v9 = vld [vmem:[%s937_s3 + $0x68] sm:$0xff] }
  0x12   :  { %536 = vmatprep.subr.bf16.mxu1 %v535_v44  ;;  %498 = vmatpush3.bf16.msra.mxu0 %v497_v50 }
  0x13   :  { %500 = vmatprep.subr.bf16.mxu0 %v499_v51 }
  0x15   :  { %538 = vmatpush3.bf16.msra.mxu1 %v537_v54 }
  0x16   :  { %540 = vmatprep.subr.bf16.mxu1 %v539_v58 }
  0x17   :  { %17 = vsyncpa [#allocation5], 0  ;;  %v185_v10 = vld [vmem:[%s937_s3 + $0xf0] sm:$0xff]  ;;  %v186_v11 = vld [vmem:[%s937_s3 + $0xf8] sm:$0xff]  ;;  %502 = vmatpush3.bf16.msra.mxu0 %v501_v0  ;;  %v505_v12 = vpack.c.bf16 %v44_v3, %v43_v2  ;;  %v507_v13 = vpack.c.bf16 %v62_v6, %v61_v5  ;;  %v545_v16 = vpack.c.bf16 %v168_v9, %v167_v8  ;;  %v612_v46 = vmov 0.0   ;;  %s614_s0 = smov [#allocation4]  }
  0x18   :  { %504 = vmatprep.subr.bf16.mxu0 %v503_v1  ;;  %v45_v14 = vld [vmem:[%s935_s1 + $0x50] sm:$0xff]  ;;  %v46_v15 = vld [vmem:[%s935_s1 + $0x58] sm:$0xff]  ;;  %v63_v17 = vld [vmem:[%s935_s1 + $0xe0] sm:$0xff]  ;;  %v547_v19 = vpack.c.bf16 %v186_v11, %v185_v10  ;;  %vm270_vm0 = vcmask 254976   ;;  %vm293_vm1 = vcmask 261120   ;;  %s396_s19 = sshll.u32 %s614_s0, 4  ;;  %s397_s19 = int_to_ptr.vmem [resolvable:$true] %s396_s19 }
  0x19   :  { %542 = vmatpush3.bf16.msra.mxu1 %v541_v4  ;;  %v64_v18 = vld [vmem:[%s935_s1 + $0xe8] sm:$0xff]  ;;  %v169_v20 = vld [vmem:[%s937_s3 + $0x70] sm:$0xff]  ;;  %v170_v21 = vld [vmem:[%s937_s3 + $0x78] sm:$0xff]  ;;  %v509_v22 = vpack.c.bf16 %v46_v15, %v45_v14 }
  0x1a   :  { %544 = vmatprep.subr.bf16.mxu1 %v543_v7  ;;  %v511_v23 = vpack.c.bf16 %v64_v18, %v63_v17  ;;  %v47_v24 = vld [vmem:[%s935_s1 + $0x60] sm:$0xff]  ;;  %v48_v25 = vld [vmem:[%s935_s1 + $0x68] sm:$0xff]  ;;  %v549_v26 = vpack.c.bf16 %v170_v21, %v169_v20  ;;  %v65_v27 = vld [vmem:[%s935_s1 + $0xf0] sm:$0xff] }
  0x1b   :  { %506 = vmatpush3.bf16.msra.mxu0 %v505_v12  ;;  %v66_v28 = vld [vmem:[%s935_s1 + $0xf8] sm:$0xff]  ;;  %v513_v29 = vpack.c.bf16 %v48_v25, %v47_v24  ;;  %v49_v31 = vld [vmem:[%s935_s1 + $0x70] sm:$0xff]  ;;  %v274_v34 = vld [vmem:[%s940_s6 + $0x8] sm:$0xff] }
  0x1c   :  { %508 = vmatprep.subr.bf16.mxu0 %v507_v13  ;;  %v515_v30 = vpack.c.bf16 %v66_v28, %v65_v27  ;;  %v50_v32 = vld [vmem:[%s935_s1 + $0x78] sm:$0xff]  ;;  %v273_v37 = vld [vmem:[%s940_s6] sm:$0xff]  ;;  %v275_v38 = vld [vmem:[%s940_s6 + $0x10] sm:$0xff] }
  0x1d   :  { %546 = vmatpush3.bf16.msra.mxu1 %v545_v16  ;;  %v517_v33 = vpack.c.bf16 %v50_v32, %v49_v31  ;;  %v276_v35 = vld [vmem:[%s940_s6 + $0x18] sm:$0xff]  ;;  %v553_v39 = vpack.c.bf16 %v275_v38, %v273_v37  ;;  %v278_v40 = vld [vmem:[%s940_s6 + $0x28] sm:$0xff]  ;;  %v277_v43 = vld [vmem:[%s940_s6 + $0x20] sm:$0xff] }
  0x1e   :  { %548 = vmatprep.subr.bf16.mxu1 %v547_v19  ;;  %v551_v36 = vpack.c.bf16 %v276_v35, %v274_v34  ;;  %v280_v41 = vld [vmem:[%s940_s6 + $0x38] sm:$0xff]  ;;  %v279_v44 = vld [vmem:[%s940_s6 + $0x30] sm:$0xff]  ;;  %v414_v48 = vld [vmem:[%s938_s4] ss:$0 sm:$0xff]  ;;  %s613_s4 = smov [#allocation2]  }
  0x1f   :  { %510 = vmatpush3.bf16.msra.mxu0 %v509_v22  ;;  %v555_v42 = vpack.c.bf16 %v280_v41, %v278_v40  ;;  %v557_v45 = vpack.c.bf16 %v279_v44, %v277_v43  ;;  %v412_v54 = vld [vmem:[%s936_s2] ss:$0 sm:$0xff]  ;;  %s386_s18 = sshll.u32 %s613_s4, 4  ;;  %s387_s18 = int_to_ptr.vmem [resolvable:$true] %s386_s18 }
  0x20   :  { %512 = vmatprep.subr.bf16.mxu0 %v511_v23  ;;  %v264_v59 = vld [vmem:[%s939_s5] sm:$0x3]  ;;  %s564_s2 = scalar_lea.vmem %s387_s18, 32  ;;  %p569_p1 = scmp.lt.s32.totalorder %s387_s18, %s387_s18 }
  0x21   :  { %550 = vmatpush3.bf16.msra.mxu1 %v549_v26  ;;  %p565_p0 = scmp.ne.s32.totalorder %s387_s18, %s564_s2  ;;  %p570_p2 = scmp.lt.s32.totalorder %s564_s2, %s564_s2 }
  0x23   :  { %514 = vmatpush3.bf16.msra.mxu0 %v513_v29  ;;  %p571_p3 = por %p570_p2, %p569_p1 }
  0x24   :  { %259 = vmatmul.mubr.f32.vlgmr.msra.gmra.mrb[0].mxu1 %v787_v55  ;;  %516 = vmatprep.subr.bf16.mxu0 %v515_v30 }
  0x25   :  { %p572_p4 = pnand %p571_p3, %p565_p0 }
  0x27   :  { %518 = vmatpush3.bf16.msra.mxu0 %v517_v33 }
  0x28   :  { %552 = vmatprep.subr.bf16.mxu0 %v551_v36 }
  0x2a   :  { %150 = vmatmul.mubr.f32.vlgmr.msra.gmra.mrb[0].mxu0 %v787_v55 }
  0x2b   :  { %554 = vmatpush1.bf16.msra.mxu0 %v553_v39  ;;  %361 = vmatprep.mubr.f32.mxu0 %v612_v46 }
  0x2c   :  { %556 = vmatprep.subr.bf16.mxu0 %v555_v42 }
  0x2f   :  { %558 = vmatpush1.bf16.msra.mxu0 %v557_v45 }
  0xf7   :  { %v484_v47 = vpop.f32.mrb[0].mxu1 }
  0xf8   :  { %v485_v49 = vpop.f32.mrb[1].mxu1 }
  0xf9   :  { %v486_v50 = vadd.f32 %v485_v49, %v484_v47 }
  0xfb   :  { %v261_v51 = vadd.f32 %v486_v50, %v414_v48 }
  0xfd   :  { %v265_v52 = vmul.f32 0.5, %v261_v51  ;;  %v449_v53 = vpop.f32.mrb[0].mxu0  ;;  %272 = vst.msk [vmem:[#allocation4] sm:$0x3] %vm270_vm0, %v261_v51 }
  0xfe   :  { %v450_v55 = vpop.f32.mrb[1].mxu0 }
  0xff   :  { %v266_v56 = vmul.f32 1.442695, %v265_v52  ;;  %v451_v57 = vadd.f32 %v450_v55, %v449_v53 }
 0x101   :  { %562 = vpow2.f32 %v266_v56  ;;  %v152_v58 = vadd.f32 %v451_v57, %v412_v54 }
 0x103   :  { %271 = vst.msk [vmem:[#allocation2] sm:$0x3] %vm270_vm0, %v152_v58 }
 0x10b   :  { %v563_v60 = vpop.eup %562 }
 0x10c   :  { %v268_v61 = vmul.f32 %v563_v60, %v264_v59 }
 0x10e   :  { %v269_v62 = vadd.f32 %v268_v61, %v152_v58 }
 0x110   :  { %415 = vmatmul.mubr.msk.f32.vlgmr.msra.gmra.mrb[2].mxu0 %vm293_vm1, %v269_v62 }
 0x111   :  { %575 = shalt.err (!%p572_p4)
}
 0x112   :  { %s576_s21 = scalar_lea.hbm %s942_s8, 32 }
 0x113   :  { %p577_p5 = scmp.ne.s32.totalorder %s942_s8, %s576_s21  ;;  %p580_p6 = scmp.lt.u32.totalorder %s576_s21, %s942_s8 }
 0x115   :  { %p582_p7 = pnand %p580_p6, %p577_p5 }
 0x117   :  { %585 = shalt.err (!%p582_p7)
}
 0x118   :  { %389 = dma.vmem_to_hbm [thread:$0]  %s387_s18, 32, %s942_s8, [#allocation3]  }
 0x119   :  { %s586_s27 = scalar_lea.vmem %s397_s19, 32  ;;  %p591_p9 = scmp.lt.s32.totalorder %s397_s19, %s397_s19 }
 0x11a   :  { %p587_p8 = scmp.ne.s32.totalorder %s397_s19, %s586_s27  ;;  %p592_p10 = scmp.lt.s32.totalorder %s586_s27, %s586_s27 }
 0x11c   :  { %p593_p11 = por %p592_p10, %p591_p9 }
 0x11e   :  { %p594_p12 = pnand %p593_p11, %p587_p8 }
 0x120   :  { %597 = shalt.err (!%p594_p12)
}
 0x121   :  { %s598_s30 = scalar_lea.hbm %s943_s9, 32 }
 0x122   :  { %p599_p13 = scmp.ne.s32.totalorder %s943_s9, %s598_s30  ;;  %p602_p0 = scmp.lt.u32.totalorder %s598_s30, %s943_s9 }
 0x124   :  { %p604_p1 = pnand %p602_p0, %p599_p13 }
 0x126   :  { %607 = shalt.err (!%p604_p1)
}
 0x127   :  { %399 = dma.vmem_to_hbm [thread:$0]  %s397_s19, 32, %s943_s9, [#allocation5]   ;;  %v283_v63 = vlaneseq  ;;  %v281_v2 = vld [vmem:[%s941_s7] sm:$0x3] }
 0x129   :  { %v284_v0 = vshrl.u32 %v283_v63, 7 }
 0x12b   :  { %v285_v1 = vsub.s32 0, %v284_v0  ;;  %v289_v3 = vsub.s32 1, %v284_v0 }
 0x12d   :  { %v286_v4 = vrot.slane %v281_v2, %v285_v1  ;;  %v290_v5 = vrot.slane %v281_v2, %v289_v3 }
 0x1e3   :  { %v363_v6 = vpop.f32.mrb[2].mxu0 }
 0x1e4   :  { %v364_v7 = vadd.f32 %v363_v6, %v286_v4  ;;  %v365_v8 = vpop.f32.mrb[3].mxu0 }
 0x1e5   :  { %v366_v9 = vadd.f32 %v365_v8, %v290_v5 }
 0x1e7   :  { %v370_v10 = vcombine.low %v364_v7, %v366_v9 }
 0x1e9   :  { %416 = vst.sshfl [vmem:[%s944_s10] sm:$0x33 pattern:$0x76325410] %v370_v10 }
 0x1ea   :  { %608 = dma.done.wait [#allocation3], 32  }
 0x1eb   :  { %609 = vsyncadd [#allocation3], 4294967264 }
 0x1ec   :  { %610 = dma.done.wait [#allocation5], 32  }
 0x1ed   :  { %611 = vsyncadd [#allocation5], 4294967264 }
 0x1ee   :  { %410 = vsyncpa [#allocation3], 1 }
 0x1ef   :  { %411 = vsyncpa [#allocation5], 1 }

// kernel: run.15
= control target key start
LH: loop header
LB: loop body
LE: loop exit
PB: predicated region body
PF: predicated region fallthrough
CT: control target
= control target key end

     0   :  { %v858_v0 = vmov 0   ;;  %vm110_vm0 = vcmask 130048   ;;  %vm162_vm1 = vcmask 261120   ;;  %vm334_vm2 = vcmask 1041408   ;;  %s995_s0 = inlined_call_operand.vmem [shape: bf16[144,32], index: 0, kind: input, shape index: {}]   ;;  %s996_s1 = inlined_call_operand.vmem [shape: bf16[16,144], index: 1, kind: input, shape index: {}]   ;;  %s997_s5 = inlined_call_operand.vmem [shape: f32[32,2], index: 5, kind: input, shape index: {}]   ;;  %s998_s4 = inlined_call_operand.vmem [shape: f32[16,16], index: 4, kind: input, shape index: {}]   ;;  %s999_s6 = inlined_call_operand.vmem [shape: f32[2,32], index: 6, kind: input, shape index: {}]   ;;  %s1000_s2 = inlined_call_operand.vmem [shape: f32[16,1], index: 2, kind: input, shape index: {}]   ;;  %s1001_s3 = inlined_call_operand.vmem [shape: f32[16,1], index: 3, kind: input, shape index: {}]   ;;  %s1002_s7 = inlined_call_operand.vmem [shape: f32[16,32], index: 7, kind: output, shape index: {}]  }
   0x1   :  { %114 = vmatprep.subr.bf16.mxu0 %v858_v0  ;;  %v837_v1 = vld [vmem:[%s995_s0] sm:$0xff]   ;;  %835 = vset.pattern.permute.xlu0 %v858_v0  ;;  %v838_v2 = vld [vmem:[%s995_s0 + $0x8] sm:$0xff]   ;;  %v839_v3 = vld [vmem:[%s995_s0 + $0x10] sm:$0xff]   ;;  %vm327_vm3 = vcmask 15360  }
   0x2   :  { %836 = vset.pattern.permute.xlu1 %v858_v0  ;;  %115 = vmatpush1.bf16.msra.mxu0 %v837_v1  ;;  %v840_v4 = vld [vmem:[%s995_s0 + $0x18] sm:$0xff]   ;;  %v848_v5 = vld [vmem:[%s996_s1 + $0x4] ss:$8 sps:$4 sm:$0xff]   ;;  %v157_v8 = vld [vmem:[%s997_s5 + $0x10] sm:$0xff] }
   0x3   :  { %116 = vmatprep.subr.bf16.mxu0 %v858_v0  ;;  %v155_v6 = vld [vmem:[%s997_s5] sm:$0xff]  ;;  %v156_v7 = vld [vmem:[%s997_s5 + $0x8] sm:$0xff]  ;;  %v158_v9 = vld [vmem:[%s997_s5 + $0x18] sm:$0xff]  ;;  %721 = vmatprep.mubr.msk.bf16.mxu0 %vm110_vm0, %v848_v5 }
   0x4   :  { %v929_v10 = vld [vmem:[%s995_s0 + $0x20] sm:$0xff]   ;;  %v810_v11 = vpack.c.bf16 %v156_v7, %v155_v6  ;;  %v814_v12 = vpack.c.bf16 %v158_v9, %v157_v8  ;;  %v842_v13 = vld [vmem:[%s995_s0 + $0x28] sm:$0xff]   ;;  %v843_v14 = vld [vmem:[%s995_s0 + $0x30] sm:$0xff]  }
   0x5   :  { %v844_v15 = vld [vmem:[%s995_s0 + $0x38] sm:$0xff]   ;;  %v845_v16 = vld [vmem:[%s995_s0 + $0x40] sm:$0xff]   ;;  %v161_v26 = vld [vmem:[%s998_s4 + $0x8] sm:$0xff]  ;;  %v701_v6 = vunpack.c.h.bf16 %v929_v10  ;;  %v700_v8 = vunpack.c.l.bf16 %v929_v10 }
   0x6   :  { %117 = vmatpush1.bf16.msra.mxu0 %v838_v2  ;;  %811 = vmatprep.subr.bf16.mxu1 %v810_v11  ;;  %v846_v17 = vld [vmem:[%s996_s1] ss:$8 sps:$4 sm:$0xff]  }
   0x7   :  { %118 = vmatprep.subr.bf16.mxu0 %v858_v0  ;;  %813 = vmatpush3.bf16.msra.mxu1 %v810_v11  ;;  %v160_v22 = vld [vmem:[%s998_s4] sm:$0xff]  ;;  %v661_v43 = vld [vmem:[%s1000_s2 + $0x8] sm:$0xff] }
   0x8   :  { %815 = vmatprep.subr.bf16.mxu1 %v814_v12  ;;  %v159_v27 = vld [vmem:[%s999_s6] sm:$0x3]  ;;  %v675_v44 = vld [vmem:[%s1001_s3 + $0x8] sm:$0xff] }
   0x9   :  { %v660_v41 = vld [vmem:[%s1000_s2] sm:$0xff] }
   0xa   :  { %119 = vmatpush1.bf16.msra.mxu0 %v839_v3  ;;  %v674_v42 = vld [vmem:[%s1001_s3] sm:$0xff]  ;;  %664 = vperm.xlu0 %835, %v660_v41  }
   0xb   :  { %120 = vmatprep.subr.bf16.mxu0 %v858_v0  ;;  %817 = vmatpush3.bf16.msra.mxu1 %v814_v12 }
   0xc   :  { %678 = vperm.xlu1 %836, %v674_v42  }
   0xe   :  { %121 = vmatpush1.bf16.msra.mxu0 %v840_v4  ;;  %669 = vperm.xlu0 %835, %v661_v43  }
   0xf   :  { %122 = vmatprep.subr.bf16.mxu0 %v858_v0 }
  0x10   :  { %683 = vperm.xlu1 %836, %v675_v44  }
  0x12   :  { %123 = vmatpush1.bf16.msra.mxu0 %v929_v10 }
  0x13   :  { %124 = vmatprep.subr.bf16.mxu0 %v858_v0 }
  0x16   :  { %125 = vmatpush1.bf16.msra.mxu0 %v842_v13 }
  0x17   :  { %126 = vmatprep.subr.bf16.mxu0 %v858_v0 }
  0x1a   :  { %127 = vmatpush1.bf16.msra.mxu0 %v843_v14 }
  0x1b   :  { %128 = vmatprep.subr.bf16.mxu0 %v858_v0 }
  0x1e   :  { %129 = vmatpush1.bf16.msra.mxu0 %v844_v15 }
  0x1f   :  { %130 = vmatprep.subr.bf16.mxu0 %v858_v0 }
  0x22   :  { %131 = vmatpush1.bf16.msra.mxu0 %v845_v16 }
  0x25   :  { %147 = vmatmul.mubr.bf16.vlgmr.msra.gmra.mrb[0].mxu0 %v846_v17 }
  0x89   :  { %v665_v53 = vpop.permute.xlu0 %664 }
  0x8b   :  { %v679_v54 = vpop.permute.xlu1 %678 }
  0x8d   :  { %v670_v59 = vpop.permute.xlu0 %669 }
  0x8f   :  { %v684_v62 = vpop.permute.xlu1 %683 }
  0xf8   :  { %v148_v18 = vpop.f32.mrb[0].mxu0 }
  0xf9   :  { %v150_v19 = vpop.f32.mrb[1].mxu0  ;;  %772 = vmatprep.mubr.msk.f32.mxu1 %vm162_vm1, %v148_v18 }
  0xfa   :  { %v151_v20 = vpop.f32.mrb[2].mxu0 }
  0xfb   :  { %v153_v21 = vpop.f32.mrb[3].mxu0  ;;  %773 = vmatmul.mubr.msk.f32.vlgmr.msra.gmra.mrb[0].mxu1 %vm162_vm1, %v151_v20 }
  0xfc   :  { %779 = vmatprep.mubr.msk.f32.mxu1 %vm110_vm0, %v160_v22 }
 0x1ce   :  { %v774_v23 = vpop.f32.mrb[0].mxu1 }
 0x1cf   :  { %v235_v24 = vpop.f32.mrb[1].mxu1 }
 0x1d0   :  { %v818_v25 = vpack.c.bf16 %v774_v23, %v235_v24 }
 0x1d2   :  { %819 = vmatprep.subr.bf16.mxu1 %v818_v25 }
 0x1d3   :  { %821 = vmatpush3.bf16.msra.mxu1 %v818_v25 }
 0x1d4   :  { %782 = vmatprep.subr.msk.mxu1 %vm334_vm2, %v159_v27 }
 0x1d6   :  { %780 = vmatmul.mubr.msk.f32.vlgmr.msra.gmra.mrb[2].mxu1 %vm110_vm0, %v161_v26 }
 0x1d7   :  { %783 = vmatpush3.msk.msra.mxu1 %vm334_vm2, %v159_v27 }
 0x1d8   :  { %823 = vmatprep.subr.bf16.mxu1 %v810_v11 }
 0x2a9   :  { %v781_v28 = vpop.f32.mrb[2].mxu1 }
 0x2aa   :  { %v316_v29 = vpop.f32.mrb[3].mxu1  ;;  %v326_v31 = vmul.f32 0.015625, %v781_v28 }
 0x2ab   :  { %v325_v30 = vmul.f32 0.015625, %v316_v29 }
 0x2ad   :  { %784 = vmatprep.mubr.msk.f32.mxu1 %vm327_vm3, %v325_v30 }
 0x2ae   :  { %785 = vmatmul.mubr.msk.f32.vlgmr.msra.gmra.mrb[4].mxu1 %vm327_vm3, %v326_v31 }
 0x2af   :  { %825 = vmatpush3.bf16.msra.mxu1 %v810_v11 }
 0x2b0   :  { %827 = vmatprep.subr.bf16.mxu1 %v814_v12 }
 0x2b3   :  { %829 = vmatpush3.bf16.msra.mxu1 %v814_v12 }
 0x381   :  { %v786_v32 = vpop.f32.mrb[4].mxu1 }
 0x382   :  { %v414_v33 = vsub.f32 %v151_v20, %v786_v32  ;;  %v404_v34 = vpop.f32.mrb[5].mxu1 }
 0x383   :  { %v413_v35 = vsub.f32 %v148_v18, %v404_v34 }
 0x384   :  { %v416_v37 = vmul.f32 %v414_v33, %v414_v33 }
 0x385   :  { %v415_v36 = vmul.f32 %v413_v35, %v413_v35 }
 0x387   :  { %795 = vmatprep.mubr.msk.f32.mxu1 %vm162_vm1, %v415_v36 }
 0x388   :  { %796 = vmatmul.mubr.msk.f32.vlgmr.msra.gmra.mrb[6].mxu1 %vm162_vm1, %v416_v37 }
 0x389   :  { %802 = vmatprep.mubr.msk.f32.mxu1 %vm110_vm0, %v160_v22 }
 0x45b   :  { %v797_v38 = vpop.f32.mrb[6].mxu1 }
 0x45c   :  { %v489_v39 = vpop.f32.mrb[7].mxu1 }
 0x45d   :  { %v830_v40 = vpack.c.bf16 %v797_v38, %v489_v39 }
 0x45f   :  { %831 = vmatprep.subr.bf16.mxu1 %v830_v40 }
 0x460   :  { %833 = vmatpush3.bf16.msra.mxu1 %v830_v40 }
 0x461   :  { %805 = vmatprep.subr.msk.mxu1 %vm334_vm2, %v159_v27 }
 0x463   :  { %803 = vmatmul.mubr.msk.f32.vlgmr.msra.gmra.mrb[8].mxu1 %vm110_vm0, %v161_v26 }
 0x464   :  { %806 = vmatpush3.msk.msra.mxu1 %vm334_vm2, %v159_v27 }
 0x536   :  { %v804_v45 = vpop.f32.mrb[8].mxu1 }
 0x537   :  { %v564_v46 = vpop.f32.mrb[9].mxu1  ;;  %v574_v48 = vmul.f32 0.015625, %v804_v45 }
 0x538   :  { %v573_v47 = vmul.f32 0.015625, %v564_v46 }
 0x53a   :  { %807 = vmatprep.mubr.msk.f32.mxu1 %vm327_vm3, %v573_v47 }
 0x53b   :  { %808 = vmatmul.mubr.msk.f32.vlgmr.msra.gmra.mrb[10].mxu1 %vm327_vm3, %v574_v48 }
 0x60e   :  { %v809_v49 = vpop.f32.mrb[10].mxu1 }
 0x60f   :  { %v653_v50 = vadd.f32 1e-05, %v809_v49  ;;  %v647_v51 = vpop.f32.mrb[11].mxu1 }
 0x610   :  { %v648_v52 = vadd.f32 1e-05, %v647_v51 }
 0x611   :  { %850 = vrsqrt.f32 %v653_v50 }
 0x612   :  { %852 = vrsqrt.f32 %v648_v52 }
 0x61b   :  { %v851_v55 = vpop.eup %850 }
 0x61c   :  { %v853_v56 = vpop.eup %852  ;;  %v659_v57 = vmul.f32 %v851_v55, %v414_v33 }
 0x61d   :  { %v658_v58 = vmul.f32 %v853_v56, %v413_v35 }
 0x61e   :  { %v673_v60 = vmul.f32 %v670_v59, %v659_v57 }
 0x61f   :  { %v672_v61 = vmul.f32 %v665_v53, %v658_v58 }
 0x620   :  { %v687_v63 = vadd.f32 %v684_v62, %v673_v60 }
 0x621   :  { %v686_v0 = vadd.f32 %v679_v54, %v672_v61 }
 0x622   :  { %v691_v1 = vmin.f32 %v687_v63, 0.0  ;;  %vm689_vm4 = vcmp.gt.f32.partialorder %v687_v63, 0.0 }
 0x623   :  { %v690_v2 = vmin.f32 %v686_v0, 0.0  ;;  %vm688_vm5 = vcmp.gt.f32.partialorder %v686_v0, 0.0 }
 0x624   :  { %v694_v3 = vmul.f32 1.442695, %v691_v1 }
 0x625   :  { %v692_v4 = vmul.f32 1.442695, %v690_v2 }
 0x626   :  { %854 = vpow2.f32 %v694_v3 }
 0x627   :  { %856 = vpow2.f32 %v692_v4 }
 0x630   :  { %v855_v5 = vpop.eup %854 }
 0x631   :  { %v857_v7 = vpop.eup %856  ;;  %v737_v9 = vadd.f32 -1.0, %v855_v5 }
 0x632   :  { %v736_v11 = vadd.f32 -1.0, %v857_v7 }
 0x633   :  { %v699_v12 = vsel %vm689_vm4, %v687_v63, %v737_v9 }
 0x634   :  { %v698_v13 = vsel %vm688_vm5, %v686_v0, %v736_v11  ;;  %v703_v14 = vadd.f32 %v701_v6, %v699_v12 }
 0x635   :  { %v702_v15 = vadd.f32 %v700_v8, %v698_v13 }
 0x636   :  { %705 = vst.msk [vmem:[%s1002_s7 + $0x8] sm:$0xff] %vm162_vm1, %v703_v14 }
 0x637   :  { %704 = vst.msk [vmem:[%s1002_s7] sm:$0xff] %vm162_vm1, %v702_v15 }

// kernel: run.16
= control target key start
LH: loop header
LB: loop body
LE: loop exit
PB: predicated region body
PF: predicated region fallthrough
CT: control target
= control target key end

     0   :  { %v853_v0 = vmov 0   ;;  %v854_v2 = vmov 0.0|0.0   ;;  %vm106_vm0 = vcmask 130048   ;;  %vm855_vm1 = vmmov 0   ;;  %s1028_s0 = inlined_call_operand.vmem [shape: bf16[144,128], index: 0, kind: input, shape index: {}]   ;;  %s1029_s1 = inlined_call_operand.vmem [shape: bf16[8,144], index: 1, kind: input, shape index: {}]   ;;  %s1030_s5 = inlined_call_operand.vmem [shape: f32[128,2], index: 5, kind: input, shape index: {}]   ;;  %s1031_s4 = inlined_call_operand.vmem [shape: f32[8,8], index: 4, kind: input, shape index: {}]   ;;  %s1032_s6 = inlined_call_operand.vmem [shape: f32[2,128], index: 6, kind: input, shape index: {}]   ;;  %s1033_s2 = inlined_call_operand.vmem [shape: f32[8,1], index: 2, kind: input, shape index: {}]   ;;  %s1034_s3 = inlined_call_operand.vmem [shape: f32[8,1], index: 3, kind: input, shape index: {}]   ;;  %s1035_s7 = inlined_call_operand.vmem [shape: f32[8,128], index: 7, kind: output, shape index: {}]  }
   0x1   :  { %110 = vmatprep.subr.bf16.mxu0 %v853_v0  ;;  %v838_v1 = vld [vmem:[%s1028_s0] sm:$0xff]   ;;  %785 = vmatprep.subr.bf16.mxu1 %v854_v2  ;;  %v839_v3 = vld [vmem:[%s1028_s0 + $0x8] sm:$0xff]   ;;  %v840_v4 = vld [vmem:[%s1028_s0 + $0x10] sm:$0xff]   ;;  %v856_v38 = vmov 0.0   ;;  %vm238_vm2 = vcmask 64512   ;;  %vm317_vm3 = vcmask 1041408  }
   0x2   :  { %837 = vset.pattern.permute.xlu0 %v853_v0  ;;  %111 = vmatpush1.bf16.msra.mxu0 %v838_v1  ;;  %v45_v5 = vld [vmem:[%s1029_s1] sm:$0xff]  ;;  %v151_v7 = vld [vmem:[%s1030_s5 + $0x8] sm:$0xff]  ;;  %v841_v8 = vld [vmem:[%s1028_s0 + $0x18] sm:$0xff]   ;;  %vm313_vm4 = vcmask 15360  }
   0x3   :  { %112 = vmatprep.subr.bf16.mxu0 %v853_v0  ;;  %v150_v6 = vld [vmem:[%s1030_s5] sm:$0xff]  ;;  %v635_v9 = vcombine.high %v45_v5, %v45_v5  ;;  %v152_v11 = vld [vmem:[%s1030_s5 + $0x10] sm:$0xff]  ;;  %v153_v12 = vld [vmem:[%s1030_s5 + $0x18] sm:$0xff]  ;;  %v634_v34 = vcombine.low %v45_v5, %v45_v5  ;;  %727 = vmatprep.mubr.msk.f32.mxu1 %vm855_vm1, %v856_v38 }
   0x4   :  { %v786_v10 = vpack.c.bf16 %v151_v7, %v150_v6  ;;  %v789_v13 = vpack.c.bf16 %v153_v12, %v152_v11  ;;  %v154_v14 = vld [vmem:[%s1030_s5 + $0x20] sm:$0xff]  ;;  %v155_v15 = vld [vmem:[%s1030_s5 + $0x28] sm:$0xff]  ;;  %v156_v18 = vld [vmem:[%s1030_s5 + $0x30] sm:$0xff] }
   0x5   :  { %645 = vmatprep.mubr.msk.bf16.mxu0 %vm106_vm0, %v635_v9  ;;  %v842_v16 = vld [vmem:[%s1028_s0 + $0x20] sm:$0xff]   ;;  %v792_v17 = vpack.c.bf16 %v155_v15, %v154_v14  ;;  %v157_v19 = vld [vmem:[%s1030_s5 + $0x38] sm:$0xff]  ;;  %v843_v20 = vld [vmem:[%s1028_s0 + $0x28] sm:$0xff]  }
   0x6   :  { %113 = vmatpush1.bf16.msra.mxu0 %v839_v3  ;;  %787 = vmatpush3.bf16.msra.mxu1 %v786_v10  ;;  %v795_v21 = vpack.c.bf16 %v157_v19, %v156_v18  ;;  %v158_v22 = vld [vmem:[%s1030_s5 + $0x40] sm:$0xff]  ;;  %v159_v23 = vld [vmem:[%s1030_s5 + $0x48] sm:$0xff]  ;;  %v844_v24 = vld [vmem:[%s1028_s0 + $0x30] sm:$0xff]  }
   0x7   :  { %114 = vmatprep.subr.bf16.mxu0 %v853_v0  ;;  %788 = vmatprep.subr.bf16.mxu1 %v854_v2  ;;  %v798_v25 = vpack.c.bf16 %v159_v23, %v158_v22  ;;  %v160_v26 = vld [vmem:[%s1030_s5 + $0x50] sm:$0xff]  ;;  %v161_v27 = vld [vmem:[%s1030_s5 + $0x58] sm:$0xff]  ;;  %v162_v30 = vld [vmem:[%s1030_s5 + $0x60] sm:$0xff] }
   0x8   :  { %v845_v28 = vld [vmem:[%s1028_s0 + $0x38] sm:$0xff]   ;;  %v801_v29 = vpack.c.bf16 %v161_v27, %v160_v26  ;;  %v163_v31 = vld [vmem:[%s1030_s5 + $0x68] sm:$0xff]  ;;  %v846_v32 = vld [vmem:[%s1028_s0 + $0x40] sm:$0xff]  }
   0x9   :  { %v804_v33 = vpack.c.bf16 %v163_v31, %v162_v30  ;;  %v164_v35 = vld [vmem:[%s1030_s5 + $0x70] sm:$0xff]  ;;  %v165_v36 = vld [vmem:[%s1030_s5 + $0x78] sm:$0xff]  ;;  %v167_v43 = vld [vmem:[%s1031_s4] sm:$0xff] }
   0xa   :  { %115 = vmatpush1.bf16.msra.mxu0 %v840_v4  ;;  %790 = vmatpush3.bf16.msra.mxu1 %v789_v13  ;;  %v807_v37 = vpack.c.bf16 %v165_v36, %v164_v35  ;;  %v166_v46 = vld [vmem:[%s1032_s6] sm:$0x3] }
   0xb   :  { %116 = vmatprep.subr.bf16.mxu0 %v853_v0  ;;  %791 = vmatprep.subr.bf16.mxu1 %v854_v2  ;;  %v609_v56 = vld [vmem:[%s1033_s2] sm:$0xff] }
   0xc   :  { %612 = vperm.xlu0 %837, %v609_v56   ;;  %v616_v57 = vld [vmem:[%s1034_s3] sm:$0xff] }
   0xe   :  { %117 = vmatpush1.bf16.msra.mxu0 %v841_v8  ;;  %793 = vmatpush3.bf16.msra.mxu1 %v792_v17 }
   0xf   :  { %118 = vmatprep.subr.bf16.mxu0 %v853_v0  ;;  %794 = vmatprep.subr.bf16.mxu1 %v854_v2 }
  0x10   :  { %619 = vperm.xlu0 %837, %v616_v57  }
  0x12   :  { %119 = vmatpush1.bf16.msra.mxu0 %v842_v16  ;;  %796 = vmatpush3.bf16.msra.mxu1 %v795_v21 }
  0x13   :  { %120 = vmatprep.subr.bf16.mxu0 %v853_v0  ;;  %797 = vmatprep.subr.bf16.mxu1 %v854_v2 }
  0x16   :  { %121 = vmatpush1.bf16.msra.mxu0 %v843_v20  ;;  %799 = vmatpush3.bf16.msra.mxu1 %v798_v25 }
  0x17   :  { %122 = vmatprep.subr.bf16.mxu0 %v853_v0  ;;  %800 = vmatprep.subr.bf16.mxu1 %v854_v2 }
  0x1a   :  { %123 = vmatpush1.bf16.msra.mxu0 %v844_v24  ;;  %802 = vmatpush3.bf16.msra.mxu1 %v801_v29 }
  0x1b   :  { %124 = vmatprep.subr.bf16.mxu0 %v853_v0  ;;  %803 = vmatprep.subr.bf16.mxu1 %v854_v2 }
  0x1e   :  { %125 = vmatpush1.bf16.msra.mxu0 %v845_v28  ;;  %805 = vmatpush3.bf16.msra.mxu1 %v804_v33 }
  0x1f   :  { %126 = vmatprep.subr.bf16.mxu0 %v853_v0  ;;  %806 = vmatprep.subr.bf16.mxu1 %v854_v2 }
  0x22   :  { %127 = vmatpush1.bf16.msra.mxu0 %v846_v32  ;;  %808 = vmatpush3.bf16.msra.mxu1 %v807_v37 }
  0x23   :  { %809 = vmatprep.subr.bf16.mxu0 %v854_v2  ;;  %730 = vmatprep.subr.mxu1 %v856_v38 }
  0x25   :  { %143 = vmatmul.mubr.bf16.vlgmr.msra.gmra.mrb[0].mxu0 %v634_v34 }
  0x26   :  { %811 = vmatpush3.bf16.msra.mxu0 %v786_v10  ;;  %772 = vmatprep.mubr.msk.f32.mxu0 %vm855_vm1, %v856_v38 }
  0x27   :  { %812 = vmatprep.subr.bf16.mxu0 %v854_v2 }
  0x2a   :  { %814 = vmatpush3.bf16.msra.mxu0 %v789_v13 }
  0x2b   :  { %815 = vmatprep.subr.bf16.mxu0 %v854_v2 }
  0x2e   :  { %817 = vmatpush3.bf16.msra.mxu0 %v792_v17 }
  0x2f   :  { %818 = vmatprep.subr.bf16.mxu0 %v854_v2 }
  0x32   :  { %820 = vmatpush3.bf16.msra.mxu0 %v795_v21 }
  0x33   :  { %821 = vmatprep.subr.bf16.mxu0 %v854_v2 }
  0x36   :  { %823 = vmatpush3.bf16.msra.mxu0 %v798_v25 }
  0x37   :  { %824 = vmatprep.subr.bf16.mxu0 %v854_v2 }
  0x3a   :  { %826 = vmatpush3.bf16.msra.mxu0 %v801_v29 }
  0x3b   :  { %827 = vmatprep.subr.bf16.mxu0 %v854_v2 }
  0x3e   :  { %829 = vmatpush3.bf16.msra.mxu0 %v804_v33 }
  0x3f   :  { %830 = vmatprep.subr.bf16.mxu0 %v854_v2 }
  0x42   :  { %832 = vmatpush3.bf16.msra.mxu0 %v807_v37 }
  0x8b   :  { %v613_v0 = vpop.permute.xlu0 %612 }
  0x8f   :  { %v620_v4 = vpop.permute.xlu0 %619 }
  0xf8   :  { %v144_v39 = vpop.f32.mrb[0].mxu0 }
  0xf9   :  { %v146_v40 = vpop.f32.mrb[1].mxu0  ;;  %728 = vmatmul.mubr.f32.vlgmr.msra.gmra.mrb[0].mxu1 %v144_v39 }
  0xfa   :  { %v147_v41 = vpop.f32.mrb[2].mxu0  ;;  %732 = vmatprep.mubr.msk.f32.mxu1 %vm855_vm1, %v856_v38 }
  0xfb   :  { %v148_v42 = vpop.f32.mrb[3].mxu0 }
 0x1cc   :  { %v234_v44 = vpop.f32.mrb[0].mxu1 }
 0x1cd   :  { %v729_v45 = vpop.f32.mrb[1].mxu1  ;;  %731 = vmatpush3.msra.mxu1 %v234_v44 }
 0x1ce   :  { %733 = vmatmul.mubr.msk.f32.vlgmr.msra.gmra.mrb[2].mxu1 %vm238_vm2, %v167_v43  ;;  %735 = vmatprep.subr.mxu1 %v856_v38 }
 0x1cf   :  { %737 = vmatprep.mubr.msk.f32.mxu1 %vm855_vm1, %v856_v38  ;;  %736 = vmatpush3.msk.msra.mxu1 %vm317_vm3, %v166_v46 }
 0x1d0   :  { %775 = vmatprep.subr.mxu1 %v856_v38 }
 0x2a1   :  { %v308_v47 = vpop.f32.mrb[2].mxu1 }
 0x2a2   :  { %v312_v48 = vmul.f32 0.00390625, %v308_v47  ;;  %v734_v49 = vpop.f32.mrb[3].mxu1 }
 0x2a4   :  { %738 = vmatmul.mubr.msk.f32.vlgmr.msra.gmra.mrb[4].mxu1 %vm313_vm4, %v312_v48 }
 0x2a5   :  { %777 = vmatprep.mubr.msk.f32.mxu1 %vm855_vm1, %v856_v38 }
 0x377   :  { %v387_v50 = vpop.f32.mrb[4].mxu1 }
 0x378   :  { %v391_v51 = vsub.f32 %v144_v39, %v387_v50  ;;  %v739_v52 = vpop.f32.mrb[5].mxu1 }
 0x37a   :  { %v392_v53 = vmul.f32 %v391_v51, %v391_v51 }
 0x37c   :  { %773 = vmatmul.mubr.f32.vlgmr.msra.gmra.mrb[4].mxu0 %v392_v53 }
 0x44f   :  { %v459_v54 = vpop.f32.mrb[4].mxu0 }
 0x450   :  { %v774_v55 = vpop.f32.mrb[5].mxu0  ;;  %776 = vmatpush3.msra.mxu1 %v459_v54 }
 0x451   :  { %778 = vmatmul.mubr.msk.f32.vlgmr.msra.gmra.mrb[6].mxu1 %vm238_vm2, %v167_v43  ;;  %780 = vmatprep.subr.mxu1 %v856_v38 }
 0x452   :  { %781 = vmatpush3.msk.msra.mxu1 %vm317_vm3, %v166_v46  ;;  %782 = vmatprep.mubr.msk.f32.mxu1 %vm855_vm1, %v856_v38 }
 0x524   :  { %v529_v58 = vpop.f32.mrb[6].mxu1 }
 0x525   :  { %v533_v59 = vmul.f32 0.00390625, %v529_v58  ;;  %v779_v60 = vpop.f32.mrb[7].mxu1 }
 0x527   :  { %783 = vmatmul.mubr.msk.f32.vlgmr.msra.gmra.mrb[8].mxu1 %vm313_vm4, %v533_v59 }
 0x5fa   :  { %v603_v61 = vpop.f32.mrb[8].mxu1 }
 0x5fb   :  { %v604_v62 = vadd.f32 1e-05, %v603_v61  ;;  %v784_v63 = vpop.f32.mrb[9].mxu1 }
 0x5fd   :  { %849 = vrsqrt.f32 %v604_v62 }
 0x607   :  { %v850_v1 = vpop.eup %849 }
 0x608   :  { %v608_v2 = vmul.f32 %v850_v1, %v391_v51 }
 0x60a   :  { %v615_v3 = vmul.f32 %v613_v0, %v608_v2 }
 0x60c   :  { %v622_v5 = vadd.f32 %v620_v4, %v615_v3 }
 0x60e   :  { %v624_v6 = vmin.f32 %v622_v5, 0.0  ;;  %vm623_vm5 = vcmp.gt.f32.partialorder %v622_v5, 0.0 }
 0x610   :  { %v625_v7 = vmul.f32 1.442695, %v624_v6 }
 0x612   :  { %851 = vpow2.f32 %v625_v7 }
 0x61c   :  { %v852_v8 = vpop.eup %851 }
 0x61d   :  { %v652_v9 = vadd.f32 -1.0, %v852_v8 }
 0x61f   :  { %v628_v10 = vsel %vm623_vm5, %v622_v5, %v652_v9 }
 0x620   :  { %629 = vst [vmem:[%s1035_s7] sm:$0xff] %v628_v10 }

// kernel: run.18
= control target key start
LH: loop header
LB: loop body
LE: loop exit
PB: predicated region body
PF: predicated region fallthrough
CT: control target
= control target key end

     0   :  { %v1487_v1 = vmov 0   ;;  %vm140_vm0 = vcmask 1043456   ;;  %vm136_vm1 = vcmask 588800   ;;  %vm1489_vm2 = vmmov 0   ;;  %s1994_s0 = inlined_call_operand.vmem [shape: bf16[72,512], index: 0, kind: input, shape index: {}]   ;;  %s1995_s5 = inlined_call_operand.vmem [shape: f32[512,2], index: 5, kind: input, shape index: {}]   ;;  %s1996_s1 = inlined_call_operand.vmem [shape: bf16[8,72], index: 1, kind: input, shape index: {}]   ;;  %s1997_s4 = inlined_call_operand.vmem [shape: f32[8,8], index: 4, kind: input, shape index: {}]   ;;  %s1998_s6 = inlined_call_operand.vmem [shape: f32[2,512], index: 6, kind: input, shape index: {}]   ;;  %s1999_s2 = inlined_call_operand.vmem [shape: f32[8,1], index: 2, kind: input, shape index: {}]   ;;  %s2000_s3 = inlined_call_operand.vmem [shape: f32[8,1], index: 3, kind: input, shape index: {}]   ;;  %s2001_s7 = inlined_call_operand.vmem [shape: f32[8,512], index: 7, kind: output, shape index: {}]  }
   0x1   :  { %v1442_v0 = vld [vmem:[%s1994_s0 + $0x4] ss:$16 sps:$4 sm:$0xff]   ;;  %185 = vmatprep.mubr.bf16.mxu0 %v1487_v1  ;;  %226 = vmatprep.mubr.bf16.mxu1 %v1487_v1  ;;  %v1444_v2 = vld [vmem:[%s1994_s0 + $0xc] ss:$16 sps:$4 sm:$0xff]   ;;  %v1446_v3 = vld [vmem:[%s1994_s0] ss:$16 sps:$4 sm:$0xff]  }
   0x2   :  { %1441 = vset.pattern.permute.xlu0 %v1487_v1  ;;  %153 = vmatprep.subr.bf16.mxu0 %v1442_v0  ;;  %v1447_v4 = vld [vmem:[%s1994_s0 + $0x8] ss:$16 sps:$4 sm:$0xff]   ;;  %v1448_v5 = vld [vmem:[%s1994_s0 + $0x24] ss:$16 sps:$4 sm:$0xff]   ;;  %v1450_v6 = vld [vmem:[%s1994_s0 + $0x2c] ss:$16 sps:$4 sm:$0xff]  }
   0x3   :  { %194 = vmatprep.subr.bf16.mxu1 %v1444_v2  ;;  %154 = vmatpush1.bf16.msra.mxu0 %v1446_v3  ;;  %v1452_v7 = vld [vmem:[%s1994_s0 + $0x20] ss:$16 sps:$4 sm:$0xff]   ;;  %v1453_v8 = vld [vmem:[%s1994_s0 + $0x28] ss:$16 sps:$4 sm:$0xff]   ;;  %v1454_v9 = vld [vmem:[%s1994_s0 + $0x44] ss:$16 sps:$4 sm:$0xff]  }
   0x4   :  { %195 = vmatpush1.bf16.msra.mxu1 %v1447_v4  ;;  %155 = vmatprep.subr.bf16.mxu0 %v1448_v5  ;;  %v1456_v10 = vld [vmem:[%s1994_s0 + $0x4c] ss:$16 sps:$4 sm:$0xff]   ;;  %v1458_v11 = vld [vmem:[%s1994_s0 + $0x40] ss:$16 sps:$4 sm:$0xff]   ;;  %v1459_v12 = vld [vmem:[%s1994_s0 + $0x48] ss:$16 sps:$4 sm:$0xff]  }
   0x5   :  { %196 = vmatprep.subr.bf16.mxu1 %v1450_v6  ;;  %v1460_v13 = vld [vmem:[%s1994_s0 + $0x64] ss:$16 sps:$4 sm:$0xff]   ;;  %v1462_v14 = vld [vmem:[%s1994_s0 + $0x6c] ss:$16 sps:$4 sm:$0xff]   ;;  %v1464_v17 = vld [vmem:[%s1994_s0 + $0x60] ss:$16 sps:$4 sm:$0xff]  }
   0x6   :  { %v43_v15 = vld [vmem:[%s1994_s0 + $0x80] sm:$0xff]  ;;  %v44_v16 = vld [vmem:[%s1994_s0 + $0x88] sm:$0xff]  ;;  %v253_v35 = vld [vmem:[%s1995_s5 + $0x90] sm:$0xff]  ;;  %vm441_vm3 = vcmask 64512   ;;  %vm538_vm4 = vcmask 1041408   ;;  %vm534_vm5 = vcmask 15360  }
   0x7   :  { %156 = vmatpush1.bf16.msra.mxu0 %v1452_v7  ;;  %v1465_v18 = vld [vmem:[%s1994_s0 + $0x68] ss:$16 sps:$4 sm:$0xff]   ;;  %v1130_v19 = vcombine.high %v43_v15, %v43_v15  ;;  %v1132_v20 = vcombine.high %v44_v16, %v44_v16  ;;  %v1129_v21 = vcombine.low %v43_v15, %v43_v15  ;;  %v1131_v22 = vcombine.low %v44_v16, %v44_v16  ;;  %v251_v23 = vld [vmem:[%s1995_s5 + $0x80] sm:$0xff]  ;;  %v285_v37 = vld [vmem:[%s1995_s5 + $0x190] sm:$0xff] }
   0x8   :  { %197 = vmatpush1.bf16.msra.mxu1 %v1453_v8  ;;  %157 = vmatprep.subr.bf16.mxu0 %v1454_v9  ;;  %v252_v24 = vld [vmem:[%s1995_s5 + $0x88] sm:$0xff]  ;;  %v283_v25 = vld [vmem:[%s1995_s5 + $0x180] sm:$0xff]  ;;  %v254_v36 = vld [vmem:[%s1995_s5 + $0x98] sm:$0xff] }
   0x9   :  { %198 = vmatprep.subr.bf16.mxu1 %v1456_v10  ;;  %v284_v26 = vld [vmem:[%s1995_s5 + $0x188] sm:$0xff]  ;;  %v235_v27 = vld [vmem:[%s1995_s5] sm:$0xff]  ;;  %v142_v29 = vsel %vm140_vm0, %v1129_v21, 0  ;;  %v148_v30 = vsel %vm140_vm0, %v1131_v22, 0  ;;  %v1603_v31 = vpack.c.bf16 %v252_v24, %v251_v23  ;;  %v286_v38 = vld [vmem:[%s1995_s5 + $0x198] sm:$0xff]  ;;  %v1640_v44 = vpack.c.bf16 %v254_v36, %v253_v35 }
   0xa   :  { %v236_v28 = vld [vmem:[%s1995_s5 + $0x8] sm:$0xff]  ;;  %v1605_v32 = vpack.c.bf16 %v284_v26, %v283_v25  ;;  %v267_v33 = vld [vmem:[%s1995_s5 + $0x100] sm:$0xff]  ;;  %v237_v42 = vld [vmem:[%s1995_s5 + $0x10] sm:$0xff]  ;;  %v1642_v45 = vpack.c.bf16 %v286_v38, %v285_v37 }
   0xb   :  { %158 = vmatpush1.bf16.msra.mxu0 %v1458_v11  ;;  %v268_v34 = vld [vmem:[%s1995_s5 + $0x108] sm:$0xff]  ;;  %v45_v39 = vld [vmem:[%s1996_s1] sm:$0xf]  ;;  %v1628_v40 = vpack.c.bf16 %v236_v28, %v235_v27  ;;  %v238_v43 = vld [vmem:[%s1995_s5 + $0x18] sm:$0xff] }
   0xc   :  { %199 = vmatpush1.bf16.msra.mxu1 %v1459_v12  ;;  %159 = vmatprep.subr.bf16.mxu0 %v1460_v13  ;;  %v1630_v41 = vpack.c.bf16 %v268_v34, %v267_v33  ;;  %v269_v46 = vld [vmem:[%s1995_s5 + $0x110] sm:$0xff]  ;;  %v270_v47 = vld [vmem:[%s1995_s5 + $0x118] sm:$0xff]  ;;  %v255_v48 = vld [vmem:[%s1995_s5 + $0xa0] sm:$0xff]  ;;  %v1666_v52 = vpack.c.bf16 %v238_v43, %v237_v42 }
   0xd   :  { %200 = vmatprep.subr.bf16.mxu1 %v1462_v14  ;;  %v256_v49 = vld [vmem:[%s1995_s5 + $0xa8] sm:$0xff]  ;;  %v287_v50 = vld [vmem:[%s1995_s5 + $0x1a0] sm:$0xff]  ;;  %v1668_v53 = vpack.c.bf16 %v270_v47, %v269_v46  ;;  %v257_v60 = vld [vmem:[%s1995_s5 + $0xb0] sm:$0xff] }
   0xe   :  { %v288_v51 = vld [vmem:[%s1995_s5 + $0x1a8] sm:$0xff]  ;;  %v239_v54 = vld [vmem:[%s1995_s5 + $0x20] sm:$0xff]  ;;  %v1678_v56 = vpack.c.bf16 %v256_v49, %v255_v48  ;;  %v258_v61 = vld [vmem:[%s1995_s5 + $0xb8] sm:$0xff] }
   0xf   :  { %160 = vmatpush1.bf16.msra.mxu0 %v1464_v17  ;;  %v240_v55 = vld [vmem:[%s1995_s5 + $0x28] sm:$0xff]  ;;  %v1680_v57 = vpack.c.bf16 %v288_v51, %v287_v50  ;;  %v271_v58 = vld [vmem:[%s1995_s5 + $0x120] sm:$0xff]  ;;  %v289_v62 = vld [vmem:[%s1995_s5 + $0x1b0] sm:$0xff]  ;;  %v1714_v4 = vpack.c.bf16 %v258_v61, %v257_v60 }
  0x10   :  { %201 = vmatpush1.bf16.msra.mxu1 %v1465_v18  ;;  %1133 = vmatprep.subr.msk.bf16.mxu0 %vm140_vm0, %v1130_v19  ;;  %v272_v59 = vld [vmem:[%s1995_s5 + $0x128] sm:$0xff]  ;;  %v290_v63 = vld [vmem:[%s1995_s5 + $0x1b8] sm:$0xff]  ;;  %v1702_v0 = vpack.c.bf16 %v240_v55, %v239_v54  ;;  %v241_v2 = vld [vmem:[%s1995_s5 + $0x30] sm:$0xff] }
  0x11   :  { %1135 = vmatprep.subr.msk.bf16.mxu1 %vm140_vm0, %v1132_v20  ;;  %v1704_v1 = vpack.c.bf16 %v272_v59, %v271_v58  ;;  %v242_v3 = vld [vmem:[%s1995_s5 + $0x38] sm:$0xff]  ;;  %v1716_v5 = vpack.c.bf16 %v290_v63, %v289_v62  ;;  %v273_v6 = vld [vmem:[%s1995_s5 + $0x130] sm:$0xff]  ;;  %v259_v8 = vld [vmem:[%s1995_s5 + $0xc0] sm:$0xff] }
  0x12   :  { %v274_v7 = vld [vmem:[%s1995_s5 + $0x138] sm:$0xff]  ;;  %v260_v9 = vld [vmem:[%s1995_s5 + $0xc8] sm:$0xff]  ;;  %v291_v10 = vld [vmem:[%s1995_s5 + $0x1c0] sm:$0xff]  ;;  %v1738_v12 = vpack.c.bf16 %v242_v3, %v241_v2 }
  0x13   :  { %162 = vmatpush1.bf16.msra.mxu0 %v142_v29  ;;  %v292_v11 = vld [vmem:[%s1995_s5 + $0x1c8] sm:$0xff]  ;;  %v1740_v13 = vpack.c.bf16 %v274_v7, %v273_v6  ;;  %v243_v14 = vld [vmem:[%s1995_s5 + $0x40] sm:$0xff]  ;;  %v1750_v16 = vpack.c.bf16 %v260_v9, %v259_v8  ;;  %v261_v20 = vld [vmem:[%s1995_s5 + $0xd0] sm:$0xff] }
  0x14   :  { %203 = vmatpush1.bf16.msra.mxu1 %v148_v30  ;;  %1310 = vmatprep.subr.bf16.mxu0 %v1603_v31  ;;  %v244_v15 = vld [vmem:[%s1995_s5 + $0x48] sm:$0xff]  ;;  %v1752_v17 = vpack.c.bf16 %v292_v11, %v291_v10  ;;  %v275_v18 = vld [vmem:[%s1995_s5 + $0x140] sm:$0xff]  ;;  %v262_v21 = vld [vmem:[%s1995_s5 + $0xd8] sm:$0xff] }
  0x15   :  { %1342 = vmatprep.subr.bf16.mxu1 %v1605_v32  ;;  %v276_v19 = vld [vmem:[%s1995_s5 + $0x148] sm:$0xff]  ;;  %v293_v22 = vld [vmem:[%s1995_s5 + $0x1d0] sm:$0xff]  ;;  %v294_v23 = vld [vmem:[%s1995_s5 + $0x1d8] sm:$0xff]  ;;  %v1774_v24 = vpack.c.bf16 %v244_v15, %v243_v14  ;;  %v1786_v28 = vpack.c.bf16 %v262_v21, %v261_v20  ;;  %v1488_v20 = vmov 0.0  }
  0x16   :  { %1134 = vmatmul.mubr.msk.bf16.vlgmr.msra.gmra.mrb[0].mxu0 %vm136_vm1, %v45_v39  ;;  %v1776_v25 = vpack.c.bf16 %v276_v19, %v275_v18  ;;  %v245_v26 = vld [vmem:[%s1995_s5 + $0x50] sm:$0xff]  ;;  %v246_v27 = vld [vmem:[%s1995_s5 + $0x58] sm:$0xff]  ;;  %v1788_v29 = vpack.c.bf16 %v294_v23, %v293_v22  ;;  %v263_v34 = vld [vmem:[%s1995_s5 + $0xe0] sm:$0xff] }
  0x17   :  { %1136 = vmatmul.mubr.msk.bf16.vlgmr.msra.gmra.mrb[0].mxu1 %vm136_vm1, %v45_v39  ;;  %1312 = vmatpush3.bf16.msra.mxu0 %v1628_v40  ;;  %v277_v30 = vld [vmem:[%s1995_s5 + $0x150] sm:$0xff]  ;;  %v278_v33 = vld [vmem:[%s1995_s5 + $0x158] sm:$0xff]  ;;  %v264_v35 = vld [vmem:[%s1995_s5 + $0xe8] sm:$0xff]  ;;  %v1810_v38 = vpack.c.bf16 %v246_v27, %v245_v26 }
  0x18   :  { %1344 = vmatpush3.bf16.msra.mxu1 %v1630_v41  ;;  %1314 = vmatprep.subr.bf16.mxu0 %v1640_v44  ;;  %v295_v36 = vld [vmem:[%s1995_s5 + $0x1e0] sm:$0xff]  ;;  %v296_v37 = vld [vmem:[%s1995_s5 + $0x1e8] sm:$0xff]  ;;  %v1812_v39 = vpack.c.bf16 %v278_v33, %v277_v30  ;;  %v1822_v46 = vpack.c.bf16 %v264_v35, %v263_v34  ;;  %v265_v50 = vld [vmem:[%s1995_s5 + $0xf0] sm:$0xff]  ;;  %v1490_v35 = vmov 1983009808  }
  0x19   :  { %1346 = vmatprep.subr.bf16.mxu1 %v1642_v45  ;;  %v247_v42 = vld [vmem:[%s1995_s5 + $0x60] sm:$0xff]  ;;  %v248_v43 = vld [vmem:[%s1995_s5 + $0x68] sm:$0xff]  ;;  %v1824_v47 = vpack.c.bf16 %v296_v37, %v295_v36  ;;  %v266_v51 = vld [vmem:[%s1995_s5 + $0xf8] sm:$0xff]  ;;  %v519_v36 = vunpack.c.l.s4 %v1490_v35  ;;  %v521_v37 = vlaneseq }
  0x1a   :  { %v279_v48 = vld [vmem:[%s1995_s5 + $0x160] sm:$0xff]  ;;  %v280_v49 = vld [vmem:[%s1995_s5 + $0x168] sm:$0xff]  ;;  %v297_v54 = vld [vmem:[%s1995_s5 + $0x1f0] sm:$0xff]  ;;  %v1846_v58 = vpack.c.bf16 %v248_v43, %v247_v42  ;;  %v1852_v60 = vpack.c.bf16 %v266_v51, %v265_v50 }
  0x1b   :  { %1316 = vmatpush3.bf16.msra.mxu0 %v1666_v52  ;;  %v298_v55 = vld [vmem:[%s1995_s5 + $0x1f8] sm:$0xff]  ;;  %v1848_v59 = vpack.c.bf16 %v280_v49, %v279_v48  ;;  %v249_v62 = vld [vmem:[%s1995_s5 + $0x70] sm:$0xff]  ;;  %v1897_v34 = vld [vmem:[%s1997_s4] sm:$0xff]  ;;  %v520_v42 = vunpack.c.0.s8 %v519_v36  ;;  %v522_v43 = vshrl.u32 %v521_v37, 7 }
  0x1c   :  { %1348 = vmatpush3.bf16.msra.mxu1 %v1668_v53  ;;  %1318 = vmatprep.subr.bf16.mxu0 %v1678_v56  ;;  %v1854_v61 = vpack.c.bf16 %v298_v55, %v297_v54  ;;  %v250_v63 = vld [vmem:[%s1995_s5 + $0x78] sm:$0xff]  ;;  %v281_v2 = vld [vmem:[%s1995_s5 + $0x170] sm:$0xff]  ;;  %v299_v48 = vld [vmem:[%s1998_s6] sm:$0xff] }
  0x1d   :  { %1350 = vmatprep.subr.bf16.mxu1 %v1680_v57  ;;  %v1869_v3 = vpack.c.bf16 %v250_v63, %v249_v62  ;;  %v282_v6 = vld [vmem:[%s1995_s5 + $0x178] sm:$0xff]  ;;  %v523_v49 = vsub.s32 %v520_v42, %v522_v43  ;;  %v517_v50 = vcombine.high %v299_v48, %v299_v48 }
  0x1e   :  { %v1874_v7 = vpack.c.bf16 %v282_v6, %v281_v2 }
  0x1f   :  { %1320 = vmatpush3.bf16.msra.mxu0 %v1702_v0  ;;  %v1905_v51 = vrot.slane %v299_v48, %v523_v49  ;;  %v1907_v54 = vrot.slane %v517_v50, %v523_v49 }
  0x20   :  { %1352 = vmatpush3.bf16.msra.mxu1 %v1704_v1  ;;  %1322 = vmatprep.subr.bf16.mxu0 %v1714_v4 }
  0x21   :  { %1354 = vmatprep.subr.bf16.mxu1 %v1716_v5  ;;  %v532_v55 = vcombine.high %v1905_v51, %v1905_v51  ;;  %v1913_v62 = vcombine.high %v1907_v54, %v1907_v54 }
  0x23   :  { %1324 = vmatpush3.bf16.msra.mxu0 %v1738_v12 }
  0x24   :  { %1356 = vmatpush3.bf16.msra.mxu1 %v1740_v13  ;;  %1326 = vmatprep.subr.bf16.mxu0 %v1750_v16 }
  0x25   :  { %1358 = vmatprep.subr.bf16.mxu1 %v1752_v17 }
  0x27   :  { %1328 = vmatpush3.bf16.msra.mxu0 %v1774_v24 }
  0x28   :  { %1360 = vmatpush3.bf16.msra.mxu1 %v1776_v25  ;;  %1330 = vmatprep.subr.bf16.mxu0 %v1786_v28 }
  0x29   :  { %1362 = vmatprep.subr.bf16.mxu1 %v1788_v29 }
  0x2b   :  { %1332 = vmatpush3.bf16.msra.mxu0 %v1810_v38 }
  0x2c   :  { %1364 = vmatpush3.bf16.msra.mxu1 %v1812_v39  ;;  %1334 = vmatprep.subr.bf16.mxu0 %v1822_v46 }
  0x2d   :  { %1366 = vmatprep.subr.bf16.mxu1 %v1824_v47 }
  0x2f   :  { %1336 = vmatpush3.bf16.msra.mxu0 %v1846_v58 }
  0x30   :  { %1368 = vmatpush3.bf16.msra.mxu1 %v1848_v59  ;;  %1338 = vmatprep.subr.bf16.mxu0 %v1852_v60 }
  0x31   :  { %1370 = vmatprep.subr.bf16.mxu1 %v1854_v61 }
  0x33   :  { %1340 = vmatpush3.bf16.msra.mxu0 %v1869_v3 }
  0x34   :  { %1372 = vmatpush3.bf16.msra.mxu1 %v1874_v7  ;;  %1299 = vmatprep.subr.mxu0 %v1488_v20 }
  0x35   :  { %1138 = vmatprep.subr.msk.mxu1 %vm538_vm4, %v532_v55 }
  0xe9   :  { %v1878_v8 = vpop.f32.mrb[0].mxu0 }
  0xea   :  { %v1880_v9 = vpop.f32.mrb[0].mxu1  ;;  %v1882_v10 = vpop.f32.mrb[1].mxu0 }
  0xeb   :  { %v1884_v11 = vpop.f32.mrb[1].mxu1  ;;  %v191_v14 = vpop.f32.mrb[2].mxu0  ;;  %365 = vmatprep.mubr.f32.mxu0 %v1882_v10 }
  0xec   :  { %v232_v15 = vpop.f32.mrb[2].mxu1  ;;  %435 = vmatprep.mubr.f32.mxu1 %v1884_v11  ;;  %v192_v18 = vpop.f32.mrb[3].mxu0  ;;  %366 = vmatmul.mubr.f32.vlgmr.msra.gmra.mrb[4].mxu0 %v1878_v8 }
  0xed   :  { %v233_v19 = vpop.f32.mrb[3].mxu1  ;;  %436 = vmatmul.mubr.f32.vlgmr.msra.gmra.mrb[4].mxu1 %v1880_v9  ;;  %1301 = vmatprep.mubr.msk.f32.mxu0 %vm1489_vm2, %v1488_v20 }
  0xee   :  { %611 = vmatprep.mubr.f32.mxu1 %v1488_v20  ;;  %1139 = vmatpush1.msk.msra.mxu1 %vm538_vm4, %v1905_v51 }
  0xef   :  { %1374 = vmatprep.subr.bf16.mxu1 %v1603_v31 }
 0x1bf   :  { %v1187_v21 = vpop.f32.mrb[4].mxu0 }
 0x1c0   :  { %v1222_v22 = vpop.f32.mrb[4].mxu1  ;;  %v1188_v23 = vpop.f32.mrb[5].mxu0 }
 0x1c1   :  { %v1223_v26 = vpop.f32.mrb[5].mxu1  ;;  %v1189_v27 = vadd.f32 %v1188_v23, %v1187_v21 }
 0x1c2   :  { %v1224_v30 = vadd.f32 %v1223_v26, %v1222_v22 }
 0x1c4   :  { %v438_v33 = vadd.f32 %v1224_v30, %v1189_v27 }
 0x1c6   :  { %1300 = vmatpush3.msra.mxu0 %v438_v33 }
 0x1c7   :  { %1302 = vmatmul.mubr.msk.f32.vlgmr.msra.gmra.mrb[6].mxu0 %vm441_vm3, %v1897_v34  ;;  %1141 = vmatprep.subr.msk.mxu0 %vm538_vm4, %v1913_v62 }
 0x1c8   :  { %682 = vmatprep.mubr.f32.mxu0 %v1488_v20  ;;  %1142 = vmatpush1.msk.msra.mxu0 %vm538_vm4, %v1907_v54 }
 0x1c9   :  { %1406 = vmatprep.subr.bf16.mxu0 %v1605_v32 }
 0x29a   :  { %v511_v63 = vpop.f32.mrb[6].mxu0 }
 0x29b   :  { %v515_v2 = vmul.f32 0.0009765625, %v511_v63  ;;  %v1303_v6 = vpop.f32.mrb[7].mxu0 }
 0x29d   :  { %1140 = vmatmul.mubr.msk.f32.vlgmr.msra.gmra.mrb[6].mxu1 %vm534_vm5, %v515_v2  ;;  %1143 = vmatmul.mubr.msk.f32.vlgmr.msra.gmra.mrb[8].mxu0 %vm534_vm5, %v515_v2 }
 0x29e   :  { %1376 = vmatpush3.bf16.msra.mxu1 %v1628_v40  ;;  %1408 = vmatpush3.bf16.msra.mxu0 %v1630_v41 }
 0x29f   :  { %1378 = vmatprep.subr.bf16.mxu1 %v1640_v44  ;;  %1410 = vmatprep.subr.bf16.mxu0 %v1642_v45 }
 0x2a2   :  { %1380 = vmatpush3.bf16.msra.mxu1 %v1666_v52  ;;  %1412 = vmatpush3.bf16.msra.mxu0 %v1668_v53 }
 0x2a3   :  { %1382 = vmatprep.subr.bf16.mxu1 %v1678_v56  ;;  %1414 = vmatprep.subr.bf16.mxu0 %v1680_v57 }
 0x2a6   :  { %1384 = vmatpush3.bf16.msra.mxu1 %v1702_v0  ;;  %1416 = vmatpush3.bf16.msra.mxu0 %v1704_v1 }
 0x2a7   :  { %1386 = vmatprep.subr.bf16.mxu1 %v1714_v4  ;;  %1418 = vmatprep.subr.bf16.mxu0 %v1716_v5 }
 0x2aa   :  { %1388 = vmatpush3.bf16.msra.mxu1 %v1738_v12  ;;  %1420 = vmatpush3.bf16.msra.mxu0 %v1740_v13 }
 0x2ab   :  { %1390 = vmatprep.subr.bf16.mxu1 %v1750_v16  ;;  %1422 = vmatprep.subr.bf16.mxu0 %v1752_v17 }
 0x2ae   :  { %1392 = vmatpush3.bf16.msra.mxu1 %v1774_v24  ;;  %1424 = vmatpush3.bf16.msra.mxu0 %v1776_v25  ;;  %v1061_v25 = vld [vmem:[%s1999_s2] sm:$0xff] }
 0x2af   :  { %1394 = vmatprep.subr.bf16.mxu1 %v1786_v28  ;;  %1426 = vmatprep.subr.bf16.mxu0 %v1788_v29  ;;  %v1071_v28 = vld [vmem:[%s2000_s3] sm:$0xff] }
 0x2b0   :  { %1064 = vperm.xlu0 %1441, %v1061_v25  }
 0x2b2   :  { %1396 = vmatpush3.bf16.msra.mxu1 %v1810_v38  ;;  %1428 = vmatpush3.bf16.msra.mxu0 %v1812_v39 }
 0x2b3   :  { %1398 = vmatprep.subr.bf16.mxu1 %v1822_v46  ;;  %1430 = vmatprep.subr.bf16.mxu0 %v1824_v47 }
 0x2b4   :  { %1074 = vperm.xlu0 %1441, %v1071_v28  }
 0x2b6   :  { %1400 = vmatpush3.bf16.msra.mxu1 %v1846_v58  ;;  %1432 = vmatpush3.bf16.msra.mxu0 %v1848_v59 }
 0x2b7   :  { %1402 = vmatprep.subr.bf16.mxu1 %v1852_v60  ;;  %1434 = vmatprep.subr.bf16.mxu0 %v1854_v61 }
 0x2ba   :  { %1404 = vmatpush3.bf16.msra.mxu1 %v1869_v3  ;;  %1436 = vmatpush3.bf16.msra.mxu0 %v1874_v7 }
 0x2bb   :  { %1304 = vmatprep.subr.mxu1 %v1488_v20  ;;  %1145 = vmatprep.subr.msk.mxu0 %vm538_vm4, %v532_v55 }
 0x370   :  { %v613_v31 = vpop.f32.mrb[6].mxu1  ;;  %v684_v32 = vpop.f32.mrb[8].mxu0 }
 0x371   :  { %v689_v40 = vsub.f32 %v1878_v8, %v613_v31  ;;  %v691_v41 = vsub.f32 %v1880_v9, %v684_v32  ;;  %v615_v44 = vpop.f32.mrb[7].mxu1  ;;  %v686_v45 = vpop.f32.mrb[9].mxu0 }
 0x372   :  { %v690_v52 = vsub.f32 %v1882_v10, %v615_v44  ;;  %v692_v53 = vsub.f32 %v1884_v11, %v686_v45  ;;  %v1065_v8 = vpop.permute.xlu0 %1064 }
 0x373   :  { %v693_v0 = vmul.f32 %v689_v40, %v689_v40  ;;  %v695_v1 = vmul.f32 %v691_v41, %v691_v41 }
 0x374   :  { %v694_v56 = vmul.f32 %v690_v52, %v690_v52  ;;  %v696_v57 = vmul.f32 %v692_v53, %v692_v53 }
 0x376   :  { %761 = vmatprep.mubr.f32.mxu1 %v694_v56  ;;  %831 = vmatprep.mubr.f32.mxu0 %v696_v57  ;;  %v1075_v21 = vpop.permute.xlu0 %1074 }
 0x377   :  { %762 = vmatmul.mubr.f32.vlgmr.msra.gmra.mrb[8].mxu1 %v693_v0  ;;  %832 = vmatmul.mubr.f32.vlgmr.msra.gmra.mrb[10].mxu0 %v695_v1 }
 0x378   :  { %1306 = vmatprep.mubr.msk.f32.mxu1 %vm1489_vm2, %v1488_v20  ;;  %1146 = vmatpush1.msk.msra.mxu0 %vm538_vm4, %v1905_v51 }
 0x379   :  { %975 = vmatprep.mubr.f32.mxu0 %v1488_v20 }
 0x44a   :  { %v1259_v4 = vpop.f32.mrb[8].mxu1  ;;  %v1294_v5 = vpop.f32.mrb[10].mxu0 }
 0x44b   :  { %v1260_v12 = vpop.f32.mrb[9].mxu1  ;;  %v1295_v13 = vpop.f32.mrb[11].mxu0 }
 0x44c   :  { %v1261_v16 = vadd.f32 %v1260_v12, %v1259_v4  ;;  %v1296_v17 = vadd.f32 %v1295_v13, %v1294_v5 }
 0x44e   :  { %v834_v24 = vadd.f32 %v1296_v17, %v1261_v16 }
 0x450   :  { %1305 = vmatpush3.msra.mxu1 %v834_v24 }
 0x451   :  { %1307 = vmatmul.mubr.msk.f32.vlgmr.msra.gmra.mrb[10].mxu1 %vm441_vm3, %v1897_v34  ;;  %1148 = vmatprep.subr.msk.mxu1 %vm538_vm4, %v1913_v62 }
 0x452   :  { %1149 = vmatpush1.msk.msra.mxu1 %vm538_vm4, %v1907_v54  ;;  %1046 = vmatprep.mubr.f32.mxu1 %v1488_v20 }
 0x524   :  { %v903_v29 = vpop.f32.mrb[10].mxu1 }
 0x525   :  { %v907_v38 = vmul.f32 0.0009765625, %v903_v29  ;;  %v1308_v39 = vpop.f32.mrb[11].mxu1 }
 0x527   :  { %1147 = vmatmul.mubr.msk.f32.vlgmr.msra.gmra.mrb[12].mxu0 %vm534_vm5, %v907_v38  ;;  %1150 = vmatmul.mubr.msk.f32.vlgmr.msra.gmra.mrb[12].mxu1 %vm534_vm5, %v907_v38 }
 0x5fa   :  { %v977_v46 = vpop.f32.mrb[12].mxu0  ;;  %v1048_v47 = vpop.f32.mrb[12].mxu1 }
 0x5fb   :  { %v978_v58 = vadd.f32 1e-05, %v977_v46  ;;  %v1049_v59 = vadd.f32 1e-05, %v1048_v47  ;;  %v979_v60 = vpop.f32.mrb[13].mxu0  ;;  %v1050_v61 = vpop.f32.mrb[13].mxu1 }
 0x5fc   :  { %v980_v3 = vadd.f32 1e-05, %v979_v60  ;;  %v1051_v7 = vadd.f32 1e-05, %v1050_v61 }
 0x5fd   :  { %1471 = vrsqrt.f32 %v978_v58 }
 0x5fe   :  { %1473 = vrsqrt.f32 %v1049_v59 }
 0x5ff   :  { %1475 = vrsqrt.f32 %v980_v3 }
 0x600   :  { %1477 = vrsqrt.f32 %v1051_v7 }
 0x607   :  { %v1472_v9 = vpop.eup %1471 }
 0x608   :  { %v1474_v10 = vpop.eup %1473  ;;  %v1057_v11 = vmul.f32 %v1472_v9, %v689_v40 }
 0x609   :  { %v1476_v14 = vpop.eup %1475  ;;  %v1059_v15 = vmul.f32 %v1474_v10, %v691_v41 }
 0x60a   :  { %v1478_v18 = vpop.eup %1477  ;;  %v1058_v19 = vmul.f32 %v1476_v14, %v690_v52  ;;  %v1067_v20 = vmul.f32 %v1065_v8, %v1057_v11 }
 0x60b   :  { %v1060_v22 = vmul.f32 %v1478_v18, %v692_v53  ;;  %v1069_v23 = vmul.f32 %v1065_v8, %v1059_v15 }
 0x60c   :  { %v1068_v26 = vmul.f32 %v1065_v8, %v1058_v19  ;;  %v1077_v27 = vadd.f32 %v1075_v21, %v1067_v20 }
 0x60d   :  { %v1070_v30 = vmul.f32 %v1065_v8, %v1060_v22  ;;  %v1079_v33 = vadd.f32 %v1075_v21, %v1069_v23 }
 0x60e   :  { %v1078_v34 = vadd.f32 %v1075_v21, %v1068_v26  ;;  %v1085_v35 = vmin.f32 %v1077_v27, 0.0  ;;  %vm1081_vm6 = vcmp.gt.f32.partialorder %v1077_v27, 0.0 }
 0x60f   :  { %v1080_v36 = vadd.f32 %v1075_v21, %v1070_v30  ;;  %v1087_v37 = vmin.f32 %v1079_v33, 0.0  ;;  %vm1083_vm7 = vcmp.gt.f32.partialorder %v1079_v33, 0.0 }
 0x610   :  { %v1086_v42 = vmin.f32 %v1078_v34, 0.0  ;;  %v1089_v43 = vmul.f32 1.442695, %v1085_v35  ;;  %vm1082_vm8 = vcmp.gt.f32.partialorder %v1078_v34, 0.0 }
 0x611   :  { %v1088_v48 = vmin.f32 %v1080_v36, 0.0  ;;  %v1093_v49 = vmul.f32 1.442695, %v1087_v37  ;;  %vm1084_vm9 = vcmp.gt.f32.partialorder %v1080_v36, 0.0 }
 0x612   :  { %1479 = vpow2.f32 %v1089_v43  ;;  %v1091_v50 = vmul.f32 1.442695, %v1086_v42 }
 0x613   :  { %1481 = vpow2.f32 %v1093_v49  ;;  %v1095_v51 = vmul.f32 1.442695, %v1088_v48 }
 0x614   :  { %1483 = vpow2.f32 %v1091_v50 }
 0x615   :  { %1485 = vpow2.f32 %v1095_v51 }
 0x61c   :  { %v1480_v54 = vpop.eup %1479 }
 0x61d   :  { %v1482_v55 = vpop.eup %1481  ;;  %v1151_v62 = vadd.f32 -1.0, %v1480_v54 }
 0x61e   :  { %v1484_v63 = vpop.eup %1483  ;;  %v1153_v2 = vadd.f32 -1.0, %v1482_v55 }
 0x61f   :  { %v1486_v6 = vpop.eup %1485  ;;  %v1152_v31 = vadd.f32 -1.0, %v1484_v63  ;;  %v1101_v32 = vsel %vm1081_vm6, %v1077_v27, %v1151_v62 }
 0x620   :  { %v1154_v40 = vadd.f32 -1.0, %v1486_v6  ;;  %v1103_v41 = vsel %vm1083_vm7, %v1079_v33, %v1153_v2  ;;  %1105 = vst [vmem:[%s2001_s7] sm:$0xff] %v1101_v32 }
 0x621   :  { %v1102_v44 = vsel %vm1082_vm8, %v1078_v34, %v1152_v31  ;;  %1107 = vst [vmem:[%s2001_s7 + $0x10] sm:$0xff] %v1103_v41 }
 0x622   :  { %v1104_v45 = vsel %vm1084_vm9, %v1080_v36, %v1154_v40  ;;  %1106 = vst [vmem:[%s2001_s7 + $0x8] sm:$0xff] %v1102_v44 }
 0x623   :  { %1108 = vst [vmem:[%s2001_s7 + $0x18] sm:$0xff] %v1104_v45 }

// kernel: run.19
= control target key start
LH: loop header
LB: loop body
LE: loop exit
PB: predicated region body
PF: predicated region fallthrough
CT: control target
= control target key end

     0   :  { %v297_v1 = vmov 0   ;;  %vm134_vm0 = vcmask 1043456   ;;  %vm130_vm1 = vcmask 588800   ;;  %s384_s0 = inlined_call_operand.vmem [shape: bf16[72,512], index: 0, kind: input, shape index: {}]   ;;  %s385_s2 = inlined_call_operand.vmem [shape: f32[4,1], index: 2, kind: input, shape index: {}]   ;;  %s386_s1 = inlined_call_operand.vmem [shape: bf16[4,72], index: 1, kind: input, shape index: {}]   ;;  %s387_s3 = inlined_call_operand.vmem [shape: f32[4,512], index: 3, kind: output, shape index: {}]  }
   0x1   :  { %v269_v0 = vld [vmem:[%s384_s0 + $0x4] ss:$16 sps:$4 sm:$0xff]   ;;  %179 = vmatprep.mubr.bf16.mxu0 %v297_v1  ;;  %220 = vmatprep.mubr.bf16.mxu1 %v297_v1  ;;  %v271_v2 = vld [vmem:[%s384_s0 + $0xc] ss:$16 sps:$4 sm:$0xff]   ;;  %v273_v3 = vld [vmem:[%s384_s0] ss:$16 sps:$4 sm:$0xff]  }
   0x2   :  { %268 = vset.pattern.permute.xlu0 %v297_v1  ;;  %147 = vmatprep.subr.bf16.mxu0 %v269_v0  ;;  %v274_v4 = vld [vmem:[%s384_s0 + $0x8] ss:$16 sps:$4 sm:$0xff]   ;;  %v275_v5 = vld [vmem:[%s384_s0 + $0x24] ss:$16 sps:$4 sm:$0xff]   ;;  %v277_v6 = vld [vmem:[%s384_s0 + $0x2c] ss:$16 sps:$4 sm:$0xff]  }
   0x3   :  { %188 = vmatprep.subr.bf16.mxu1 %v271_v2  ;;  %148 = vmatpush1.bf16.msra.mxu0 %v273_v3  ;;  %v279_v7 = vld [vmem:[%s384_s0 + $0x20] ss:$16 sps:$4 sm:$0xff]   ;;  %v280_v8 = vld [vmem:[%s384_s0 + $0x28] ss:$16 sps:$4 sm:$0xff]   ;;  %v281_v9 = vld [vmem:[%s384_s0 + $0x44] ss:$16 sps:$4 sm:$0xff]  }
   0x4   :  { %189 = vmatpush1.bf16.msra.mxu1 %v274_v4  ;;  %149 = vmatprep.subr.bf16.mxu0 %v275_v5  ;;  %v283_v10 = vld [vmem:[%s384_s0 + $0x4c] ss:$16 sps:$4 sm:$0xff]   ;;  %v285_v11 = vld [vmem:[%s384_s0 + $0x40] ss:$16 sps:$4 sm:$0xff]   ;;  %v286_v12 = vld [vmem:[%s384_s0 + $0x48] ss:$16 sps:$4 sm:$0xff]  }
   0x5   :  { %190 = vmatprep.subr.bf16.mxu1 %v277_v6  ;;  %v287_v13 = vld [vmem:[%s384_s0 + $0x64] ss:$16 sps:$4 sm:$0xff]   ;;  %v289_v14 = vld [vmem:[%s384_s0 + $0x6c] ss:$16 sps:$4 sm:$0xff]   ;;  %v34_v17 = vld [vmem:[%s385_s2] sm:$0xf] }
   0x6   :  { %v32_v15 = vld [vmem:[%s384_s0 + $0x80] sm:$0xff]  ;;  %v33_v16 = vld [vmem:[%s384_s0 + $0x88] sm:$0xff]  ;;  %37 = vperm.xlu0 %268, %v34_v17  }
   0x7   :  { %150 = vmatpush1.bf16.msra.mxu0 %v279_v7  ;;  %v291_v18 = vld [vmem:[%s384_s0 + $0x60] ss:$16 sps:$4 sm:$0xff]   ;;  %v292_v19 = vld [vmem:[%s384_s0 + $0x68] ss:$16 sps:$4 sm:$0xff]   ;;  %v260_v20 = vcombine.high %v32_v15, %v32_v15  ;;  %v262_v21 = vcombine.high %v33_v16, %v33_v16  ;;  %v259_v22 = vcombine.low %v32_v15, %v32_v15  ;;  %v261_v23 = vcombine.low %v33_v16, %v33_v16 }
   0x8   :  { %191 = vmatpush1.bf16.msra.mxu1 %v280_v8  ;;  %151 = vmatprep.subr.bf16.mxu0 %v281_v9  ;;  %v15_v26 = vld [vmem:[%s386_s1] sm:$0x3] }
   0x9   :  { %192 = vmatprep.subr.bf16.mxu1 %v283_v10  ;;  %v136_v24 = vsel %vm134_vm0, %v259_v22, 0  ;;  %v142_v25 = vsel %vm134_vm0, %v261_v23, 0 }
   0xb   :  { %152 = vmatpush1.bf16.msra.mxu0 %v285_v11 }
   0xc   :  { %193 = vmatpush1.bf16.msra.mxu1 %v286_v12  ;;  %153 = vmatprep.subr.bf16.mxu0 %v287_v13 }
   0xd   :  { %194 = vmatprep.subr.bf16.mxu1 %v289_v14 }
   0xf   :  { %154 = vmatpush1.bf16.msra.mxu0 %v291_v18 }
  0x10   :  { %195 = vmatpush1.bf16.msra.mxu1 %v292_v19  ;;  %263 = vmatprep.subr.msk.bf16.mxu0 %vm134_vm0, %v260_v20 }
  0x11   :  { %265 = vmatprep.subr.msk.bf16.mxu1 %vm134_vm0, %v262_v21 }
  0x13   :  { %156 = vmatpush1.bf16.msra.mxu0 %v136_v24 }
  0x14   :  { %197 = vmatpush1.bf16.msra.mxu1 %v142_v25 }
  0x16   :  { %264 = vmatmul.mubr.msk.bf16.vlgmr.msra.gmra.mrb[0].mxu0 %vm130_vm1, %v15_v26 }
  0x17   :  { %266 = vmatmul.mubr.msk.bf16.vlgmr.msra.gmra.mrb[0].mxu1 %vm130_vm1, %v15_v26 }
  0x85   :  { %v38_v27 = vpop.permute.xlu0 %37 }
  0xe9   :  { %v181_v28 = vpop.f32.mrb[0].mxu0 }
  0xea   :  { %v222_v29 = vpop.f32.mrb[0].mxu1  ;;  %v182_v30 = vadd.f32 %v181_v28, %v38_v27  ;;  %v183_v32 = vpop.f32.mrb[1].mxu0 }
  0xeb   :  { %v223_v31 = vadd.f32 %v222_v29, %v38_v27  ;;  %v224_v33 = vpop.f32.mrb[1].mxu1  ;;  %v184_v34 = vadd.f32 %v183_v32, %v38_v27  ;;  %v185_v36 = vpop.f32.mrb[2].mxu0 }
  0xec   :  { %v225_v35 = vadd.f32 %v224_v33, %v38_v27  ;;  %v226_v37 = vpop.f32.mrb[2].mxu1  ;;  %v186_v38 = vpop.f32.mrb[3].mxu0 }
  0xed   :  { %v227_v39 = vpop.f32.mrb[3].mxu1  ;;  %v233_v40 = vcombine.low %v182_v30, %v184_v34 }
  0xee   :  { %v234_v41 = vcombine.low %v223_v31, %v225_v35 }
  0xef   :  { %237 = vst [vmem:[%s387_s3] sm:$0xff] %v233_v40 }
  0xf0   :  { %238 = vst [vmem:[%s387_s3 + $0x8] sm:$0xff] %v234_v41 }

</bundles_post_ra>
